<compile_context>
chip_gen: v6e
topology: v6e:2x2x1
jax: 0.10.0
libtpu: 0.0.40
codegen_flags: <defaults>
</compile_context>

<pallas_src>
import jax
import jax.numpy as jnp
from jax.experimental import pallas as pl
from jax.experimental.pallas import tpu as pltpu

K_SIZE = 3
STRIDE = 2
PADDING = 1
OUTPUT_PADDING = 1
NUM_PARITY = 8     # (od, oh, ow) even/odd output classes
NUM_SHIFT = 8      # (sd, sh, sw) in {0,1}^3 input shifts


def _choose_td(N, D, H, W, Cin, Lpad, budget_bytes=6 * 1024 * 1024):
    """Largest divisor of D whose per-step working set fits a conservative
    budget (sized for v7x's 64 MiB VMEM with double buffering), while keeping
    >= 2 parallel grid blocks when possible (dual-TC v7x)."""
    divisors = [t for t in range(1, D + 1) if D % t == 0]
    td = 1
    for t in divisors:
        in_b = 2 * (t + 1) * (H + 1) * (W + 1) * Cin * 2        # dbl-buffered input + halo (bf16)
        out_b = 2 * t * H * W * Lpad * 4                        # dbl-buffered f32 output block
        tmp_b = t * H * W * (NUM_SHIFT * Cin * 2 + Lpad * 4)    # lhs concat + f32 acc
        tmp_b += (t + 1) * (H + 1) * (W + 1) * Cin * 2          # in-kernel depth concat copy
        if in_b + out_b + tmp_b <= budget_bytes:
            td = t
    while td > 1 and N * (D // td) < 2:
        td = max(t for t in divisors if t < td)
    return td


def _make_convt_kernel(TD, H, W, Cin):
    """One grid step: TD input depth slices -> all 8 output parities."""
    M = TD * H * W

    def kernel(x_ref, xh_ref, w_ref, b_ref, o_ref):
        # x_ref : (1, TD, H+1, W+1, Cin) bf16   input depths [d*TD, d*TD+TD)
        # xh_ref: (1, 1,  H+1, W+1, Cin) bf16   halo depth slice d*TD+TD
        # w_ref : (8*Cin, Lpad)          bf16   taps packed along K, parity along lanes
        # b_ref : (1, Lpad)              f32    bias tiled per parity
        # o_ref : (1, 1, TD*H*W, Lpad)   f32
        xcat = jnp.concatenate([x_ref[0], xh_ref[0]], axis=0)   # (TD+1, H+1, W+1, Cin)
        views = []
        for sd in (0, 1):
            for sh in (0, 1):
                for sw in (0, 1):
                    views.append(xcat[sd:sd + TD, sh:sh + H, sw:sw + W, :])
        lhs = jnp.concatenate(views, axis=-1)                   # (TD, H, W, 8*Cin)
        lhs = lhs.reshape(M, NUM_SHIFT * Cin)
        acc = jnp.dot(lhs, w_ref[...],
                      preferred_element_type=jnp.float32)       # (M, Lpad) f32, MXU
        o_ref[0, 0, :, :] = acc + b_ref[...]

    return kernel


def conv_transpose3d_pallas(x_ncdhw, weight, bias):
    """Forward of nn.ConvTranspose3d(k=3, stride=2, padding=1, output_padding=1).

    x_ncdhw: (N, Cin, D, H, W) f32
    weight : (Cin, Cout, 3, 3, 3) f32   (PyTorch ConvTranspose3d layout)
    bias   : (Cout,) f32
    returns: (N, Cout, 2D, 2H, 2W) f32
    """
    N, Cin, D, H, W = x_ncdhw.shape
    assert weight.shape[0] == Cin and weight.shape[2:] == (K_SIZE,) * 3
    Cout = weight.shape[1]
    lanes = NUM_PARITY * Cout                       # useful output lanes per row
    Lpad = ((lanes + 127) // 128) * 128             # lane-dense stores
    TD = _choose_td(N, D, H, W, Cin, Lpad)
    DB = D // TD

    # NDHWC, one trailing zero halo per spatial dim (covers id==D, ih==H, iw==W).
    x = jnp.transpose(x_ncdhw, (0, 2, 3, 4, 1))
    xp = jnp.pad(x, ((0, 0), (0, 1), (0, 1), (0, 1), (0, 0))).astype(jnp.bfloat16)

    # Combined RHS:
    #   rows  : shift class  s = 4*sd + 2*sh + sw   -> K = 8*Cin
    #   cols  : parity class p = 4*pd + 2*ph + pw   -> lanes = 8*Cout
    # For output parity (pd,ph,pw) the tap from input shift (sd,sh,sw) uses
    # kernel index k* = p* + 1 - 2*s* (kept only when 0 <= k* < 3; else zero row).
    w_comb = jnp.zeros((NUM_SHIFT * Cin, lanes), dtype=weight.dtype)
    for p in range(NUM_PARITY):
        pd, ph, pw = (p >> 2) & 1, (p >> 1) & 1, p & 1
        for sd in (0, 1):
            kd = pd + 1 - 2 * sd
            if not 0 <= kd < K_SIZE:
                continue
            for sh in (0, 1):
                kh = ph + 1 - 2 * sh
                if not 0 <= kh < K_SIZE:
                    continue
                for sw in (0, 1):
                    kw = pw + 1 - 2 * sw
                    if not 0 <= kw < K_SIZE:
                        continue
                    s = 4 * sd + 2 * sh + sw
                    w_comb = w_comb.at[s * Cin:(s + 1) * Cin,
                                       p * Cout:(p + 1) * Cout].set(
                        weight[:, :, kd, kh, kw])
    w_comb = jnp.pad(w_comb, ((0, 0), (0, Lpad - lanes))).astype(jnp.bfloat16)
    b_comb = jnp.pad(jnp.tile(bias, NUM_PARITY), (0, Lpad - lanes))
    b_comb = b_comb.reshape(1, Lpad).astype(jnp.float32)

    kernel = _make_convt_kernel(TD, H, W, Cin)
    out_grouped = pl.pallas_call(
        kernel,
        out_shape=jax.ShapeDtypeStruct((N, DB, TD * H * W, Lpad), jnp.float32),
        grid=(N, DB),
        in_specs=[
            # Main block: TD depth slices starting at d*TD.
            pl.BlockSpec((1, TD, H + 1, W + 1, Cin),
                         lambda n, d: (n, d, 0, 0, 0)),
            # Halo: the single depth slice d*TD + TD (only 1/TD extra HBM read).
            pl.BlockSpec((1, 1, H + 1, W + 1, Cin),
                         lambda n, d: (n, (d + 1) * TD, 0, 0, 0)),
            pl.BlockSpec((NUM_SHIFT * Cin, Lpad), lambda n, d: (0, 0)),   # resident
            pl.BlockSpec((1, Lpad), lambda n, d: (0, 0)),                 # resident
        ],
        out_specs=pl.BlockSpec((1, 1, TD * H * W, Lpad),
                               lambda n, d: (n, d, 0, 0)),
        compiler_params=pltpu.CompilerParams(
            dimension_semantics=("parallel", "parallel"),
            vmem_limit_bytes=32 * 1024 * 1024),
    )(xp, xp, w_comb, b_comb)

    # (N, DB, TD*HW, lanes) -> interleave parities -> NCDHW.
    # Pure reshape/transpose chain; XLA fuses it into one output-sized pass
    # (the NCDHW transpose is required by the PyTorch output layout anyway).
    out = out_grouped[..., :lanes].reshape(N, D, H, W, 2, 2, 2, Cout)
    out = jnp.transpose(out, (0, 1, 4, 2, 5, 3, 6, 7))   # (N, D, pd, H, ph, W, pw, C)
    out = out.reshape(N, 2 * D, 2 * H, 2 * W, Cout)
    return jnp.transpose(out, (0, 4, 1, 2, 3))            # NCDHW


if __name__ == "__main__":
    key = jax.random.PRNGKey(0)
    kx, kw, kb = jax.random.split(key, 3)

    # Small shapes consistent with the module.
    N, Cin, Cout, D, H, W = 2, 16, 8, 8, 8, 8
    x = jax.random.normal(kx, (N, Cin, D, H, W), jnp.float32)
    bound = 1.0 / (Cin * K_SIZE ** 3) ** 0.5
    w = jax.random.uniform(kw, (Cin, Cout, K_SIZE, K_SIZE, K_SIZE),
                           jnp.float32, -bound, bound)
    b = jax.random.uniform(kb, (Cout,), jnp.float32, -bound, bound)

    fwd = jax.jit(conv_transpose3d_pallas)
    out = fwd(x, w, b)
    jax.block_until_ready(out)
    assert out.shape == (N, Cout, 2 * D, 2 * H, 2 * W), out.shape

    # Correctness check vs XLA's lhs-dilated conv (== ConvTranspose3d).  Inputs
    # are rounded to bf16 so both paths see identical operands (f32 accumulate).
    x_bf = x.astype(jnp.bfloat16).astype(jnp.float32)
    w_bf = w.astype(jnp.bfloat16).astype(jnp.float32)
    w_direct = jnp.transpose(w_bf, (1, 0, 2, 3, 4))[:, :, ::-1, ::-1, ::-1]
    ref = jax.lax.conv_general_dilated(
        x_bf, w_direct, window_strides=(1, 1, 1),
        padding=[(K_SIZE - 1 - PADDING, K_SIZE - 1 - PADDING + OUTPUT_PADDING)] * 3,
        lhs_dilation=(STRIDE, STRIDE, STRIDE),
        dimension_numbers=("NCDHW", "OIDHW", "NCDHW"),
        precision=jax.lax.Precision.HIGHEST) + b.reshape(1, -1, 1, 1, 1)
    err = float(jnp.max(jnp.abs(out - ref)))
    assert err < 1e-2, f"max abs error vs reference: {err}"
    print("KERNEL_OK")
</pallas_src>

<mosaic_0001>
module attributes {stable_mosaic.version = 11 : i64} {
  func.func @kernel(%arg0: i32, %arg1: i32, %arg2: memref<1x8x9x9x16xbf16, #tpu.memory_space<vmem>>, %arg3: memref<1x1x9x9x16xbf16, #tpu.memory_space<vmem>>, %arg4: memref<128x128xbf16, #tpu.memory_space<vmem>>, %arg5: memref<1x128xf32, #tpu.memory_space<vmem>>, %arg6: memref<1x1x512x128xf32, #tpu.memory_space<vmem>>) attributes {dimension_semantics = [#tpu.dimension_semantics<parallel>, #tpu.dimension_semantics<parallel>], iteration_bounds = array<i64: 2, 1>, scalar_prefetch = 0 : i64, scratch_operands = 0 : i64, tpu.core_type = #tpu.core_type<tc>, window_params = [{transform_indices = @transform_0, window_bounds = array<i64: 1, 8, 9, 9, 16>}, {transform_indices = @transform_1, window_bounds = array<i64: 1, 1, 9, 9, 16>}, {pipeline_mode = #tpu.pipeline_mode<synchronous>, transform_indices = @transform_2, window_bounds = array<i64: 128, 128>}, {pipeline_mode = #tpu.pipeline_mode<synchronous>, transform_indices = @transform_3, window_bounds = array<i64: 1, 128>}, {transform_indices = @transform_4, window_bounds = array<i64: 1, 1, 512, 128>}]} {
    %c0 = arith.constant 0 : index
    %c0_0 = arith.constant 0 : index
    %c0_1 = arith.constant 0 : index
    %c0_2 = arith.constant 0 : index
    %c0_3 = arith.constant 0 : index
    %0 = vector.load %arg2[%c0, %c0_0, %c0_1, %c0_2, %c0_3] : memref<1x8x9x9x16xbf16, #tpu.memory_space<vmem>>, vector<1x8x9x9x16xbf16>
    %1 = vector.shape_cast %0 : vector<1x8x9x9x16xbf16> to vector<8x9x9x16xbf16>
    %c0_4 = arith.constant 0 : index
    %c0_5 = arith.constant 0 : index
    %c0_6 = arith.constant 0 : index
    %c0_7 = arith.constant 0 : index
    %c0_8 = arith.constant 0 : index
    %2 = vector.load %arg3[%c0_4, %c0_5, %c0_6, %c0_7, %c0_8] : memref<1x1x9x9x16xbf16, #tpu.memory_space<vmem>>, vector<1x1x9x9x16xbf16>
    %3 = vector.shape_cast %2 : vector<1x1x9x9x16xbf16> to vector<1x9x9x16xbf16>
    %4 = tpu.concatenate %1, %3 in 0 : vector<8x9x9x16xbf16>, vector<1x9x9x16xbf16> -> vector<9x9x9x16xbf16>
    %5 = vector.extract_strided_slice %4 {offsets = [0, 0, 0, 0], sizes = [8, 8, 8, 16], strides = [1, 1, 1, 1]} : vector<9x9x9x16xbf16> to vector<8x8x8x16xbf16>
    %6 = vector.extract_strided_slice %4 {offsets = [0, 0, 1, 0], sizes = [8, 8, 8, 16], strides = [1, 1, 1, 1]} : vector<9x9x9x16xbf16> to vector<8x8x8x16xbf16>
    %7 = vector.extract_strided_slice %4 {offsets = [0, 1, 0, 0], sizes = [8, 8, 8, 16], strides = [1, 1, 1, 1]} : vector<9x9x9x16xbf16> to vector<8x8x8x16xbf16>
    %8 = vector.extract_strided_slice %4 {offsets = [0, 1, 1, 0], sizes = [8, 8, 8, 16], strides = [1, 1, 1, 1]} : vector<9x9x9x16xbf16> to vector<8x8x8x16xbf16>
    %9 = vector.extract_strided_slice %4 {offsets = [1, 0, 0, 0], sizes = [8, 8, 8, 16], strides = [1, 1, 1, 1]} : vector<9x9x9x16xbf16> to vector<8x8x8x16xbf16>
    %10 = vector.extract_strided_slice %4 {offsets = [1, 0, 1, 0], sizes = [8, 8, 8, 16], strides = [1, 1, 1, 1]} : vector<9x9x9x16xbf16> to vector<8x8x8x16xbf16>
    %11 = vector.extract_strided_slice %4 {offsets = [1, 1, 0, 0], sizes = [8, 8, 8, 16], strides = [1, 1, 1, 1]} : vector<9x9x9x16xbf16> to vector<8x8x8x16xbf16>
    %12 = vector.extract_strided_slice %4 {offsets = [1, 1, 1, 0], sizes = [8, 8, 8, 16], strides = [1, 1, 1, 1]} : vector<9x9x9x16xbf16> to vector<8x8x8x16xbf16>
    %13 = tpu.concatenate %5, %6, %7, %8, %9, %10, %11, %12 in 3 : vector<8x8x8x16xbf16>, vector<8x8x8x16xbf16>, vector<8x8x8x16xbf16>, vector<8x8x8x16xbf16>, vector<8x8x8x16xbf16>, vector<8x8x8x16xbf16>, vector<8x8x8x16xbf16>, vector<8x8x8x16xbf16> -> vector<8x8x8x128xbf16>
    %14 = vector.shape_cast %13 : vector<8x8x8x128xbf16> to vector<512x128xbf16>
    %c0_9 = arith.constant 0 : index
    %c0_10 = arith.constant 0 : index
    %15 = vector.load %arg4[%c0_9, %c0_10] : memref<128x128xbf16, #tpu.memory_space<vmem>>, vector<128x128xbf16>
    %cst = arith.constant dense<0.000000e+00> : vector<512x128xf32>
    %16 = tpu.matmul %14, %15, %cst {dimension_numbers = #tpu.dot_dimension_numbers<[1], [0], [0], [1], [0, 0, 1, 1], [], []>} : vector<512x128xbf16>, vector<128x128xbf16>, vector<512x128xf32> -> vector<512x128xf32>
    %c0_11 = arith.constant 0 : index
    %c0_12 = arith.constant 0 : index
    %17 = vector.load %arg5[%c0_11, %c0_12] : memref<1x128xf32, #tpu.memory_space<vmem>>, vector<1x128xf32>
    %18 = vector.broadcast %17 : vector<1x128xf32> to vector<512x128xf32>
    %19 = arith.addf %16, %18 : vector<512x128xf32>
    %c0_13 = arith.constant 0 : index
    %c0_14 = arith.constant 0 : index
    %c0_15 = arith.constant 0 : index
    %c0_16 = arith.constant 0 : index
    %20 = vector.load %arg6[%c0_13, %c0_14, %c0_15, %c0_16] : memref<1x1x512x128xf32, #tpu.memory_space<vmem>>, vector<1x1x512x128xf32>
    %21 = vector.shape_cast %20 : vector<1x1x512x128xf32> to vector<512x128xf32>
    %22 = vector.shape_cast %19 : vector<512x128xf32> to vector<1x1x512x128xf32>
    tpu.vector_store %arg6[%c0_13, %c0_14, %c0_15, %c0_16], %22 {strides = array<i32>} : memref<1x1x512x128xf32, #tpu.memory_space<vmem>>, vector<1x1x512x128xf32>,
    return
  }
  func.func @transform_0(%arg0: i32, %arg1: i32) -> (i32, i32, i32, i32, i32) {
    %c0_i32 = arith.constant 0 : i32
    %c0_i32_0 = arith.constant 0 : i32
    %c0_i32_1 = arith.constant 0 : i32
    %c0_i32_2 = arith.constant 0 : i32
    return %arg0, %arg1, %c0_i32, %c0_i32_0, %c0_i32_1 : i32, i32, i32, i32, i32
  }
  func.func @transform_1(%arg0: i32, %arg1: i32) -> (i32, i32, i32, i32, i32) {
    %c1_i32 = arith.constant 1 : i32
    %0 = arith.addi %arg1, %c1_i32 : i32
    %c8_i32 = arith.constant 8 : i32
    %1 = arith.muli %0, %c8_i32 : i32
    %c0_i32 = arith.constant 0 : i32
    %c0_i32_0 = arith.constant 0 : i32
    %c0_i32_1 = arith.constant 0 : i32
    %c0_i32_2 = arith.constant 0 : i32
    return %arg0, %1, %c0_i32, %c0_i32_0, %c0_i32_1 : i32, i32, i32, i32, i32
  }
  func.func @transform_2(%arg0: i32, %arg1: i32) -> (i32, i32) {
    %c0_i32 = arith.constant 0 : i32
    %c0_i32_0 = arith.constant 0 : i32
    %c0_i32_1 = arith.constant 0 : i32
    return %c0_i32, %c0_i32_0 : i32, i32
  }
  func.func @transform_3(%arg0: i32, %arg1: i32) -> (i32, i32) {
    %c0_i32 = arith.constant 0 : i32
    %c0_i32_0 = arith.constant 0 : i32
    %c0_i32_1 = arith.constant 0 : i32
    return %c0_i32, %c0_i32_0 : i32, i32
  }
  func.func @transform_4(%arg0: i32, %arg1: i32) -> (i32, i32, i32, i32) {
    %c0_i32 = arith.constant 0 : i32
    %c0_i32_0 = arith.constant 0 : i32
    %c0_i32_1 = arith.constant 0 : i32
    return %arg0, %arg1, %c0_i32, %c0_i32_0 : i32, i32, i32, i32
  }
}

</mosaic_0001>

<bundles_post_ra>
// kernel: tile.8
= control target key start
LH: loop header
LB: loop body
LE: loop exit
PB: predicated region body
PF: predicated region fallthrough
CT: control target
= control target key end

     0   :  { %2 = vsyncpa [#allocation1], 0  ;;  %s42_s6 = smov [#allocation0]   ;;  %s59_s0 = inlined_call_operand.hbm [shape: f32[8], index: 0, kind: input, shape index: {}]   ;;  %s60_s1 = inlined_call_operand.vmem [shape: f32[8,8], index: 1, kind: output, shape index: {}]  }
   0x1   :  { %s9_s7 = sshll.u32 %s42_s6, 4  ;;  %s10_s7 = int_to_ptr.vmem [resolvable:$true] %s9_s7 }
   0x2   :  { %s28_s8 = scalar_lea.vmem %s10_s7, 16  ;;  %s32_s9 = scalar_lea.vmem %s10_s7, 32 }
   0x3   :  { %p29_p0 = scmp.ne.s32.totalorder %s10_s7, %s28_s8  ;;  %p33_p1 = scmp.lt.s32.totalorder %s10_s7, %s10_s7 }
   0x4   :  { %p34_p2 = scmp.lt.s32.totalorder %s32_s9, %s28_s8 }
   0x6   :  { %p35_p3 = por %p34_p2, %p33_p1 }
   0x8   :  { %p36_p4 = pnand %p35_p3, %p29_p0 }
   0xa   :  { %39 = shalt.err (!%p36_p4)
}
   0xb   :  { %12 = dma.hbm_to_vmem [thread:$0]  %s59_s0, 16, %s10_s7, [#allocation1]  }
   0xc   :  { %40 = dma.done.wait [#allocation1], 16  }
   0xd   :  { %41 = vsyncadd [#allocation1], 4294967280  ;;  %v16_v0 = vld [vmem:[#allocation0] ss:$0 sm:$0xff] }
   0xe   :  { %17 = vst [vmem:[%s60_s1] sm:$0xff] %v16_v0 }
   0xf   :  { %18 = vsyncpa [#allocation1], 1 }

// kernel: tile.9
= control target key start
LH: loop header
LB: loop body
LE: loop exit
PB: predicated region body
PF: predicated region fallthrough
CT: control target
= control target key end

     0   :  { %s69_s10 = smov 56   ;;  %s70_s11 = smov 40   ;;  %vm3_vm0 = vcmask 64512   ;;  %vm9_vm1 = vcmask 523712   ;;  %vm15_vm2 = vcmask 458112   ;;  %vm21_vm3 = vcmask 392512   ;;  %s113_s0 = inlined_call_operand.vmem [shape: f32[8,8], index: 0, kind: input, shape index: {}]   ;;  %s114_s1 = inlined_call_operand.vmem [shape: f32[64], index: 1, kind: output, shape index: {}]  }
   0x1   :  { %v55_v0 = vld [vmem:[%s113_s0 + $0x7] sm:$0x1]   ;;  %v57_v1 = vld [vmem:[%s113_s0 + $0x5] sm:$0x1]   ;;  %v56_v2 = vld [vmem:[%s113_s0 + $0x6] sm:$0x1]  }
   0x2   :  { %7 = vrot.lane.b32.xlu0 %v55_v0, %s69_s10  ;;  %19 = vrot.lane.b32.xlu1 %v57_v1, %s70_s11  ;;  %v58_v3 = vld [vmem:[%s113_s0 + $0x4] sm:$0x1]   ;;  %v2_v4 = vld [vmem:[%s113_s0] sm:$0x1]   ;;  %s71_s18 = smov 48   ;;  %s72_s19 = smov 32  }
   0x3   :  { %4 = vst.msk [vmem:[#allocation0] sm:$0x1] %vm3_vm0, %v2_v4   ;;  %v59_v5 = vld [vmem:[%s113_s0 + $0x3] sm:$0x1]   ;;  %v60_v6 = vld [vmem:[%s113_s0 + $0x2] sm:$0x1]  }
   0x4   :  { %s73_s24 = smov 24   ;;  %s74_s25 = smov 16   ;;  %v61_v7 = vld [vmem:[%s113_s0 + $0x1] sm:$0x1]   ;;  %vm27_vm4 = vcmask 326912   ;;  %vm33_vm5 = vcmask 261312  }
   0x5   :  { %s75_s0 = smov 8   ;;  %vm39_vm6 = vcmask 195712   ;;  %vm45_vm7 = vcmask 130112  }
   0x6   :  { %13 = vrot.lane.b32.xlu0 %v56_v2, %s71_s18  ;;  %25 = vrot.lane.b32.xlu1 %v58_v3, %s72_s19 }
   0xa   :  { %31 = vrot.lane.b32.xlu0 %v59_v5, %s73_s24  ;;  %37 = vrot.lane.b32.xlu1 %v60_v6, %s74_s25 }
   0xe   :  { %43 = vrot.lane.b32.xlu0 %v61_v7, %s75_s0 }
  0x74   :  { %v8_v8 = vpop.permute.xlu0 %7   ;;  %v20_v9 = vpop.permute.xlu1 %19  }
  0x75   :  { %10 = vst.msk [vmem:[#allocation0] sm:$0x1] %vm9_vm1, %v8_v8  }
  0x78   :  { %v14_v10 = vpop.permute.xlu0 %13   ;;  %v26_v11 = vpop.permute.xlu1 %25  }
  0x79   :  { %16 = vst.msk [vmem:[#allocation0] sm:$0x1] %vm15_vm2, %v14_v10  }
  0x7a   :  { %22 = vst.msk [vmem:[#allocation0] sm:$0x1] %vm21_vm3, %v20_v9  }
  0x7b   :  { %28 = vst.msk [vmem:[#allocation0] sm:$0x1] %vm27_vm4, %v26_v11  }
  0x7c   :  { %v32_v12 = vpop.permute.xlu0 %31   ;;  %v38_v13 = vpop.permute.xlu1 %37  }
  0x7d   :  { %34 = vst.msk [vmem:[#allocation0] sm:$0x1] %vm33_vm5, %v32_v12  }
  0x7e   :  { %40 = vst.msk [vmem:[#allocation0] sm:$0x1] %vm39_vm6, %v38_v13  }
  0x80   :  { %v44_v14 = vpop.permute.xlu0 %43  }
  0x81   :  { %46 = vst.msk [vmem:[#allocation0] sm:$0x1] %vm45_vm7, %v44_v14  }
  0x88   :  { %v51_v15 = vld [vmem:[#allocation0] sm:$0x1] }
  0x89   :  { %54 = vst [vmem:[%s114_s1] sm:$0x1] %v51_v15 }

// kernel: conv_transpose3d_pallas.1
= control target key start
LH: loop header
LB: loop body
LE: loop exit
PB: predicated region body
PF: predicated region fallthrough
CT: control target
= control target key end

     0   :  { %s4818_s15 = smov 0   ;;  %s4820_s16 = smov 0   ;;  %s8205_s0 = inlined_call_operand.vmem [shape: bf16[2,9,9,9,16], index: 0, kind: input, shape index: {}, may-alias: {0,1}]   ;;  %s8206_s1 = inlined_call_operand.vmem [shape: bf16[2,9,9,9,16], index: 1, kind: input, shape index: {}, may-alias: {0,1}]   ;;  %s8207_s2 = inlined_call_operand.vmem [shape: bf16[128,128], index: 2, kind: input, shape index: {}]   ;;  %s8208_s3 = inlined_call_operand.vmem [shape: f32[1,128], index: 3, kind: input, shape index: {}]   ;;  %s8209_s4 = inlined_call_operand.vmem [shape: f32[2,1,512,128], index: 4, kind: output, shape index: {}]  }
   0x1   :  { %s4822_s17 = smov 0  }
   0x2 LB: > { %s26_s18 = sadd.s32 1, %s4780_s16  ;;  %p4128_p0 = scmp.ge.s32.totalorder %s4784_s17, 1  ;;  %s4784_s17 = sphi %s4822_s17, %s14_s17   ;;  %s4780_s16 = sphi %s4820_s16, %s9194_s16   ;;  %s4776_s15 = sphi %s4818_s15, %s9193_s15  }
   0x3   : > { %p28_p1 = scmp.ge.s32.totalorder %s26_s18, 2  ;;  %p220_p2 = scmp.lt.s32.totalorder %s4784_s17, 3 }
   0x5   : > { %s9196_s18 = smov (%p28_p1, %s26_s18), 0  ;;  %p221_p3 = pnand %p4128_p0, %p220_p2 }
   0x7   : > { %224 = sbr.rel (%p221_p3) target bundleno = 1241 (0x4d9), region = 36 }
   0xc   : > { %p279_p4 = scmp.lt.s32.totalorder %s4776_s15, 1  ;;  %s4786_s23 = smov 16   ;;  %vm2428_vm0 = vcmask 130048   ;;  %vm2621_vm1 = vcmask 261120   ;;  %vm2750_vm2 = vcmask 392192   ;;  %vm2879_vm3 = vcmask 523264  }
   0xd   : > { %s4787_s24 = smov 32   ;;  %s4788_s25 = smov 48   ;;  %vm3008_vm4 = vcmask 654336   ;;  %vm3137_vm5 = vcmask 785408   ;;  %vm3266_vm6 = vcmask 916480  }
   0xe   : > { %s9198_s15 = smov (!%p279_p4, %s4776_s15), 1  ;;  %s4789_s26 = smov 64  }
   0xf   : > { %s4476_s19 = smul.u32 648, %s9198_s15  ;;  %s4790_s5 = smov 80  }
  0x10   : > { %s4791_s20 = smov 96   ;;  %s4792_s28 = smov 112  }
  0x11   : > { %s4844_s22 = scalar_lea.vmem %s8205_s0, %s4476_s19  ;;  %s4338_s27 = sadd.s32 576, %s4476_s19 }
  0x12   : > { %v322_v0 = vld [vmem:[%s4844_s22 + $0x10] sm:$0xf]  ;;  %v323_v1 = vld [vmem:[%s4844_s22 + $0x14] sm:$0x1]  ;;  %v318_v2 = vld [vmem:[%s4844_s22] sm:$0xf]  ;;  %s6403_s30 = scalar_lea.vmem %s8206_s1, %s4338_s27 }
  0x13   : > { %v4135_v3 = vcombine.low %v322_v0, %v323_v1  ;;  %v319_v4 = vld [vmem:[%s4844_s22 + $0x4] sm:$0x1]  ;;  %v324_v5 = vld [vmem:[%s4844_s22 + $0x18] sm:$0xf]  ;;  %v325_v6 = vld [vmem:[%s4844_s22 + $0x1c] sm:$0x1] }
  0x14   : > { %v4133_v7 = vcombine.low %v318_v2, %v319_v4  ;;  %v4136_v8 = vcombine.low %v324_v5, %v325_v6  ;;  %v320_v9 = vld [vmem:[%s4844_s22 + $0x8] sm:$0xf]  ;;  %v321_v10 = vld [vmem:[%s4844_s22 + $0xc] sm:$0x1]  ;;  %v4857_v16 = vld [vmem:[%s4844_s22 + $0x20] sm:$0xf] }
  0x15   : > { %v328_v11 = vld [vmem:[%s4844_s22 + $0x28] sm:$0xf]  ;;  %v815_v12 = vshrl.u32 %v4135_v3, 16  ;;  %v817_v13 = vshll.u32 %v4135_v3, 16  ;;  %v4134_v14 = vcombine.low %v320_v9, %v321_v10  ;;  %v329_v15 = vld [vmem:[%s4844_s22 + $0x2c] sm:$0x1] }
  0x16   : > { %v801_v17 = vshrl.u32 %v4133_v7, 16  ;;  %v803_v18 = vshll.u32 %v4133_v7, 16  ;;  %v822_v19 = vshrl.u32 %v4136_v8, 16  ;;  %v824_v20 = vshll.u32 %v4136_v8, 16  ;;  %v327_v21 = vld [vmem:[%s4844_s22 + $0x24] sm:$0x1] }
  0x17   : > { %v819_v22 = vrot.slane %v817_v13, 1  ;;  %v808_v23 = vshrl.u32 %v4134_v14, 16  ;;  %v810_v24 = vshll.u32 %v4134_v14, 16  ;;  %v4138_v25 = vcombine.low %v328_v11, %v329_v15  ;;  %v332_v26 = vld [vmem:[%s4844_s22 + $0x38] sm:$0xf]  ;;  %s4339_s29 = sshll.u32 %s9198_s15, 9 }
  0x18   : > { %v805_v27 = vrot.slane %v803_v18, 1  ;;  %v826_v28 = vrot.slane %v824_v20, 1  ;;  %v4137_v29 = vcombine.low %v4857_v16, %v327_v21  ;;  %v333_v30 = vld [vmem:[%s4844_s22 + $0x3c] sm:$0x1]  ;;  %v4864_v31 = vld [vmem:[%s4844_s22 + $0x30] sm:$0xf]  ;;  %s7789_s7 = scalar_lea.vmem %s8209_s4, %s4339_s29 }
  0x19   : > { %v4866_v32 = vor.u32 %v819_v22, %v815_v12  ;;  %v812_v33 = vrot.slane %v810_v24, 1  ;;  %v838_v34 = vshll.u32 %v4138_v25, 16  ;;  %v331_v35 = vld [vmem:[%s4844_s22 + $0x34] sm:$0x1]  ;;  %v836_v38 = vshrl.u32 %v4138_v25, 16 }
  0x1a   : > { %v806_v36 = vor.u32 %v805_v27, %v801_v17  ;;  %v4869_v37 = vor.u32 %v826_v28, %v822_v19  ;;  %v831_v39 = vshll.u32 %v4137_v29, 16  ;;  %v4872_v40 = vld [vmem:[%s4844_s22 + $0x50] sm:$0xf]  ;;  %v339_v41 = vld [vmem:[%s4844_s22 + $0x54] sm:$0x1]  ;;  %v829_v43 = vshrl.u32 %v4137_v29, 16 }
  0x1b   : > { %8393 = vst [vmem:[#allocation2_spill] sm:$0xff] %v4866_v32  ;;  %1252 = vrot.lane.b32.xlu1 %v4866_v32, %s4786_s23  ;;  %v840_v42 = vrot.slane %v838_v34, 1  ;;  %v4140_v44 = vcombine.low %v332_v26, %v333_v30  ;;  %v4139_v45 = vcombine.low %v4864_v31, %v331_v35  ;;  %v336_v46 = vld [vmem:[%s4844_s22 + $0x48] sm:$0xf]  ;;  %v337_v47 = vld [vmem:[%s4844_s22 + $0x4c] sm:$0x1]  ;;  %v4881_v48 = vor.u32 %v812_v33, %v808_v23 }
  0x1c   : > { %8394 = vst [vmem:[#allocation3_spill] sm:$0xff] %v4869_v37  ;;  %1248 = vrot.lane.b32.xlu0 %v806_v36, %s4786_s23  ;;  %v833_v49 = vrot.slane %v831_v39, 1  ;;  %v4142_v50 = vcombine.low %v4872_v40, %v339_v41  ;;  %v4141_v51 = vcombine.low %v336_v46, %v337_v47  ;;  %v4885_v52 = vld [vmem:[%s4844_s22 + $0x60] sm:$0xf]  ;;  %v343_v53 = vld [vmem:[%s4844_s22 + $0x64] sm:$0x1] }
  0x1d   : > { %8395 = vst [vmem:[#allocation4_spill] sm:$0xff] %v4881_v48  ;;  %v852_v54 = vshll.u32 %v4140_v44, 16  ;;  %v4889_v55 = vld [vmem:[%s4844_s22 + $0x58] sm:$0xf]  ;;  %v4891_v56 = vor.u32 %v840_v42, %v836_v38  ;;  %v850_v57 = vshrl.u32 %v4140_v44, 16  ;;  %v845_v58 = vshll.u32 %v4139_v45, 16 }
  0x1e   : > { %v341_v59 = vld [vmem:[%s4844_s22 + $0x5c] sm:$0x1]  ;;  %v843_v61 = vshrl.u32 %v4139_v45, 16  ;;  %v866_v62 = vshll.u32 %v4142_v50, 16  ;;  %v4144_v63 = vcombine.low %v4885_v52, %v343_v53  ;;  %v4899_v0 = vor.u32 %v833_v49, %v829_v43  ;;  %v4903_v4 = vld [vmem:[%s4844_s22 + $0x70] sm:$0xf] }
  0x1f   : > { %8396 = vst [vmem:[#allocation5_spill] sm:$0xff] %v4891_v56  ;;  %1254 = vrot.lane.b32.xlu1 %v4869_v37, %s4786_s23  ;;  %v854_v60 = vrot.slane %v852_v54, 1  ;;  %v847_v1 = vrot.slane %v845_v58, 1  ;;  %v859_v2 = vshll.u32 %v4141_v51, 16  ;;  %v4143_v3 = vcombine.low %v4889_v55, %v341_v59  ;;  %v347_v5 = vld [vmem:[%s4844_s22 + $0x74] sm:$0x1] }
  0x20   : > { %1250 = vrot.lane.b32.xlu0 %v4881_v48, %s4786_s23  ;;  %8397 = vst [vmem:[#allocation6_spill] sm:$0xff] %v4899_v0  ;;  %v4907_v6 = vld [vmem:[%s4844_s22 + $0x68] sm:$0xf]  ;;  %v345_v7 = vld [vmem:[%s4844_s22 + $0x6c] sm:$0x1]  ;;  %v864_v8 = vshrl.u32 %v4142_v50, 16  ;;  %v4146_v13 = vcombine.low %v4903_v4, %v347_v5 }
  0x21   : > { %v880_v9 = vshll.u32 %v4144_v63, 16  ;;  %v4912_v10 = vor.u32 %v854_v60, %v850_v57  ;;  %v868_v11 = vrot.slane %v866_v62, 1  ;;  %v857_v12 = vshrl.u32 %v4141_v51, 16  ;;  %v4921_v19 = vld [vmem:[%s4844_s22 + $0x80] sm:$0xf] }
  0x22   : > { %v4917_v14 = vor.u32 %v847_v1, %v843_v61  ;;  %v861_v15 = vrot.slane %v859_v2, 1  ;;  %v873_v17 = vshll.u32 %v4143_v3, 16  ;;  %v4145_v18 = vcombine.low %v4907_v6, %v345_v7  ;;  %v351_v20 = vld [vmem:[%s4844_s22 + $0x84] sm:$0x1]  ;;  %v4925_v21 = vld [vmem:[%s4844_s22 + $0x78] sm:$0xf] }
  0x23   : > { %1258 = vrot.lane.b32.xlu1 %v4891_v56, %s4786_s23  ;;  %8398 = vst [vmem:[#allocation7_spill] sm:$0xff] %v4912_v10  ;;  %v349_v22 = vld [vmem:[%s4844_s22 + $0x7c] sm:$0x1]  ;;  %v878_v23 = vshrl.u32 %v4144_v63, 16  ;;  %v882_v24 = vrot.slane %v880_v9, 1  ;;  %v4930_v25 = vor.u32 %v868_v11, %v864_v8  ;;  %v871_v26 = vshrl.u32 %v4143_v3, 16 }
  0x24   : > { %1256 = vrot.lane.b32.xlu0 %v4899_v0, %s4786_s23  ;;  %8399 = vst [vmem:[#allocation8_spill] sm:$0xff] %v4917_v14  ;;  %v894_v27 = vshll.u32 %v4146_v13, 16  ;;  %v4148_v28 = vcombine.low %v4921_v19, %v351_v20  ;;  %v4934_v29 = vld [vmem:[%s4844_s22 + $0x98] sm:$0xf]  ;;  %v357_v30 = vld [vmem:[%s4844_s22 + $0x9c] sm:$0x1]  ;;  %v4939_v33 = vor.u32 %v861_v15, %v857_v12  ;;  %v4147_v36 = vcombine.low %v4925_v21, %v349_v22 }
  0x25   : > { %8400 = vst [vmem:[#allocation9_spill] sm:$0xff] %v4930_v25  ;;  %v875_v34 = vrot.slane %v873_v17, 1  ;;  %v887_v35 = vshll.u32 %v4145_v18, 16  ;;  %v354_v38 = vld [vmem:[%s4844_s22 + $0x90] sm:$0xf]  ;;  %v4944_v41 = vor.u32 %v882_v24, %v878_v23  ;;  %v4150_v42 = vcombine.low %v4934_v29, %v357_v30 }
  0x26   : > { %8401 = vst [vmem:[#allocation10_spill] sm:$0xff] %v4939_v33  ;;  %v355_v39 = vld [vmem:[%s4844_s22 + $0x94] sm:$0x1]  ;;  %v892_v43 = vshrl.u32 %v4146_v13, 16  ;;  %v896_v44 = vrot.slane %v894_v27, 1  ;;  %v885_v45 = vshrl.u32 %v4145_v18, 16 }
  0x27   : > { %1262 = vrot.lane.b32.xlu1 %v4912_v10, %s4786_s23  ;;  %8402 = vst [vmem:[#allocation11_spill] sm:$0xff] %v4944_v41  ;;  %v908_v46 = vshll.u32 %v4148_v28, 16  ;;  %v4951_v47 = vor.u32 %v875_v34, %v871_v26  ;;  %v889_v49 = vrot.slane %v887_v35, 1  ;;  %v901_v50 = vshll.u32 %v4147_v36, 16  ;;  %v4954_v53 = vld [vmem:[%s4844_s22 + $0xa8] sm:$0xf] }
  0x28   : > { %1260 = vrot.lane.b32.xlu0 %v4917_v14, %s4786_s23  ;;  %v4149_v51 = vcombine.low %v354_v38, %v355_v39  ;;  %v361_v54 = vld [vmem:[%s4844_s22 + $0xac] sm:$0x1]  ;;  %v4958_v57 = vld [vmem:[%s4844_s22 + $0xa0] sm:$0xf]  ;;  %v359_v58 = vld [vmem:[%s4844_s22 + $0xa4] sm:$0x1]  ;;  %v4963_v61 = vor.u32 %v896_v44, %v892_v43 }
  0x29   : > { %8403 = vst [vmem:[#allocation12_spill] sm:$0xff] %v4951_v47  ;;  %v906_v59 = vshrl.u32 %v4148_v28, 16  ;;  %v922_v60 = vshll.u32 %v4150_v42, 16  ;;  %v910_v62 = vrot.slane %v908_v46, 1  ;;  %v899_v63 = vshrl.u32 %v4147_v36, 16 }
  0x2a   : > { %8404 = vst [vmem:[#allocation13_spill] sm:$0xff] %v4963_v61  ;;  %v4152_v1 = vcombine.low %v4954_v53, %v361_v54  ;;  %v4968_v2 = vor.u32 %v889_v49, %v885_v45  ;;  %v903_v3 = vrot.slane %v901_v50, 1  ;;  %v915_v5 = vshll.u32 %v4149_v51, 16  ;;  %v4972_v8 = vld [vmem:[%s4844_s22 + $0xb8] sm:$0xf] }
  0x2b   : > { %1266 = vrot.lane.b32.xlu1 %v4930_v25, %s4786_s23  ;;  %v4151_v7 = vcombine.low %v4958_v57, %v359_v58  ;;  %v365_v9 = vld [vmem:[%s4844_s22 + $0xbc] sm:$0x1]  ;;  %v4976_v11 = vld [vmem:[%s4844_s22 + $0xb0] sm:$0xf]  ;;  %v363_v12 = vld [vmem:[%s4844_s22 + $0xb4] sm:$0x1]  ;;  %v4981_v17 = vor.u32 %v910_v62, %v906_v59 }
  0x2c   : > { %1264 = vrot.lane.b32.xlu0 %v4939_v33, %s4786_s23  ;;  %8405 = vst [vmem:[#allocation14_spill] sm:$0xff] %v4968_v2  ;;  %v920_v13 = vshrl.u32 %v4150_v42, 16  ;;  %v924_v15 = vrot.slane %v922_v60, 1  ;;  %v913_v18 = vshrl.u32 %v4149_v51, 16  ;;  %v936_v20 = vshll.u32 %v4152_v1, 16 }
  0x2d   : > { %8406 = vst [vmem:[#allocation15_spill] sm:$0xff] %v4981_v17  ;;  %v4154_v22 = vcombine.low %v4972_v8, %v365_v9  ;;  %v4985_v23 = vld [vmem:[%s4844_s22 + $0xc8] sm:$0xf]  ;;  %v369_v24 = vld [vmem:[%s4844_s22 + $0xcc] sm:$0x1]  ;;  %v4990_v26 = vor.u32 %v903_v3, %v899_v63  ;;  %v917_v27 = vrot.slane %v915_v5, 1  ;;  %v4153_v30 = vcombine.low %v4976_v11, %v363_v12 }
  0x2e   : > { %v929_v28 = vshll.u32 %v4151_v7, 16  ;;  %v4994_v34 = vld [vmem:[%s4844_s22 + $0xc0] sm:$0xf]  ;;  %v367_v35 = vld [vmem:[%s4844_s22 + $0xc4] sm:$0x1]  ;;  %v4997_v36 = vor.u32 %v924_v15, %v920_v13  ;;  %v4156_v38 = vcombine.low %v4985_v23, %v369_v24  ;;  %v934_v39 = vshrl.u32 %v4152_v1, 16 }
  0x2f   : > { %1270 = vrot.lane.b32.xlu1 %v4944_v41, %s4786_s23  ;;  %8407 = vst [vmem:[#allocation16_spill] sm:$0xff] %v4990_v26  ;;  %v938_v42 = vrot.slane %v936_v20, 1  ;;  %v927_v43 = vshrl.u32 %v4151_v7, 16  ;;  %v950_v44 = vshll.u32 %v4154_v22, 16  ;;  %v5004_v45 = vor.u32 %v917_v27, %v913_v18  ;;  %v5008_v51 = vld [vmem:[%s4844_s22 + $0xe0] sm:$0xf] }
  0x30   : > { %1268 = vrot.lane.b32.xlu0 %v4951_v47, %s4786_s23  ;;  %8408 = vst [vmem:[#allocation17_spill] sm:$0xff] %v4997_v36  ;;  %v931_v46 = vrot.slane %v929_v28, 1  ;;  %v943_v49 = vshll.u32 %v4153_v30, 16  ;;  %v4155_v50 = vcombine.low %v4994_v34, %v367_v35  ;;  %v375_v54 = vld [vmem:[%s4844_s22 + $0xe4] sm:$0x1]  ;;  %v948_v60 = vshrl.u32 %v4154_v22, 16 }
  0x31   : > { %8409 = vst [vmem:[#allocation18_spill] sm:$0xff] %v5004_v45  ;;  %v372_v58 = vld [vmem:[%s4844_s22 + $0xd8] sm:$0xf]  ;;  %v373_v59 = vld [vmem:[%s4844_s22 + $0xdc] sm:$0x1]  ;;  %v964_v62 = vshll.u32 %v4156_v38, 16  ;;  %v5015_v63 = vor.u32 %v938_v42, %v934_v39  ;;  %v4158_v5 = vcombine.low %v5008_v51, %v375_v54 }
  0x32   : > { %v952_v1 = vrot.slane %v950_v44, 1  ;;  %v941_v3 = vshrl.u32 %v4153_v30, 16  ;;  %v5020_v7 = vor.u32 %v931_v46, %v927_v43  ;;  %v945_v9 = vrot.slane %v943_v49, 1  ;;  %v5023_v15 = vld [vmem:[%s4844_s22 + $0xf0] sm:$0xf] }
  0x33   : > { %1274 = vrot.lane.b32.xlu1 %v4963_v61, %s4786_s23  ;;  %8410 = vst [vmem:[#allocation19_spill] sm:$0xff] %v5015_v63  ;;  %v957_v12 = vshll.u32 %v4155_v50, 16  ;;  %v4157_v13 = vcombine.low %v372_v58, %v373_v59  ;;  %v379_v18 = vld [vmem:[%s4844_s22 + $0xf4] sm:$0x1]  ;;  %v5027_v20 = vld [vmem:[%s4844_s22 + $0xe8] sm:$0xf] }
  0x34   : > { %1272 = vrot.lane.b32.xlu0 %v4968_v2, %s4786_s23  ;;  %8411 = vst [vmem:[#allocation20_spill] sm:$0xff] %v5020_v7  ;;  %v377_v22 = vld [vmem:[%s4844_s22 + $0xec] sm:$0x1]  ;;  %v962_v24 = vshrl.u32 %v4156_v38, 16  ;;  %v966_v27 = vrot.slane %v964_v62, 1  ;;  %v5032_v28 = vor.u32 %v952_v1, %v948_v60  ;;  %v955_v30 = vshrl.u32 %v4155_v50, 16 }
  0x35   : > { %v978_v35 = vshll.u32 %v4158_v5, 16  ;;  %v4160_v39 = vcombine.low %v5023_v15, %v379_v18  ;;  %v5036_v42 = vld [vmem:[%s4844_s22 + $0x100] sm:$0xf]  ;;  %v383_v43 = vld [vmem:[%s4844_s22 + $0x104] sm:$0x1]  ;;  %v5041_v44 = vor.u32 %v945_v9, %v941_v3  ;;  %v959_v46 = vrot.slane %v957_v12, 1 }
  0x36   : > { %8412 = vst [vmem:[#allocation21_spill] sm:$0xff] %v5032_v28  ;;  %v971_v38 = vshll.u32 %v4157_v13, 16  ;;  %v4159_v49 = vcombine.low %v5027_v20, %v377_v22  ;;  %v5045_v54 = vld [vmem:[%s4844_s22 + $0xf8] sm:$0xf]  ;;  %v381_v50 = vld [vmem:[%s4844_s22 + $0xfc] sm:$0x1]  ;;  %v5048_v58 = vor.u32 %v966_v27, %v962_v24  ;;  %v4162_v59 = vcombine.low %v5036_v42, %v383_v43 }
  0x37   : > { %1278 = vrot.lane.b32.xlu1 %v4981_v17, %s4786_s23  ;;  %8413 = vst [vmem:[#allocation22_spill] sm:$0xff] %v5041_v44  ;;  %v976_v60 = vshrl.u32 %v4158_v5, 16  ;;  %v980_v62 = vrot.slane %v978_v35, 1  ;;  %v969_v1 = vshrl.u32 %v4157_v13, 16  ;;  %v992_v3 = vshll.u32 %v4160_v39, 16 }
  0x38   : > { %1276 = vrot.lane.b32.xlu0 %v4990_v26, %s4786_s23  ;;  %8414 = vst [vmem:[#allocation23_spill] sm:$0xff] %v5048_v58  ;;  %v5055_v9 = vor.u32 %v959_v46, %v955_v30  ;;  %v973_v12 = vrot.slane %v971_v38, 1  ;;  %v985_v18 = vshll.u32 %v4159_v49, 16  ;;  %v4161_v22 = vcombine.low %v5045_v54, %v381_v50  ;;  %v5059_v24 = vld [vmem:[%s4844_s22 + $0x110] sm:$0xf] }
  0x39   : > { %v387_v27 = vld [vmem:[%s4844_s22 + $0x114] sm:$0x1]  ;;  %v5063_v43 = vld [vmem:[%s4844_s22 + $0x108] sm:$0xf]  ;;  %v385_v5 = vld [vmem:[%s4844_s22 + $0x10c] sm:$0x1]  ;;  %v5068_v30 = vor.u32 %v980_v62, %v976_v60 }
  0x3a   : > { %8415 = vst [vmem:[#allocation24_spill] sm:$0xff] %v5055_v9  ;;  %v990_v13 = vshrl.u32 %v4160_v39, 16  ;;  %v1006_v35 = vshll.u32 %v4162_v59, 16  ;;  %v994_v46 = vrot.slane %v992_v3, 1  ;;  %v983_v38 = vshrl.u32 %v4159_v49, 16 }
  0x3b   : > { %1282 = vrot.lane.b32.xlu1 %v4997_v36, %s4786_s23  ;;  %8416 = vst [vmem:[#allocation25_spill] sm:$0xff] %v5068_v30  ;;  %v4164_v50 = vcombine.low %v5059_v24, %v387_v27  ;;  %v987_v33 = vrot.slane %v985_v18, 1  ;;  %v4163_v39 = vcombine.low %v5063_v43, %v385_v5  ;;  %v390_v60 = vld [vmem:[%s4844_s22 + $0x120] sm:$0xf]  ;;  %v391_v62 = vld [vmem:[%s4844_s22 + $0x124] sm:$0x1] }
  0x3c   : > { %1280 = vrot.lane.b32.xlu0 %v5004_v45, %s4786_s23  ;;  %v5073_v45 = vor.u32 %v973_v12, %v969_v1  ;;  %v1004_v49 = vshrl.u32 %v4162_v59, 16  ;;  %v1008_v3 = vrot.slane %v1006_v35, 1  ;;  %v5084_v27 = vor.u32 %v994_v46, %v990_v13  ;;  %v397_v5 = vld [vmem:[%s4844_s22 + $0x13c] sm:$0x1]  ;;  %v5128_v61 = vld [vmem:[%s4844_s22 + $0x158] sm:$0xf] }
  0x3d   : > { %v997_v1 = vshrl.u32 %v4161_v22, 16  ;;  %v1020_v12 = vshll.u32 %v4164_v50, 16  ;;  %v1013_v59 = vshll.u32 %v4163_v39, 16  ;;  %v4165_v35 = vcombine.low %v390_v60, %v391_v62  ;;  %v5161_v47 = vld [vmem:[%s4844_s22 + $0x180] sm:$0xf] }
  0x3e   : > { %8417 = vst [vmem:[#allocation26_spill] sm:$0xff] %v5073_v45  ;;  %8418 = vst [vmem:[#allocation27_spill] sm:$0xff] %v5084_v27  ;;  %v5099_v13 = vor.u32 %v1008_v3, %v1004_v49  ;;  %v1018_v46 = vshrl.u32 %v4164_v50, 16  ;;  %v5110_v49 = vld [vmem:[%s4844_s22 + $0x148] sm:$0xf] }
  0x3f   : > { %1286 = vrot.lane.b32.xlu1 %v5015_v63, %s4786_s23  ;;  %v5077_v63 = vld [vmem:[%s4844_s22 + $0x128] sm:$0xf]  ;;  %v1015_v62 = vrot.slane %v1013_v59, 1  ;;  %v401_v3 = vld [vmem:[%s4844_s22 + $0x14c] sm:$0x1]  ;;  %v1025_v59 = vshrl.u32 %v4165_v35, 16 }
  0x40   : > { %1284 = vrot.lane.b32.xlu0 %v5020_v7, %s4786_s23  ;;  %8420 = vst [vmem:[#allocation29_spill] sm:$0xff] %v5099_v13  ;;  %v399_v50 = vld [vmem:[%s4844_s22 + $0x144] sm:$0x1]  ;;  %v5230_v48 = vld [vmem:[%s4844_s22 + $0x1c8] sm:$0xf] }
  0x41   : > { %8437 = vst [vmem:[#allocation46_spill] sm:$0xff] %v5230_v48  ;;  %v433_v32 = vld [vmem:[%s4844_s22 + $0x1cc] sm:$0x1] }
  0x43   : > { %1290 = vrot.lane.b32.xlu1 %v5032_v28, %s4786_s23  ;;  %v999_v28 = vshll.u32 %v4161_v22, 16  ;;  %v395_v22 = vld [vmem:[%s4844_s22 + $0x134] sm:$0x1] }
  0x44   : > { %1288 = vrot.lane.b32.xlu0 %v5041_v44, %s4786_s23  ;;  %v5093_v44 = vor.u32 %v987_v33, %v983_v38  ;;  %v1022_v33 = vrot.slane %v1020_v12, 1  ;;  %v1011_v38 = vshrl.u32 %v4163_v39, 16 }
  0x45   : > { %v1001_v36 = vrot.slane %v999_v28, 1 }
  0x46   : > { %8419 = vst [vmem:[#allocation28_spill] sm:$0xff] %v5093_v44 }
  0x47   : > { %1294 = vrot.lane.b32.xlu1 %v5048_v58, %s4786_s23  ;;  %v393_v58 = vld [vmem:[%s4844_s22 + $0x12c] sm:$0x1]  ;;  %v5106_v60 = vor.u32 %v1001_v36, %v997_v1  ;;  %v5119_v36 = vor.u32 %v1022_v33, %v1018_v46  ;;  %v5132_v46 = vld [vmem:[%s4844_s22 + $0x150] sm:$0xf] }
  0x48   : > { %1292 = vrot.lane.b32.xlu0 %v5055_v9, %s4786_s23  ;;  %v4166_v18 = vcombine.low %v5077_v63, %v393_v58  ;;  %v5088_v9 = vld [vmem:[%s4844_s22 + $0x138] sm:$0xf] }
  0x49   : > { %v4168_v58 = vcombine.low %v5088_v9, %v397_v5  ;;  %8421 = vst [vmem:[#allocation30_spill] sm:$0xff] %v5106_v60  ;;  %v5114_v5 = vld [vmem:[%s4844_s22 + $0x140] sm:$0xf]  ;;  %8422 = vst [vmem:[#allocation31_spill] sm:$0xff] %v5119_v36 }
  0x4a   : > { %v1034_v28 = vshll.u32 %v4166_v18, 16  ;;  %v1032_v39 = vshrl.u32 %v4166_v18, 16  ;;  %v4169_v18 = vcombine.low %v5114_v5, %v399_v50  ;;  %v5141_v50 = vld [vmem:[%s4844_s22 + $0x170] sm:$0xf] }
  0x4b   : > { %1298 = vrot.lane.b32.xlu1 %v5068_v30, %s4786_s23  ;;  %v5096_v30 = vld [vmem:[%s4844_s22 + $0x130] sm:$0xf]  ;;  %v1048_v12 = vshll.u32 %v4168_v58, 16  ;;  %v1046_v33 = vshrl.u32 %v4168_v58, 16 }
  0x4c   : > { %1296 = vrot.lane.b32.xlu0 %v5073_v45, %s4786_s23  ;;  %v1027_v45 = vshll.u32 %v4165_v35, 16  ;;  %v4167_v7 = vcombine.low %v5096_v30, %v395_v22  ;;  %v1036_v1 = vrot.slane %v1034_v28, 1  ;;  %v4170_v22 = vcombine.low %v5110_v49, %v401_v3  ;;  %v403_v35 = vld [vmem:[%s4844_s22 + $0x154] sm:$0x1] }
  0x4d   : > { %v1050_v28 = vrot.slane %v1048_v12, 1  ;;  %v1055_v58 = vshll.u32 %v4169_v18, 16  ;;  %v4171_v12 = vcombine.low %v5132_v46, %v403_v35 }
  0x4e   : > { %v1041_v17 = vshll.u32 %v4167_v7, 16 }
  0x4f   : > { %1302 = vrot.lane.b32.xlu1 %v5084_v27, %s4786_s23  ;;  %v5124_v27 = vor.u32 %v1015_v62, %v1011_v38  ;;  %v5137_v38 = vor.u32 %v1036_v1, %v1032_v39  ;;  %v1039_v62 = vshrl.u32 %v4167_v7, 16  ;;  %v408_v39 = vld [vmem:[%s4844_s22 + $0x168] sm:$0xf]  ;;  %v409_v7 = vld [vmem:[%s4844_s22 + $0x16c] sm:$0x1]  ;;  %v5151_v1 = vor.u32 %v1050_v28, %v1046_v33 }
  0x50   : > { %1300 = vrot.lane.b32.xlu0 %v5093_v44, %s4786_s23  ;;  %v1029_v44 = vrot.slane %v1027_v45, 1  ;;  %v1062_v45 = vshll.u32 %v4170_v22, 16  ;;  %v1043_v41 = vrot.slane %v1041_v17, 1  ;;  %v1069_v2 = vshll.u32 %v4171_v12, 16  ;;  %v415_v33 = vld [vmem:[%s4844_s22 + $0x184] sm:$0x1] }
  0x51   : > { %8423 = vst [vmem:[#allocation32_spill] sm:$0xff] %v5124_v27  ;;  %8424 = vst [vmem:[#allocation33_spill] sm:$0xff] %v5137_v38  ;;  %v4173_v25 = vcombine.low %v408_v39, %v409_v7 }
  0x52   : > { %v5146_v26 = vor.u32 %v1029_v44, %v1025_v59  ;;  %8426 = vst [vmem:[#allocation35_spill] sm:$0xff] %v5151_v1  ;;  %v1064_v44 = vrot.slane %v1062_v45, 1  ;;  %v1053_v59 = vshrl.u32 %v4169_v18, 16  ;;  %v5158_v35 = vor.u32 %v1043_v41, %v1039_v62 }
  0x53   : > { %1306 = vrot.lane.b32.xlu1 %v5099_v13, %s4786_s23  ;;  %v405_v13 = vld [vmem:[%s4844_s22 + $0x15c] sm:$0x1]  ;;  %v1067_v45 = vshrl.u32 %v4171_v12, 16  ;;  %v1071_v7 = vrot.slane %v1069_v2, 1  ;;  %v417_v12 = vld [vmem:[%s4844_s22 + $0x18c] sm:$0x1] }
  0x54   : > { %1304 = vrot.lane.b32.xlu0 %v5106_v60, %s4786_s23  ;;  %v4172_v3 = vcombine.low %v5128_v61, %v405_v13  ;;  %v411_v60 = vld [vmem:[%s4844_s22 + $0x174] sm:$0x1]  ;;  %8425 = vst [vmem:[#allocation34_spill] sm:$0xff] %v5146_v26  ;;  %8427 = vst [vmem:[#allocation36_spill] sm:$0xff] %v5158_v35 }
  0x55   : > { %v4174_v13 = vcombine.low %v5141_v50, %v411_v60  ;;  %v5165_v60 = vld [vmem:[%s4844_s22 + $0x178] sm:$0xf]  ;;  %v5197_v10 = vor.u32 %v1071_v7, %v1067_v45 }
  0x56   : > { %v1076_v17 = vshll.u32 %v4172_v3, 16  ;;  %v1074_v18 = vshrl.u32 %v4172_v3, 16 }
  0x57   : > { %1310 = vrot.lane.b32.xlu1 %v5119_v36, %s4786_s23  ;;  %v1060_v36 = vshrl.u32 %v4170_v22, 16  ;;  %v413_v22 = vld [vmem:[%s4844_s22 + $0x17c] sm:$0x1]  ;;  %v1090_v28 = vshll.u32 %v4174_v13, 16  ;;  %8431 = vst [vmem:[#allocation40_spill] sm:$0xff] %v5197_v10 }
  0x58   : > { %1308 = vrot.lane.b32.xlu0 %v5124_v27, %s4786_s23  ;;  %v1057_v27 = vrot.slane %v1055_v58, 1  ;;  %v1078_v62 = vrot.slane %v1076_v17, 1  ;;  %v4176_v58 = vcombine.low %v5161_v47, %v415_v33  ;;  %v4175_v3 = vcombine.low %v5165_v60, %v413_v22  ;;  %v5192_v22 = vld [vmem:[%s4844_s22 + $0x1a0] sm:$0xf] }
  0x59   : > { %v5170_v41 = vor.u32 %v1064_v44, %v1060_v36  ;;  %v5183_v36 = vld [vmem:[%s4844_s22 + $0x188] sm:$0xf]  ;;  %v1088_v44 = vshrl.u32 %v4174_v13, 16  ;;  %v1092_v17 = vrot.slane %v1090_v28, 1 }
  0x5a   : > { %v5175_v39 = vor.u32 %v1057_v27, %v1053_v59  ;;  %v5188_v27 = vor.u32 %v1078_v62, %v1074_v18  ;;  %v1081_v59 = vshrl.u32 %v4173_v25, 16  ;;  %v1104_v2 = vshll.u32 %v4176_v58, 16  ;;  %v5201_v18 = vld [vmem:[%s4844_s22 + $0x198] sm:$0xf] }
  0x5b   : > { %1314 = vrot.lane.b32.xlu1 %v5137_v38, %s4786_s23  ;;  %8428 = vst [vmem:[#allocation37_spill] sm:$0xff] %v5170_v41  ;;  %v5179_v38 = vld [vmem:[%s4844_s22 + $0x190] sm:$0xf]  ;;  %v1097_v13 = vshll.u32 %v4175_v3, 16  ;;  %v4177_v28 = vcombine.low %v5183_v36, %v417_v12  ;;  %v1102_v45 = vshrl.u32 %v4176_v58, 16 }
  0x5c   : > { %1312 = vrot.lane.b32.xlu0 %v5146_v26, %s4786_s23  ;;  %8429 = vst [vmem:[#allocation38_spill] sm:$0xff] %v5175_v39  ;;  %v1083_v26 = vshll.u32 %v4173_v25, 16  ;;  %8430 = vst [vmem:[#allocation39_spill] sm:$0xff] %v5188_v27  ;;  %v421_v25 = vld [vmem:[%s4844_s22 + $0x19c] sm:$0x1]  ;;  %v1106_v7 = vrot.slane %v1104_v2, 1 }
  0x5d   : > { %v1111_v14 = vshll.u32 %v4177_v28, 16  ;;  %v4179_v37 = vcombine.low %v5201_v18, %v421_v25  ;;  %v427_v58 = vld [vmem:[%s4844_s22 + $0x1b4] sm:$0x1] }
  0x5e   : > { %v1085_v56 = vrot.slane %v1083_v26, 1  ;;  %v1095_v26 = vshrl.u32 %v4175_v3, 16 }
  0x5f   : > { %1318 = vrot.lane.b32.xlu1 %v5151_v1, %s4786_s23  ;;  %v419_v1 = vld [vmem:[%s4844_s22 + $0x194] sm:$0x1]  ;;  %v1125_v0 = vshll.u32 %v4179_v37, 16 }
  0x60   : > { %1316 = vrot.lane.b32.xlu0 %v5158_v35, %s4786_s23  ;;  %v4178_v33 = vcombine.low %v5179_v38, %v419_v1  ;;  %v423_v35 = vld [vmem:[%s4844_s22 + $0x1a4] sm:$0x1]  ;;  %v5204_v1 = vor.u32 %v1092_v17, %v1088_v44  ;;  %v5211_v12 = vor.u32 %v1085_v56, %v1081_v59  ;;  %v5215_v44 = vld [vmem:[%s4844_s22 + $0x1b8] sm:$0xf]  ;;  %v426_v17 = vld [vmem:[%s4844_s22 + $0x1b0] sm:$0xf]  ;;  %v5222_v56 = vor.u32 %v1106_v7, %v1102_v45 }
  0x61   : > { %v4180_v62 = vcombine.low %v5192_v22, %v423_v35  ;;  %8434 = vst [vmem:[#allocation43_spill] sm:$0xff] %v5215_v44  ;;  %v429_v35 = vld [vmem:[%s4844_s22 + $0x1bc] sm:$0x1] }
  0x62   : > { %8432 = vst [vmem:[#allocation41_spill] sm:$0xff] %v5204_v1  ;;  %8433 = vst [vmem:[#allocation42_spill] sm:$0xff] %v5211_v12  ;;  %v1116_v3 = vshrl.u32 %v4178_v33, 16  ;;  %v4182_v25 = vcombine.low %v5215_v44, %v429_v35  ;;  %v5243_v35 = vld [vmem:[%s4844_s22 + $0x1d8] sm:$0xf] }
  0x63   : > { %1322 = vrot.lane.b32.xlu1 %v5170_v41, %s4786_s23  ;;  %v1118_v41 = vshll.u32 %v4178_v33, 16  ;;  %v1132_v2 = vshll.u32 %v4180_v62, 16  ;;  %8435 = vst [vmem:[#allocation44_spill] sm:$0xff] %v5222_v56  ;;  %v4181_v33 = vcombine.low %v426_v17, %v427_v58  ;;  %8440 = vst [vmem:[#allocation49_spill] sm:$0xff] %v5243_v35  ;;  %v437_v17 = vld [vmem:[%s4844_s22 + $0x1dc] sm:$0x1] }
  0x64   : > { %1320 = vrot.lane.b32.xlu0 %v5175_v39, %s4786_s23  ;;  %v1099_v39 = vrot.slane %v1097_v13, 1  ;;  %v1109_v13 = vshrl.u32 %v4177_v28, 16  ;;  %v1130_v28 = vshrl.u32 %v4180_v62, 16 }
  0x65   : > { %v1120_v59 = vrot.slane %v1118_v41, 1  ;;  %v431_v41 = vld [vmem:[%s4844_s22 + $0x1c4] sm:$0x1]  ;;  %v1134_v45 = vrot.slane %v1132_v2, 1  ;;  %v1139_v62 = vshll.u32 %v4181_v33, 16 }
  0x67   : > { %1326 = vrot.lane.b32.xlu1 %v5188_v27, %s4786_s23  ;;  %v5227_v27 = vor.u32 %v1099_v39, %v1095_v26  ;;  %v5239_v7 = vor.u32 %v1120_v59, %v1116_v3  ;;  %v1123_v39 = vshrl.u32 %v4179_v37, 16  ;;  %v1146_v26 = vshll.u32 %v4182_v25, 16  ;;  %v5252_v3 = vld [vmem:[%s4844_s22 + $0x1d0] sm:$0xf]  ;;  %v435_v37 = vld [vmem:[%s4844_s22 + $0x1d4] sm:$0x1] }
  0x68   : > { %1324 = vrot.lane.b32.xlu0 %v5197_v10, %s4786_s23  ;;  %v1113_v10 = vrot.slane %v1111_v14, 1  ;;  %v4184_v14 = vcombine.low %v5230_v48, %v433_v32  ;;  %8442 = vst [vmem:[#allocation51_spill] sm:$0xff] %v5252_v3  ;;  %v5255_v32 = vor.u32 %v1134_v45, %v1130_v28  ;;  %v4186_v59 = vcombine.low %v5243_v35, %v437_v17  ;;  %v5266_v45 = vld [vmem:[%s4844_s22 + $0x1e8] sm:$0xf]  ;;  %v441_v17 = vld [vmem:[%s4844_s22 + $0x1ec] sm:$0x1] }
  0x69   : > { %8436 = vst [vmem:[#allocation45_spill] sm:$0xff] %v5227_v27  ;;  %8439 = vst [vmem:[#allocation48_spill] sm:$0xff] %v5239_v7  ;;  %v4185_v28 = vcombine.low %v5252_v3, %v435_v37  ;;  %v5270_v35 = vld [vmem:[%s4844_s22 + $0x1e0] sm:$0xf] }
  0x6a   : > { %v5248_v58 = vor.u32 %v1113_v10, %v1109_v13  ;;  %8443 = vst [vmem:[#allocation52_spill] sm:$0xff] %v5255_v32  ;;  %v1144_v10 = vshrl.u32 %v4182_v25, 16  ;;  %v1148_v13 = vrot.slane %v1146_v26, 1  ;;  %8445 = vst [vmem:[#allocation54_spill] sm:$0xff] %v5266_v45  ;;  %v439_v25 = vld [vmem:[%s4844_s22 + $0x1e4] sm:$0x1] }
  0x6b   : > { %1330 = vrot.lane.b32.xlu1 %v5204_v1, %s4786_s23  ;;  %v5234_v1 = vld [vmem:[%s4844_s22 + $0x1c0] sm:$0xf]  ;;  %8446 = vst [vmem:[#allocation55_spill] sm:$0xff] %v5270_v35  ;;  %v1174_v26 = vshll.u32 %v4186_v59, 16 }
  0x6c   : > { %1328 = vrot.lane.b32.xlu0 %v5211_v12, %s4786_s23  ;;  %8438 = vst [vmem:[#allocation47_spill] sm:$0xff] %v5234_v1  ;;  %8441 = vst [vmem:[#allocation50_spill] sm:$0xff] %v5248_v58  ;;  %v1127_v12 = vrot.slane %v1125_v0, 1  ;;  %v4183_v2 = vcombine.low %v5234_v1, %v431_v41  ;;  %v1137_v0 = vshrl.u32 %v4181_v33, 16  ;;  %v1158_v33 = vshrl.u32 %v4184_v14, 16 }
  0x6d   : > { %v5279_v37 = vld [vmem:[%s4844_s22 + $0x200] sm:$0xf]  ;;  %v4187_v1 = vcombine.low %v5270_v35, %v439_v25  ;;  %v5299_v35 = vld [vmem:[%s4844_s22 + $0x210] sm:$0xf] }
  0x6e   : > { %v5262_v41 = vor.u32 %v1127_v12, %v1123_v39  ;;  %v1153_v48 = vshll.u32 %v4183_v2, 16  ;;  %v5275_v12 = vor.u32 %v1148_v13, %v1144_v10  ;;  %8448 = vst [vmem:[#allocation57_spill] sm:$0xff] %v5279_v37  ;;  %v444_v10 = vld [vmem:[%s4844_s22 + $0x1f8] sm:$0xf]  ;;  %v1176_v13 = vrot.slane %v1174_v26, 1  ;;  %8452 = vst [vmem:[#allocation61_spill] sm:$0xff] %v5299_v35 }
  0x6f   : > { %1334 = vrot.lane.b32.xlu1 %v5222_v56, %s4786_s23  ;;  %v1160_v56 = vshll.u32 %v4184_v14, 16  ;;  %v1167_v14 = vshll.u32 %v4185_v28, 16 }
  0x70   : > { %1332 = vrot.lane.b32.xlu0 %v5227_v27, %s4786_s23  ;;  %8444 = vst [vmem:[#allocation53_spill] sm:$0xff] %v5262_v41  ;;  %v1141_v27 = vrot.slane %v1139_v62, 1  ;;  %8447 = vst [vmem:[#allocation56_spill] sm:$0xff] %v5275_v12  ;;  %v1151_v62 = vshrl.u32 %v4183_v2, 16  ;;  %v1155_v44 = vrot.slane %v1153_v48, 1  ;;  %v1172_v2 = vshrl.u32 %v4186_v59, 16 }
  0x71   : > { %v1162_v39 = vrot.slane %v1160_v56, 1  ;;  %v445_v56 = vld [vmem:[%s4844_s22 + $0x1fc] sm:$0x1]  ;;  %v1169_v25 = vrot.slane %v1167_v14, 1  ;;  %v451_v59 = vld [vmem:[%s4844_s22 + $0x214] sm:$0x1] }
  0x72   : > { %v5284_v3 = vor.u32 %v1141_v27, %v1137_v0  ;;  %v1165_v27 = vshrl.u32 %v4185_v28, 16  ;;  %v5296_v0 = vor.u32 %v1155_v44, %v1151_v62  ;;  %v5306_v28 = vor.u32 %v1176_v13, %v1172_v2  ;;  %v5317_v2 = vld [vmem:[%s4844_s22 + $0x220] sm:$0xf]  ;;  %v455_v13 = vld [vmem:[%s4844_s22 + $0x224] sm:$0x1] }
  0x73   : > { %1338 = vrot.lane.b32.xlu1 %v5239_v7, %s4786_s23  ;;  %v4188_v7 = vcombine.low %v5266_v45, %v441_v17  ;;  %v4189_v45 = vcombine.low %v444_v10, %v445_v56  ;;  %v1179_v62 = vshrl.u32 %v4187_v1, 16  ;;  %v4192_v14 = vcombine.low %v5299_v35, %v451_v59  ;;  %8456 = vst [vmem:[#allocation65_spill] sm:$0xff] %v5317_v2 }
  0x74   : > { %1336 = vrot.lane.b32.xlu0 %v5248_v58, %s4786_s23  ;;  %v447_v58 = vld [vmem:[%s4844_s22 + $0x204] sm:$0x1]  ;;  %8449 = vst [vmem:[#allocation58_spill] sm:$0xff] %v5284_v3  ;;  %8451 = vst [vmem:[#allocation60_spill] sm:$0xff] %v5296_v0  ;;  %v5313_v10 = vor.u32 %v1169_v25, %v1165_v27  ;;  %v4194_v59 = vcombine.low %v5317_v2, %v455_v13 }
  0x75   : > { %v4190_v17 = vcombine.low %v5279_v37, %v447_v58  ;;  %v1188_v48 = vshll.u32 %v4188_v7, 16  ;;  %v5303_v58 = vld [vmem:[%s4844_s22 + $0x208] sm:$0xf]  ;;  %8454 = vst [vmem:[#allocation63_spill] sm:$0xff] %v5306_v28  ;;  %v1186_v44 = vshrl.u32 %v4188_v7, 16  ;;  %v1216_v25 = vshll.u32 %v4192_v14, 16 }
  0x76   : > { %8453 = vst [vmem:[#allocation62_spill] sm:$0xff] %v5303_v58  ;;  %8455 = vst [vmem:[#allocation64_spill] sm:$0xff] %v5313_v10 }
  0x77   : > { %1342 = vrot.lane.b32.xlu1 %v5255_v32, %s4786_s23  ;;  %v5292_v32 = vor.u32 %v1162_v39, %v1158_v33  ;;  %v449_v33 = vld [vmem:[%s4844_s22 + $0x20c] sm:$0x1]  ;;  %v1202_v26 = vshll.u32 %v4190_v17, 16  ;;  %v1190_v39 = vrot.slane %v1188_v48, 1  ;;  %v1200_v7 = vshrl.u32 %v4190_v17, 16 }
  0x78   : > { %1340 = vrot.lane.b32.xlu0 %v5262_v41, %s4786_s23  ;;  %v1181_v41 = vshll.u32 %v4187_v1, 16  ;;  %v453_v1 = vld [vmem:[%s4844_s22 + $0x21c] sm:$0x1]  ;;  %v5335_v17 = vld [vmem:[%s4844_s22 + $0x230] sm:$0xf]  ;;  %v1218_v13 = vrot.slane %v1216_v25, 1 }
  0x79   : > { %8450 = vst [vmem:[#allocation59_spill] sm:$0xff] %v5292_v32  ;;  %v1204_v48 = vrot.slane %v1202_v26, 1  ;;  %v5326_v27 = vor.u32 %v1190_v39, %v1186_v44  ;;  %v459_v26 = vld [vmem:[%s4844_s22 + $0x234] sm:$0x1]  ;;  %v457_v44 = vld [vmem:[%s4844_s22 + $0x22c] sm:$0x1] }
  0x7a   : > { %v1183_v56 = vrot.slane %v1181_v41, 1  ;;  %v1193_v41 = vshrl.u32 %v4189_v45, 16 }
  0x7b   : > { %1346 = vrot.lane.b32.xlu1 %v5275_v12, %s4786_s23  ;;  %v4191_v12 = vcombine.low %v5303_v58, %v449_v33  ;;  %8457 = vst [vmem:[#allocation66_spill] sm:$0xff] %v5326_v27  ;;  %v5339_v58 = vld [vmem:[%s4844_s22 + $0x228] sm:$0xf]  ;;  %v5342_v39 = vor.u32 %v1204_v48, %v1200_v7  ;;  %v1228_v7 = vshrl.u32 %v4194_v59, 16 }
  0x7c   : > { %1344 = vrot.lane.b32.xlu0 %v5284_v3, %s4786_s23  ;;  %v1195_v3 = vshll.u32 %v4189_v45, 16  ;;  %v5331_v33 = vor.u32 %v1183_v56, %v1179_v62  ;;  %v1214_v45 = vshrl.u32 %v4192_v14, 16  ;;  %v1230_v62 = vshll.u32 %v4194_v59, 16 }
  0x7d   : > { %v1209_v35 = vshll.u32 %v4191_v12, 16  ;;  %8458 = vst [vmem:[#allocation67_spill] sm:$0xff] %v5342_v39  ;;  %v4195_v2 = vcombine.low %v5339_v58, %v457_v44 }
  0x7e   : > { %v5354_v14 = vor.u32 %v1218_v13, %v1214_v45  ;;  %v1232_v48 = vrot.slane %v1230_v62, 1 }
  0x7f   : > { %1350 = vrot.lane.b32.xlu1 %v5292_v32, %s4786_s23  ;;  %v5321_v32 = vld [vmem:[%s4844_s22 + $0x218] sm:$0xf] }
  0x80   : > { %1348 = vrot.lane.b32.xlu0 %v5296_v0, %s4786_s23  ;;  %v1197_v0 = vrot.slane %v1195_v3, 1  ;;  %v4193_v37 = vcombine.low %v5321_v32, %v453_v1  ;;  %v4196_v3 = vcombine.low %v5335_v17, %v459_v26  ;;  %v1211_v1 = vrot.slane %v1209_v35, 1  ;;  %8460 = vst [vmem:[#allocation69_spill] sm:$0xff] %v5354_v14 }
  0x81   : > { %v5366_v44 = vor.u32 %v1232_v48, %v1228_v7 }
  0x82   : > { %v5349_v56 = vor.u32 %v1197_v0, %v1193_v41  ;;  %v1221_v26 = vshrl.u32 %v4193_v37, 16  ;;  %v1237_v41 = vshll.u32 %v4195_v2, 16  ;;  %v1242_v59 = vshrl.u32 %v4196_v3, 16 }
  0x83   : > { %1354 = vrot.lane.b32.xlu1 %v5306_v28, %s4786_s23  ;;  %v1207_v28 = vshrl.u32 %v4191_v12, 16  ;;  %v1244_v12 = vshll.u32 %v4196_v3, 16  ;;  %8464 = vst [vmem:[#allocation73_spill] sm:$0xff] %v5366_v44 }
  0x84   : > { %1352 = vrot.lane.b32.xlu0 %v5313_v10, %s4786_s23  ;;  %8459 = vst [vmem:[#allocation68_spill] sm:$0xff] %v5349_v56  ;;  %v1223_v10 = vshll.u32 %v4193_v37, 16  ;;  %v1235_v37 = vshrl.u32 %v4195_v2, 16  ;;  %v4679_v2 = vld [vmem:[%s4844_s22 + $0x10] sm:$0xf] }
  0x85   : > { %v5358_v25 = vor.u32 %v1211_v1, %v1207_v28  ;;  %v1246_v45 = vrot.slane %v1244_v12, 1  ;;  %v4198_v12 = vcombine.low %v4679_v2, %v4679_v2 }
  0x86   : > { %v1225_v0 = vrot.slane %v1223_v10, 1  ;;  %v1239_v10 = vrot.slane %v1237_v41, 1 }
  0x87   : > { %1358 = vrot.lane.b32.xlu1 %v5326_v27, %s4786_s23  ;;  %8461 = vst [vmem:[#allocation70_spill] sm:$0xff] %v5358_v25  ;;  %v5378_v1 = vor.u32 %v1246_v45, %v1242_v59  ;;  %v4200_v45 = vcombine.low %v4857_v16, %v4857_v16 }
  0x88   : > { %1356 = vrot.lane.b32.xlu0 %v5331_v33, %s4786_s23  ;;  %v5370_v28 = vor.u32 %v1225_v0, %v1221_v26  ;;  %v5382_v3 = vor.u32 %v1239_v10, %v1235_v37  ;;  %v4680_v26 = vld [vmem:[%s4844_s22 + $0x8] sm:$0xf]  ;;  %v4681_v37 = vld [vmem:[%s4844_s22 + $0x18] sm:$0xf] }
  0x89   : > { %8468 = vst [vmem:[#allocation77_spill] sm:$0xff] %v5378_v1  ;;  %v4197_v0 = vcombine.low %v4680_v26, %v4680_v26  ;;  %v4199_v10 = vcombine.low %v4681_v37, %v4681_v37  ;;  %v4202_v26 = vcombine.low %v4864_v31, %v4864_v31 }
  0x8a   : > { %8465 = vst [vmem:[#allocation74_spill] sm:$0xff] %v5370_v28  ;;  %8469 = vst [vmem:[#allocation78_spill] sm:$0xff] %v5382_v3 }
  0x8b   : > { %1362 = vrot.lane.b32.xlu1 %v5342_v39, %s4786_s23 }
  0x8c   : > { %1360 = vrot.lane.b32.xlu0 %v5349_v56, %s4786_s23 }
  0x8d   : > { %v5360_v35 = vpop.permute.xlu1 %1252 }
  0x8e   : > { %8462 = vst [vmem:[#allocation71_spill] sm:$0xff] %v5360_v35  ;;  %v5362_v27 = vpop.permute.xlu0 %1248 }
  0x8f   : > { %8463 = vst [vmem:[#allocation72_spill] sm:$0xff] %v5362_v27  ;;  %1366 = vrot.lane.b32.xlu1 %v5354_v14, %s4786_s23 }
  0x90   : > { %1364 = vrot.lane.b32.xlu0 %v5358_v25, %s4786_s23 }
  0x91   : > { %v5372_v13 = vpop.permute.xlu1 %1254 }
  0x92   : > { %8466 = vst [vmem:[#allocation75_spill] sm:$0xff] %v5372_v13  ;;  %v5374_v62 = vpop.permute.xlu0 %1250 }
  0x93   : > { %8467 = vst [vmem:[#allocation76_spill] sm:$0xff] %v5374_v62  ;;  %1370 = vrot.lane.b32.xlu1 %v5366_v44, %s4786_s23 }
  0x94   : > { %1368 = vrot.lane.b32.xlu0 %v5370_v28, %s4786_s23 }
  0x95   : > { %v5384_v7 = vpop.permute.xlu1 %1258 }
  0x96   : > { %8470 = vst [vmem:[#allocation79_spill] sm:$0xff] %v5384_v7  ;;  %v5386_v48 = vpop.permute.xlu0 %1256 }
  0x97   : > { %8471 = vst [vmem:[#allocation80_spill] sm:$0xff] %v5386_v48  ;;  %1374 = vrot.lane.b32.xlu1 %v5378_v1, %s4786_s23 }
  0x98   : > { %1372 = vrot.lane.b32.xlu0 %v5382_v3, %s4786_s23 }
  0x99   : > { %v5394_v41 = vpop.permute.xlu1 %1262 }
  0x9a   : > { %8472 = vst [vmem:[#allocation81_spill] sm:$0xff] %v5394_v41  ;;  %v5396_v59 = vpop.permute.xlu0 %1260  ;;  %v5413_v41 = vld [vmem:[%s4844_s22 + $0x40] sm:$0xf] }
  0x9b   : > { %8473 = vst [vmem:[#allocation82_spill] sm:$0xff] %v5396_v59  ;;  %1458 = vrot.lane.b32.xlu1 %v4198_v12, %s4787_s24  ;;  %v4682_v12 = vld [vmem:[%s4844_s22 + $0x28] sm:$0xf]  ;;  %v4204_v37 = vcombine.low %v5413_v41, %v5413_v41 }
  0x9c   : > { %1456 = vrot.lane.b32.xlu0 %v4197_v0, %s4787_s24  ;;  %v4201_v59 = vcombine.low %v4682_v12, %v4682_v12  ;;  %v5431_v12 = vcombine.low %v4889_v55, %v4889_v55  ;;  %v5452_v55 = vcombine.low %v4885_v52, %v4885_v52  ;;  %v5471_v52 = vld [vmem:[%s4844_s22 + $0x88] sm:$0xf] }
  0x9d   : > { %v5403_v2 = vpop.permute.xlu1 %1266 }
  0x9e   : > { %8474 = vst [vmem:[#allocation83_spill] sm:$0xff] %v5403_v2  ;;  %v5405_v48 = vpop.permute.xlu0 %1264 }
  0x9f   : > { %8475 = vst [vmem:[#allocation84_spill] sm:$0xff] %v5405_v48  ;;  %1462 = vrot.lane.b32.xlu1 %v4200_v45, %s4787_s24  ;;  %v4683_v45 = vld [vmem:[%s4844_s22 + $0x38] sm:$0xf] }
  0xa0   : > { %1460 = vrot.lane.b32.xlu0 %v4199_v10, %s4787_s24  ;;  %v4203_v48 = vcombine.low %v4683_v45, %v4683_v45 }
  0xa1   : > { %v5415_v16 = vpop.permute.xlu1 %1270 }
  0xa2   : > { %8476 = vst [vmem:[#allocation85_spill] sm:$0xff] %v5415_v16  ;;  %v5417_v0 = vpop.permute.xlu0 %1268 }
  0xa3   : > { %8477 = vst [vmem:[#allocation86_spill] sm:$0xff] %v5417_v0  ;;  %1466 = vrot.lane.b32.xlu1 %v4202_v26, %s4787_s24  ;;  %v5436_v26 = vcombine.low %v4872_v40, %v4872_v40 }
  0xa4   : > { %1464 = vrot.lane.b32.xlu0 %v4201_v59, %s4787_s24 }
  0xa5   : > { %v5424_v31 = vpop.permute.xlu1 %1274 }
  0xa6   : > { %8478 = vst [vmem:[#allocation87_spill] sm:$0xff] %v5424_v31  ;;  %v5426_v10 = vpop.permute.xlu0 %1272 }
  0xa7   : > { %8479 = vst [vmem:[#allocation88_spill] sm:$0xff] %v5426_v10  ;;  %1470 = vrot.lane.b32.xlu1 %v4204_v37, %s4787_s24  ;;  %v5446_v37 = vcombine.low %v4907_v6, %v4907_v6  ;;  %v5468_v6 = vcombine.low %v4903_v4, %v4903_v4  ;;  %v5487_v4 = vcombine.low %v4921_v19, %v4921_v19 }
  0xa8   : > { %1468 = vrot.lane.b32.xlu0 %v4203_v48, %s4787_s24 }
  0xa9   : > { %v5438_v59 = vpop.permute.xlu1 %1278 }
  0xaa   : > { %8480 = vst [vmem:[#allocation89_spill] sm:$0xff] %v5438_v59  ;;  %v5440_v45 = vpop.permute.xlu0 %1276 }
  0xab   : > { %8481 = vst [vmem:[#allocation90_spill] sm:$0xff] %v5440_v45  ;;  %1474 = vrot.lane.b32.xlu1 %v5431_v12, %s4787_s24  ;;  %v5462_v45 = vcombine.low %v4925_v21, %v4925_v21  ;;  %v5481_v21 = vcombine.low %v5471_v52, %v5471_v52 }
  0xac   : > { %1472 = vrot.lane.b32.xlu0 %v5436_v26, %s4787_s24 }
  0xad   : > { %v5454_v40 = vpop.permute.xlu1 %1282  ;;  %8486 = vst [vmem:[#allocation95_spill] sm:$0xff] %v5481_v21 }
  0xae   : > { %8482 = vst [vmem:[#allocation91_spill] sm:$0xff] %v5454_v40  ;;  %v5456_v48 = vpop.permute.xlu0 %1280 }
  0xaf   : > { %8483 = vst [vmem:[#allocation92_spill] sm:$0xff] %v5456_v48  ;;  %1478 = vrot.lane.b32.xlu1 %v5446_v37, %s4787_s24 }
  0xb0   : > { %1476 = vrot.lane.b32.xlu0 %v5452_v55, %s4787_s24 }
  0xb1   : > { %v5473_v59 = vpop.permute.xlu1 %1286 }
  0xb2   : > { %8484 = vst [vmem:[#allocation93_spill] sm:$0xff] %v5473_v59  ;;  %v5475_v40 = vpop.permute.xlu0 %1284  ;;  %v5503_v59 = vcombine.low %v4934_v29, %v4934_v29 }
  0xb3   : > { %8485 = vst [vmem:[#allocation94_spill] sm:$0xff] %v5475_v40  ;;  %1482 = vrot.lane.b32.xlu1 %v5462_v45, %s4787_s24  ;;  %v5497_v40 = vcombine.low %v4958_v57, %v4958_v57  ;;  %v5519_v57 = vcombine.low %v4954_v53, %v4954_v53  ;;  %v5538_v53 = vld [vmem:[%s4844_s22 + $0xd0] sm:$0xf] }
  0xb4   : > { %1480 = vrot.lane.b32.xlu0 %v5468_v6, %s4787_s24 }
  0xb5   : > { %v5489_v48 = vpop.permute.xlu1 %1290 }
  0xb6   : > { %8487 = vst [vmem:[#allocation96_spill] sm:$0xff] %v5489_v48  ;;  %v5491_v10 = vpop.permute.xlu0 %1288 }
  0xb7   : > { %8488 = vst [vmem:[#allocation97_spill] sm:$0xff] %v5491_v10  ;;  %1486 = vrot.lane.b32.xlu1 %v5481_v21, %s4787_s24  ;;  %v5513_v10 = vcombine.low %v4976_v11, %v4976_v11  ;;  %v5535_v11 = vcombine.low %v4972_v8, %v4972_v8  ;;  %v5554_v8 = vcombine.low %v4985_v23, %v4985_v23 }
  0xb8   : > { %1484 = vrot.lane.b32.xlu0 %v5487_v4, %s4787_s24 }
  0xb9   : > { %v5505_v19 = vpop.permute.xlu1 %1294 }
  0xba   : > { %8489 = vst [vmem:[#allocation98_spill] sm:$0xff] %v5505_v19  ;;  %v5507_v48 = vpop.permute.xlu0 %1292 }
  0xbb   : > { %8490 = vst [vmem:[#allocation99_spill] sm:$0xff] %v5507_v48  ;;  %1490 = vrot.lane.b32.xlu1 %v5497_v40, %s4787_s24  ;;  %v5529_v48 = vcombine.low %v4994_v34, %v4994_v34  ;;  %v5548_v34 = vcombine.low %v5538_v53, %v5538_v53 }
  0xbc   : > { %1488 = vrot.lane.b32.xlu0 %v5503_v59, %s4787_s24 }
  0xbd   : > { %v5521_v29 = vpop.permute.xlu1 %1298  ;;  %8495 = vst [vmem:[#allocation104_spill] sm:$0xff] %v5548_v34 }
  0xbe   : > { %8491 = vst [vmem:[#allocation100_spill] sm:$0xff] %v5521_v29  ;;  %v5523_v31 = vpop.permute.xlu0 %1296 }
  0xbf   : > { %8492 = vst [vmem:[#allocation101_spill] sm:$0xff] %v5523_v31  ;;  %1494 = vrot.lane.b32.xlu1 %v5513_v10, %s4787_s24 }
  0xc0   : > { %1492 = vrot.lane.b32.xlu0 %v5519_v57, %s4787_s24 }
  0xc1   : > { %v5540_v19 = vpop.permute.xlu1 %1302 }
  0xc2   : > { %8493 = vst [vmem:[#allocation102_spill] sm:$0xff] %v5540_v19  ;;  %v5542_v29 = vpop.permute.xlu0 %1300  ;;  %v5570_v19 = vcombine.low %v5008_v51, %v5008_v51 }
  0xc3   : > { %8494 = vst [vmem:[#allocation103_spill] sm:$0xff] %v5542_v29  ;;  %1498 = vrot.lane.b32.xlu1 %v5529_v48, %s4787_s24  ;;  %v5564_v29 = vcombine.low %v5027_v20, %v5027_v20  ;;  %v5586_v20 = vcombine.low %v5023_v15, %v5023_v15  ;;  %v5605_v15 = vld [vmem:[%s4844_s22 + $0x118] sm:$0xf] }
  0xc4   : > { %1496 = vrot.lane.b32.xlu0 %v5535_v11, %s4787_s24  ;;  %8499 = vst [vmem:[#allocation108_spill] sm:$0xff] %v5570_v19 }
  0xc5   : > { %v5556_v31 = vpop.permute.xlu1 %1306  ;;  %8498 = vst [vmem:[#allocation107_spill] sm:$0xff] %v5564_v29  ;;  %8503 = vst [vmem:[#allocation112_spill] sm:$0xff] %v5586_v20 }
  0xc6   : > { %8496 = vst [vmem:[#allocation105_spill] sm:$0xff] %v5556_v31  ;;  %v5558_v0 = vpop.permute.xlu0 %1304 }
  0xc7   : > { %8497 = vst [vmem:[#allocation106_spill] sm:$0xff] %v5558_v0  ;;  %1502 = vrot.lane.b32.xlu1 %v5548_v34, %s4787_s24  ;;  %v5580_v0 = vcombine.low %v5045_v54, %v5045_v54  ;;  %v5602_v54 = vcombine.low %v5036_v42, %v5036_v42  ;;  %v5621_v42 = vcombine.low %v5059_v24, %v5059_v24 }
  0xc8   : > { %1500 = vrot.lane.b32.xlu0 %v5554_v8, %s4787_s24 }
  0xc9   : > { %v5572_v23 = vpop.permute.xlu1 %1310  ;;  %8502 = vst [vmem:[#allocation111_spill] sm:$0xff] %v5580_v0  ;;  %8507 = vst [vmem:[#allocation116_spill] sm:$0xff] %v5602_v54 }
  0xca   : > { %8500 = vst [vmem:[#allocation109_spill] sm:$0xff] %v5572_v23  ;;  %v5574_v31 = vpop.permute.xlu0 %1308  ;;  %8511 = vst [vmem:[#allocation120_spill] sm:$0xff] %v5621_v42 }
  0xcb   : > { %8501 = vst [vmem:[#allocation110_spill] sm:$0xff] %v5574_v31  ;;  %1506 = vrot.lane.b32.xlu1 %v5564_v29, %s4787_s24  ;;  %v5596_v31 = vcombine.low %v5063_v43, %v5063_v43  ;;  %v5615_v43 = vcombine.low %v5605_v15, %v5605_v15 }
  0xcc   : > { %1504 = vrot.lane.b32.xlu0 %v5570_v19, %s4787_s24 }
  0xcd   : > { %v5588_v51 = vpop.permute.xlu1 %1314  ;;  %8506 = vst [vmem:[#allocation115_spill] sm:$0xff] %v5596_v31  ;;  %8510 = vst [vmem:[#allocation119_spill] sm:$0xff] %v5615_v43 }
  0xce   : > { %8504 = vst [vmem:[#allocation113_spill] sm:$0xff] %v5588_v51  ;;  %v5590_v16 = vpop.permute.xlu0 %1312 }
  0xcf   : > { %8505 = vst [vmem:[#allocation114_spill] sm:$0xff] %v5590_v16  ;;  %1510 = vrot.lane.b32.xlu1 %v5580_v0, %s4787_s24  ;;  %v8541_v16 = vld [vmem:[#allocation43_spill] sm:$0xff] }
  0xd0   : > { %1508 = vrot.lane.b32.xlu0 %v5586_v20, %s4787_s24  ;;  %v5771_v51 = vcombine.low %v8541_v16, %v8541_v16 }
  0xd1   : > { %v5607_v23 = vpop.permute.xlu1 %1318 }
  0xd2   : > { %8508 = vst [vmem:[#allocation117_spill] sm:$0xff] %v5607_v23  ;;  %v5609_v2 = vpop.permute.xlu0 %1316  ;;  %v5637_v23 = vcombine.low %v5077_v63, %v5077_v63 }
  0xd3   : > { %8509 = vst [vmem:[#allocation118_spill] sm:$0xff] %v5609_v2  ;;  %1514 = vrot.lane.b32.xlu1 %v5596_v31, %s4787_s24  ;;  %v5631_v2 = vcombine.low %v5096_v30, %v5096_v30  ;;  %v5653_v30 = vcombine.low %v5088_v9, %v5088_v9  ;;  %v5672_v9 = vld [vmem:[%s4844_s22 + $0x160] sm:$0xf] }
  0xd4   : > { %1512 = vrot.lane.b32.xlu0 %v5602_v54, %s4787_s24  ;;  %8515 = vst [vmem:[#allocation124_spill] sm:$0xff] %v5637_v23 }
  0xd5   : > { %v5623_v7 = vpop.permute.xlu1 %1322  ;;  %8514 = vst [vmem:[#allocation123_spill] sm:$0xff] %v5631_v2  ;;  %8519 = vst [vmem:[#allocation128_spill] sm:$0xff] %v5653_v30 }
  0xd6   : > { %8512 = vst [vmem:[#allocation121_spill] sm:$0xff] %v5623_v7  ;;  %v5625_v56 = vpop.permute.xlu0 %1320 }
  0xd7   : > { %8513 = vst [vmem:[#allocation122_spill] sm:$0xff] %v5625_v56  ;;  %1518 = vrot.lane.b32.xlu1 %v5615_v43, %s4787_s24  ;;  %v5647_v43 = vcombine.low %v5114_v5, %v5114_v5  ;;  %v5669_v5 = vcombine.low %v5110_v49, %v5110_v49  ;;  %v5688_v49 = vcombine.low %v5128_v61, %v5128_v61 }
  0xd8   : > { %1516 = vrot.lane.b32.xlu0 %v5621_v42, %s4787_s24 }
  0xd9   : > { %v5639_v24 = vpop.permute.xlu1 %1326  ;;  %8518 = vst [vmem:[#allocation127_spill] sm:$0xff] %v5647_v43  ;;  %8523 = vst [vmem:[#allocation132_spill] sm:$0xff] %v5669_v5 }
  0xda   : > { %8516 = vst [vmem:[#allocation125_spill] sm:$0xff] %v5639_v24  ;;  %v5641_v7 = vpop.permute.xlu0 %1324  ;;  %8527 = vst [vmem:[#allocation136_spill] sm:$0xff] %v5688_v49 }
  0xdb   : > { %8517 = vst [vmem:[#allocation126_spill] sm:$0xff] %v5641_v7  ;;  %1522 = vrot.lane.b32.xlu1 %v5631_v2, %s4787_s24  ;;  %v5663_v7 = vcombine.low %v5132_v46, %v5132_v46  ;;  %v5682_v46 = vcombine.low %v5672_v9, %v5672_v9 }
  0xdc   : > { %1520 = vrot.lane.b32.xlu0 %v5637_v23, %s4787_s24 }
  0xdd   : > { %v5655_v63 = vpop.permute.xlu1 %1330  ;;  %8522 = vst [vmem:[#allocation131_spill] sm:$0xff] %v5663_v7  ;;  %8526 = vst [vmem:[#allocation135_spill] sm:$0xff] %v5682_v46 }
  0xde   : > { %8520 = vst [vmem:[#allocation129_spill] sm:$0xff] %v5655_v63  ;;  %v5657_v56 = vpop.permute.xlu0 %1328 }
  0xdf   : > { %8521 = vst [vmem:[#allocation130_spill] sm:$0xff] %v5657_v56  ;;  %1526 = vrot.lane.b32.xlu1 %v5647_v43, %s4787_s24 }
  0xe0   : > { %1524 = vrot.lane.b32.xlu0 %v5653_v30, %s4787_s24 }
  0xe1   : > { %v5674_v24 = vpop.permute.xlu1 %1334 }
  0xe2   : > { %8524 = vst [vmem:[#allocation133_spill] sm:$0xff] %v5674_v24  ;;  %v5676_v63 = vpop.permute.xlu0 %1332  ;;  %v5704_v24 = vcombine.low %v5141_v50, %v5141_v50 }
  0xe3   : > { %8525 = vst [vmem:[#allocation134_spill] sm:$0xff] %v5676_v63  ;;  %1530 = vrot.lane.b32.xlu1 %v5663_v7, %s4787_s24  ;;  %v5698_v63 = vcombine.low %v5165_v60, %v5165_v60  ;;  %v5720_v60 = vcombine.low %v5161_v47, %v5161_v47  ;;  %v5739_v47 = vld [vmem:[%s4844_s22 + $0x1a8] sm:$0xf] }
  0xe4   : > { %1528 = vrot.lane.b32.xlu0 %v5669_v5, %s4787_s24 }
  0xe5   : > { %v5690_v56 = vpop.permute.xlu1 %1338 }
  0xe6   : > { %8528 = vst [vmem:[#allocation137_spill] sm:$0xff] %v5690_v56  ;;  %v5692_v35 = vpop.permute.xlu0 %1336 }
  0xe7   : > { %8529 = vst [vmem:[#allocation138_spill] sm:$0xff] %v5692_v35  ;;  %1534 = vrot.lane.b32.xlu1 %v5682_v46, %s4787_s24  ;;  %v5714_v46 = vcombine.low %v5183_v36, %v5183_v36  ;;  %v5736_v36 = vcombine.low %v5179_v38, %v5179_v38  ;;  %v5755_v38 = vcombine.low %v5192_v22, %v5192_v22 }
  0xe8   : > { %1532 = vrot.lane.b32.xlu0 %v5688_v49, %s4787_s24 }
  0xe9   : > { %v5706_v61 = vpop.permute.xlu1 %1342 }
  0xea   : > { %8530 = vst [vmem:[#allocation139_spill] sm:$0xff] %v5706_v61  ;;  %v5708_v56 = vpop.permute.xlu0 %1340 }
  0xeb   : > { %8531 = vst [vmem:[#allocation140_spill] sm:$0xff] %v5708_v56  ;;  %1538 = vrot.lane.b32.xlu1 %v5698_v63, %s4787_s24  ;;  %v5730_v56 = vcombine.low %v5201_v18, %v5201_v18  ;;  %v5749_v18 = vcombine.low %v5739_v47, %v5739_v47 }
  0xec   : > { %1536 = vrot.lane.b32.xlu0 %v5704_v24, %s4787_s24 }
  0xed   : > { %v5722_v50 = vpop.permute.xlu1 %1346  ;;  %8536 = vst [vmem:[#allocation145_spill] sm:$0xff] %v5749_v18 }
  0xee   : > { %8532 = vst [vmem:[#allocation141_spill] sm:$0xff] %v5722_v50  ;;  %v5724_v35 = vpop.permute.xlu0 %1344 }
  0xef   : > { %8533 = vst [vmem:[#allocation142_spill] sm:$0xff] %v5724_v35  ;;  %1542 = vrot.lane.b32.xlu1 %v5714_v46, %s4787_s24 }
  0xf0   : > { %1540 = vrot.lane.b32.xlu0 %v5720_v60, %s4787_s24 }
  0xf1   : > { %v5741_v61 = vpop.permute.xlu1 %1350 }
  0xf2   : > { %8534 = vst [vmem:[#allocation143_spill] sm:$0xff] %v5741_v61  ;;  %v5743_v50 = vpop.permute.xlu0 %1348 }
  0xf3   : > { %8535 = vst [vmem:[#allocation144_spill] sm:$0xff] %v5743_v50  ;;  %1546 = vrot.lane.b32.xlu1 %v5730_v56, %s4787_s24  ;;  %v8539_v50 = vld [vmem:[#allocation47_spill] sm:$0xff] }
  0xf4   : > { %1544 = vrot.lane.b32.xlu0 %v5736_v36, %s4787_s24  ;;  %v5765_v61 = vcombine.low %v8539_v50, %v8539_v50  ;;  %v8546_v50 = vld [vmem:[#allocation46_spill] sm:$0xff] }
  0xf5   : > { %v5757_v35 = vpop.permute.xlu1 %1354  ;;  %v5787_v27 = vcombine.low %v8546_v50, %v8546_v50  ;;  %v5806_v50 = vld [vmem:[%s4844_s22 + $0x1f0] sm:$0xf] }
  0xf6   : > { %8537 = vst [vmem:[#allocation146_spill] sm:$0xff] %v5757_v35  ;;  %v5759_v13 = vpop.permute.xlu0 %1352  ;;  %8540 = vst [vmem:[#allocation47_spill] sm:$0xff] %v5765_v61 }
  0xf7   : > { %8538 = vst [vmem:[#allocation147_spill] sm:$0xff] %v5759_v13  ;;  %1550 = vrot.lane.b32.xlu1 %v5749_v18, %s4787_s24  ;;  %v8544_v13 = vld [vmem:[#allocation51_spill] sm:$0xff]  ;;  %8547 = vst [vmem:[#allocation46_spill] sm:$0xff] %v5787_v27 }
  0xf8   : > { %1548 = vrot.lane.b32.xlu0 %v5755_v38, %s4787_s24  ;;  %v5781_v34 = vcombine.low %v8544_v13, %v8544_v13  ;;  %v8552_v13 = vld [vmem:[#allocation49_spill] sm:$0xff] }
  0xf9   : > { %v5773_v22 = vpop.permute.xlu1 %1358  ;;  %v5803_v18 = vcombine.low %v8552_v13, %v8552_v13 }
  0xfa   : > { %8542 = vst [vmem:[#allocation43_spill] sm:$0xff] %v5773_v22  ;;  %v5775_v35 = vpop.permute.xlu0 %1356  ;;  %8545 = vst [vmem:[#allocation51_spill] sm:$0xff] %v5781_v34 }
  0xfb   : > { %8543 = vst [vmem:[#allocation148_spill] sm:$0xff] %v5775_v35  ;;  %1554 = vrot.lane.b32.xlu1 %v5765_v61, %s4787_s24  ;;  %v8550_v35 = vld [vmem:[#allocation55_spill] sm:$0xff]  ;;  %8553 = vst [vmem:[#allocation49_spill] sm:$0xff] %v5803_v18 }
  0xfc   : > { %1552 = vrot.lane.b32.xlu0 %v5771_v51, %s4787_s24  ;;  %v5797_v22 = vcombine.low %v8550_v35, %v8550_v35  ;;  %v5816_v35 = vcombine.low %v5806_v50, %v5806_v50 }
  0xfd   : > { %v5789_v16 = vpop.permute.xlu1 %1362 }
  0xfe   : > { %8548 = vst [vmem:[#allocation149_spill] sm:$0xff] %v5789_v16  ;;  %v5791_v62 = vpop.permute.xlu0 %1360  ;;  %8551 = vst [vmem:[#allocation55_spill] sm:$0xff] %v5797_v22 }
  0xff   : > { %8549 = vst [vmem:[#allocation150_spill] sm:$0xff] %v5791_v62  ;;  %1558 = vrot.lane.b32.xlu1 %v5781_v34, %s4787_s24  ;;  %8556 = vst [vmem:[#allocation153_spill] sm:$0xff] %v5816_v35  ;;  %v8557_v62 = vld [vmem:[#allocation54_spill] sm:$0xff] }
 0x100   : > { %1556 = vrot.lane.b32.xlu0 %v5787_v27, %s4787_s24  ;;  %v5822_v13 = vcombine.low %v8557_v62, %v8557_v62  ;;  %v353_v27 = vld [vmem:[%s4844_s22 + $0x8c] sm:$0x1] }
 0x101   : > { %v5808_v21 = vpop.permute.xlu1 %1366 }
 0x102   : > { %8554 = vst [vmem:[#allocation151_spill] sm:$0xff] %v5808_v21  ;;  %v5810_v16 = vpop.permute.xlu0 %1364  ;;  %8558 = vst [vmem:[#allocation54_spill] sm:$0xff] %v5822_v13 }
 0x103   : > { %8555 = vst [vmem:[#allocation152_spill] sm:$0xff] %v5810_v16  ;;  %1562 = vrot.lane.b32.xlu1 %v5797_v22, %s4787_s24  ;;  %v8561_v16 = vld [vmem:[#allocation62_spill] sm:$0xff]  ;;  %v8563_v22 = vld [vmem:[#allocation57_spill] sm:$0xff] }
 0x104   : > { %1560 = vrot.lane.b32.xlu0 %v5803_v18, %s4787_s24  ;;  %v5832_v21 = vcombine.low %v8561_v16, %v8561_v16  ;;  %v5838_v18 = vcombine.low %v8563_v22, %v8563_v22  ;;  %v8568_v16 = vld [vmem:[#allocation61_spill] sm:$0xff] }
 0x105   : > { %v5824_v34 = vpop.permute.xlu1 %1370 }
 0x106   : > { %8559 = vst [vmem:[#allocation154_spill] sm:$0xff] %v5824_v34  ;;  %v5826_v61 = vpop.permute.xlu0 %1368  ;;  %8562 = vst [vmem:[#allocation62_spill] sm:$0xff] %v5832_v21 }
 0x107   : > { %8560 = vst [vmem:[#allocation155_spill] sm:$0xff] %v5826_v61  ;;  %1566 = vrot.lane.b32.xlu1 %v5816_v35, %s4787_s24  ;;  %8564 = vst [vmem:[#allocation57_spill] sm:$0xff] %v5838_v18  ;;  %v5848_v61 = vcombine.low %v5321_v32, %v5321_v32  ;;  %v5854_v35 = vcombine.low %v8568_v16, %v8568_v16  ;;  %v8573_v32 = vld [vmem:[#allocation65_spill] sm:$0xff] }
 0x108   : > { %1564 = vrot.lane.b32.xlu0 %v5822_v13, %s4787_s24  ;;  %v5873_v16 = vld [vmem:[%s4844_s22 + $0x238] sm:$0xf] }
 0x109   : > { %v5840_v62 = vpop.permute.xlu1 %1374  ;;  %8567 = vst [vmem:[#allocation158_spill] sm:$0xff] %v5848_v61  ;;  %8569 = vst [vmem:[#allocation61_spill] sm:$0xff] %v5854_v35 }
 0x10a   : > { %8565 = vst [vmem:[#allocation156_spill] sm:$0xff] %v5840_v62  ;;  %v5842_v34 = vpop.permute.xlu0 %1372 }
 0x10b   : > { %8566 = vst [vmem:[#allocation157_spill] sm:$0xff] %v5842_v34  ;;  %1570 = vrot.lane.b32.xlu1 %v5832_v21, %s4787_s24  ;;  %v5864_v34 = vcombine.low %v5339_v58, %v5339_v58  ;;  %v5870_v21 = vcombine.low %v8573_v32, %v8573_v32  ;;  %v5883_v58 = vcombine.low %v5873_v16, %v5873_v16 }
 0x10c   : > { %1568 = vrot.lane.b32.xlu0 %v5838_v18, %s4787_s24  ;;  %v5890_v32 = vcombine.low %v5335_v17, %v5335_v17  ;;  %v8583_v17 = vld [vmem:[#allocation2_spill] sm:$0xff] }
 0x10d   : > { %v5856_v22 = vpop.permute.xlu1 %1458  ;;  %8572 = vst [vmem:[#allocation161_spill] sm:$0xff] %v5864_v34  ;;  %8574 = vst [vmem:[#allocation65_spill] sm:$0xff] %v5870_v21 }
 0x10e   : > { %8570 = vst [vmem:[#allocation159_spill] sm:$0xff] %v5856_v22  ;;  %v5858_v62 = vpop.permute.xlu0 %1456  ;;  %8577 = vst [vmem:[#allocation164_spill] sm:$0xff] %v5883_v58 }
 0x10f   : > { %8571 = vst [vmem:[#allocation160_spill] sm:$0xff] %v5858_v62  ;;  %1574 = vrot.lane.b32.xlu1 %v5848_v61, %s4787_s24  ;;  %v335_v62 = vld [vmem:[%s4844_s22 + $0x44] sm:$0x1]  ;;  %8578 = vst [vmem:[#allocation165_spill] sm:$0xff] %v5890_v32 }
 0x110   : > { %1572 = vrot.lane.b32.xlu0 %v5854_v35, %s4787_s24 }
 0x111   : > { %v5875_v18 = vpop.permute.xlu1 %1462 }
 0x112   : > { %8575 = vst [vmem:[#allocation162_spill] sm:$0xff] %v5875_v18  ;;  %v5877_v22 = vpop.permute.xlu0 %1460 }
 0x113   : > { %8576 = vst [vmem:[#allocation163_spill] sm:$0xff] %v5877_v22  ;;  %1578 = vrot.lane.b32.xlu1 %v5864_v34, %s4787_s24  ;;  %v4261_v22 = vcombine.low %v5413_v41, %v335_v62 }
 0x114   : > { %1576 = vrot.lane.b32.xlu0 %v5870_v21, %s4787_s24 }
 0x115   : > { %v5892_v61 = vpop.permute.xlu1 %1466  ;;  %v1611_v35 = vshll.u32 %v4261_v22, 16 }
 0x116   : > { %8579 = vst [vmem:[#allocation166_spill] sm:$0xff] %v5892_v61  ;;  %v5894_v18 = vpop.permute.xlu0 %1464 }
 0x117   : > { %8580 = vst [vmem:[#allocation167_spill] sm:$0xff] %v5894_v18  ;;  %1582 = vrot.lane.b32.xlu1 %v5883_v58, %s4787_s24  ;;  %v8584_v18 = vld [vmem:[#allocation4_spill] sm:$0xff]  ;;  %v1609_v58 = vshrl.u32 %v4261_v22, 16  ;;  %v1613_v61 = vrot.slane %v1611_v35, 1 }
 0x118   : > { %1580 = vrot.lane.b32.xlu0 %v5890_v32, %s4787_s24  ;;  %v8587_v32 = vld [vmem:[#allocation6_spill] sm:$0xff] }
 0x119   : > { %v5901_v34 = vpop.permute.xlu1 %1470 }
 0x11a   : > { %8581 = vst [vmem:[#allocation168_spill] sm:$0xff] %v5901_v34  ;;  %v5903_v21 = vpop.permute.xlu0 %1468  ;;  %v8588_v34 = vld [vmem:[#allocation3_spill] sm:$0xff] }
 0x11b   : > { %8582 = vst [vmem:[#allocation169_spill] sm:$0xff] %v5903_v21  ;;  %1666 = vrot.lane.b32.xlu1 %v8583_v17, %s4788_s25  ;;  %v8591_v17 = vld [vmem:[#allocation8_spill] sm:$0xff] }
 0x11c   : > { %1664 = vrot.lane.b32.xlu0 %v8584_v18, %s4788_s25  ;;  %v1614_v18 = vor.u32 %v1613_v61, %v1609_v58  ;;  %v8598_v58 = vld [vmem:[#allocation12_spill] sm:$0xff] }
 0x11d   : > { %v5909_v41 = vpop.permute.xlu1 %1474 }
 0x11e   : > { %8585 = vst [vmem:[#allocation2_spill] sm:$0xff] %v5909_v41  ;;  %v5911_v62 = vpop.permute.xlu0 %1472  ;;  %v8592_v41 = vld [vmem:[#allocation5_spill] sm:$0xff] }
 0x11f   : > { %8586 = vst [vmem:[#allocation4_spill] sm:$0xff] %v5911_v62  ;;  %1670 = vrot.lane.b32.xlu1 %v8587_v32, %s4788_s25  ;;  %v4262_v32 = vcombine.low %v5471_v52, %v353_v27 }
 0x120   : > { %1668 = vrot.lane.b32.xlu0 %v8588_v34, %s4788_s25  ;;  %v8595_v34 = vld [vmem:[#allocation7_spill] sm:$0xff] }
 0x121   : > { %v5917_v21 = vpop.permute.xlu1 %1478  ;;  %v1618_v61 = vshll.u32 %v4262_v32, 16  ;;  %v1616_v52 = vshrl.u32 %v4262_v32, 16 }
 0x122   : > { %8589 = vst [vmem:[#allocation6_spill] sm:$0xff] %v5917_v21  ;;  %v5919_v13 = vpop.permute.xlu0 %1476  ;;  %v8606_v21 = vld [vmem:[#allocation16_spill] sm:$0xff] }
 0x123   : > { %8590 = vst [vmem:[#allocation3_spill] sm:$0xff] %v5919_v13  ;;  %1674 = vrot.lane.b32.xlu1 %v8591_v17, %s4788_s25 }
 0x124   : > { %1672 = vrot.lane.b32.xlu0 %v8592_v41, %s4788_s25  ;;  %v8599_v41 = vld [vmem:[#allocation9_spill] sm:$0xff] }
 0x125   : > { %v5926_v22 = vpop.permute.xlu1 %1482 }
 0x126   : > { %8593 = vst [vmem:[#allocation8_spill] sm:$0xff] %v5926_v22  ;;  %v5928_v35 = vpop.permute.xlu0 %1480 }
 0x127   : > { %8594 = vst [vmem:[#allocation5_spill] sm:$0xff] %v5928_v35  ;;  %1678 = vrot.lane.b32.xlu1 %v1614_v18, %s4788_s25  ;;  %v1620_v18 = vrot.slane %v1618_v61, 1 }
 0x128   : > { %1676 = vrot.lane.b32.xlu0 %v8595_v34, %s4788_s25  ;;  %v8602_v34 = vld [vmem:[#allocation14_spill] sm:$0xff] }
 0x129   : > { %v5934_v13 = vpop.permute.xlu1 %1486  ;;  %v5956_v62 = vor.u32 %v1620_v18, %v1616_v52 }
 0x12a   : > { %8596 = vst [vmem:[#allocation7_spill] sm:$0xff] %v5934_v13  ;;  %v5936_v17 = vpop.permute.xlu0 %1484  ;;  %v8603_v13 = vld [vmem:[#allocation11_spill] sm:$0xff] }
 0x12b   : > { %8597 = vst [vmem:[#allocation170_spill] sm:$0xff] %v5936_v17  ;;  %1682 = vrot.lane.b32.xlu1 %v8598_v58, %s4788_s25  ;;  %8607 = vst [vmem:[#allocation172_spill] sm:$0xff] %v5956_v62 }
 0x12c   : > { %1680 = vrot.lane.b32.xlu0 %v8599_v41, %s4788_s25 }
 0x12d   : > { %v5942_v35 = vpop.permute.xlu1 %1490 }
 0x12e   : > { %8600 = vst [vmem:[#allocation12_spill] sm:$0xff] %v5942_v35  ;;  %v5944_v27 = vpop.permute.xlu0 %1488  ;;  %v371_v35 = vld [vmem:[%s4844_s22 + $0xd4] sm:$0x1] }
 0x12f   : > { %8601 = vst [vmem:[#allocation9_spill] sm:$0xff] %v5944_v27  ;;  %1686 = vrot.lane.b32.xlu1 %v8602_v34, %s4788_s25  ;;  %v8608_v27 = vld [vmem:[#allocation13_spill] sm:$0xff]  ;;  %v4263_v34 = vcombine.low %v5538_v53, %v371_v35 }
 0x130   : > { %1684 = vrot.lane.b32.xlu0 %v8603_v13, %s4788_s25 }
 0x131   : > { %v5950_v17 = vpop.permute.xlu1 %1494  ;;  %v1625_v18 = vshll.u32 %v4263_v34, 16  ;;  %v1623_v35 = vshrl.u32 %v4263_v34, 16 }
 0x132   : > { %8604 = vst [vmem:[#allocation11_spill] sm:$0xff] %v5950_v17  ;;  %v5952_v22 = vpop.permute.xlu0 %1492 }
 0x133   : > { %8605 = vst [vmem:[#allocation171_spill] sm:$0xff] %v5952_v22  ;;  %1690 = vrot.lane.b32.xlu1 %v8606_v21, %s4788_s25  ;;  %v8611_v22 = vld [vmem:[#allocation15_spill] sm:$0xff]  ;;  %v8614_v21 = vld [vmem:[#allocation20_spill] sm:$0xff] }
 0x134   : > { %1688 = vrot.lane.b32.xlu0 %v8608_v27, %s4788_s25 }
 0x135   : > { %v5961_v32 = vpop.permute.xlu1 %1498 }
 0x136   : > { %8609 = vst [vmem:[#allocation173_spill] sm:$0xff] %v5961_v32  ;;  %v5963_v61 = vpop.permute.xlu0 %1496  ;;  %v8615_v32 = vld [vmem:[#allocation17_spill] sm:$0xff] }
 0x137   : > { %8610 = vst [vmem:[#allocation174_spill] sm:$0xff] %v5963_v61  ;;  %1694 = vrot.lane.b32.xlu1 %v5956_v62, %s4788_s25  ;;  %v1627_v62 = vrot.slane %v1625_v18, 1 }
 0x138   : > { %1692 = vrot.lane.b32.xlu0 %v8611_v22, %s4788_s25  ;;  %v8618_v22 = vld [vmem:[#allocation22_spill] sm:$0xff] }
 0x139   : > { %v5970_v17 = vpop.permute.xlu1 %1502 }
 0x13a   : > { %8612 = vst [vmem:[#allocation175_spill] sm:$0xff] %v5970_v17  ;;  %v5972_v52 = vpop.permute.xlu0 %1500  ;;  %v8619_v17 = vld [vmem:[#allocation19_spill] sm:$0xff] }
 0x13b   : > { %8613 = vst [vmem:[#allocation176_spill] sm:$0xff] %v5972_v52  ;;  %1698 = vrot.lane.b32.xlu1 %v8614_v21, %s4788_s25  ;;  %v8622_v21 = vld [vmem:[#allocation24_spill] sm:$0xff] }
 0x13c   : > { %1696 = vrot.lane.b32.xlu0 %v8615_v32, %s4788_s25  ;;  %v5992_v32 = vor.u32 %v1627_v62, %v1623_v35 }
 0x13d   : > { %v5978_v61 = vpop.permute.xlu1 %1506 }
 0x13e   : > { %8616 = vst [vmem:[#allocation177_spill] sm:$0xff] %v5978_v61  ;;  %v5980_v53 = vpop.permute.xlu0 %1504  ;;  %8623 = vst [vmem:[#allocation180_spill] sm:$0xff] %v5992_v32  ;;  %v389_v61 = vld [vmem:[%s4844_s22 + $0x11c] sm:$0x1] }
 0x13f   : > { %8617 = vst [vmem:[#allocation178_spill] sm:$0xff] %v5980_v53  ;;  %1702 = vrot.lane.b32.xlu1 %v8618_v22, %s4788_s25  ;;  %v8624_v53 = vld [vmem:[#allocation21_spill] sm:$0xff]  ;;  %v4264_v22 = vcombine.low %v5605_v15, %v389_v61 }
 0x140   : > { %1700 = vrot.lane.b32.xlu0 %v8619_v17, %s4788_s25 }
 0x141   : > { %v5986_v52 = vpop.permute.xlu1 %1510  ;;  %v1632_v35 = vshll.u32 %v4264_v22, 16  ;;  %v1630_v61 = vshrl.u32 %v4264_v22, 16 }
 0x142   : > { %8620 = vst [vmem:[#allocation19_spill] sm:$0xff] %v5986_v52  ;;  %v5988_v27 = vpop.permute.xlu0 %1508 }
 0x143   : > { %8621 = vst [vmem:[#allocation179_spill] sm:$0xff] %v5988_v27  ;;  %1706 = vrot.lane.b32.xlu1 %v8622_v21, %s4788_s25  ;;  %v8627_v27 = vld [vmem:[#allocation23_spill] sm:$0xff]  ;;  %v8630_v21 = vld [vmem:[#allocation28_spill] sm:$0xff] }
 0x144   : > { %1704 = vrot.lane.b32.xlu0 %v8624_v53, %s4788_s25 }
 0x145   : > { %v5997_v34 = vpop.permute.xlu1 %1514 }
 0x146   : > { %8625 = vst [vmem:[#allocation181_spill] sm:$0xff] %v5997_v34  ;;  %v5999_v18 = vpop.permute.xlu0 %1512  ;;  %v8631_v34 = vld [vmem:[#allocation25_spill] sm:$0xff] }
 0x147   : > { %8626 = vst [vmem:[#allocation182_spill] sm:$0xff] %v5999_v18  ;;  %1710 = vrot.lane.b32.xlu1 %v5992_v32, %s4788_s25  ;;  %v1634_v32 = vrot.slane %v1632_v35, 1 }
 0x148   : > { %1708 = vrot.lane.b32.xlu0 %v8627_v27, %s4788_s25  ;;  %v8634_v27 = vld [vmem:[#allocation30_spill] sm:$0xff] }
 0x149   : > { %v6006_v52 = vpop.permute.xlu1 %1518 }
 0x14a   : > { %8628 = vst [vmem:[#allocation183_spill] sm:$0xff] %v6006_v52  ;;  %v6008_v62 = vpop.permute.xlu0 %1516  ;;  %v8635_v52 = vld [vmem:[#allocation27_spill] sm:$0xff] }
 0x14b   : > { %8629 = vst [vmem:[#allocation184_spill] sm:$0xff] %v6008_v62  ;;  %1714 = vrot.lane.b32.xlu1 %v8630_v21, %s4788_s25  ;;  %v8638_v21 = vld [vmem:[#allocation32_spill] sm:$0xff] }
 0x14c   : > { %1712 = vrot.lane.b32.xlu0 %v8631_v34, %s4788_s25  ;;  %v6028_v34 = vor.u32 %v1634_v32, %v1630_v61  ;;  %v8646_v61 = vld [vmem:[#allocation36_spill] sm:$0xff] }
 0x14d   : > { %v6014_v18 = vpop.permute.xlu1 %1522 }
 0x14e   : > { %8632 = vst [vmem:[#allocation185_spill] sm:$0xff] %v6014_v18  ;;  %v6016_v15 = vpop.permute.xlu0 %1520  ;;  %8639 = vst [vmem:[#allocation189_spill] sm:$0xff] %v6028_v34  ;;  %v407_v18 = vld [vmem:[%s4844_s22 + $0x164] sm:$0x1] }
 0x14f   : > { %8633 = vst [vmem:[#allocation186_spill] sm:$0xff] %v6016_v15  ;;  %1718 = vrot.lane.b32.xlu1 %v8634_v27, %s4788_s25  ;;  %v8640_v15 = vld [vmem:[#allocation29_spill] sm:$0xff]  ;;  %v4265_v27 = vcombine.low %v5672_v9, %v407_v18  ;;  %v8650_v18 = vld [vmem:[#allocation38_spill] sm:$0xff] }
 0x150   : > { %1716 = vrot.lane.b32.xlu0 %v8635_v52, %s4788_s25 }
 0x151   : > { %v6022_v62 = vpop.permute.xlu1 %1526 }
 0x152   : > { %8636 = vst [vmem:[#allocation187_spill] sm:$0xff] %v6022_v62  ;;  %v6024_v53 = vpop.permute.xlu0 %1524 }
 0x153   : > { %8637 = vst [vmem:[#allocation188_spill] sm:$0xff] %v6024_v53  ;;  %1722 = vrot.lane.b32.xlu1 %v8638_v21, %s4788_s25  ;;  %v8643_v53 = vld [vmem:[#allocation31_spill] sm:$0xff]  ;;  %v1639_v21 = vshll.u32 %v4265_v27, 16 }
 0x154   : > { %1720 = vrot.lane.b32.xlu0 %v8640_v15, %s4788_s25 }
 0x155   : > { %v6033_v22 = vpop.permute.xlu1 %1530 }
 0x156   : > { %8641 = vst [vmem:[#allocation190_spill] sm:$0xff] %v6033_v22  ;;  %v6035_v35 = vpop.permute.xlu0 %1528  ;;  %v8647_v22 = vld [vmem:[#allocation33_spill] sm:$0xff] }
 0x157   : > { %8642 = vst [vmem:[#allocation191_spill] sm:$0xff] %v6035_v35  ;;  %1726 = vrot.lane.b32.xlu1 %v6028_v34, %s4788_s25  ;;  %v1637_v34 = vshrl.u32 %v4265_v27, 16 }
 0x158   : > { %1724 = vrot.lane.b32.xlu0 %v8643_v53, %s4788_s25  ;;  %v1641_v53 = vrot.slane %v1639_v21, 1 }
 0x159   : > { %v6042_v62 = vpop.permute.xlu1 %1534 }
 0x15a   : > { %8644 = vst [vmem:[#allocation192_spill] sm:$0xff] %v6042_v62  ;;  %v6044_v32 = vpop.permute.xlu0 %1532  ;;  %v8651_v62 = vld [vmem:[#allocation35_spill] sm:$0xff] }
 0x15b   : > { %8645 = vst [vmem:[#allocation193_spill] sm:$0xff] %v6044_v32  ;;  %1730 = vrot.lane.b32.xlu1 %v8646_v61, %s4788_s25  ;;  %v8654_v61 = vld [vmem:[#allocation40_spill] sm:$0xff] }
 0x15c   : > { %1728 = vrot.lane.b32.xlu0 %v8647_v22, %s4788_s25  ;;  %v6064_v22 = vor.u32 %v1641_v53, %v1637_v34  ;;  %v8662_v34 = vld [vmem:[#allocation45_spill] sm:$0xff] }
 0x15d   : > { %v6050_v35 = vpop.permute.xlu1 %1538 }
 0x15e   : > { %8648 = vst [vmem:[#allocation194_spill] sm:$0xff] %v6050_v35  ;;  %v6052_v9 = vpop.permute.xlu0 %1536  ;;  %8655 = vst [vmem:[#allocation198_spill] sm:$0xff] %v6064_v22  ;;  %v425_v35 = vld [vmem:[%s4844_s22 + $0x1ac] sm:$0x1] }
 0x15f   : > { %8649 = vst [vmem:[#allocation195_spill] sm:$0xff] %v6052_v9  ;;  %1734 = vrot.lane.b32.xlu1 %v8650_v18, %s4788_s25  ;;  %v8656_v9 = vld [vmem:[#allocation37_spill] sm:$0xff]  ;;  %v4266_v21 = vcombine.low %v5739_v47, %v425_v35  ;;  %v8666_v35 = vld [vmem:[#allocation50_spill] sm:$0xff] }
 0x160   : > { %1732 = vrot.lane.b32.xlu0 %v8651_v62, %s4788_s25 }
 0x161   : > { %v6058_v32 = vpop.permute.xlu1 %1542 }
 0x162   : > { %8652 = vst [vmem:[#allocation196_spill] sm:$0xff] %v6058_v32  ;;  %v6060_v15 = vpop.permute.xlu0 %1540 }
 0x163   : > { %8653 = vst [vmem:[#allocation197_spill] sm:$0xff] %v6060_v15  ;;  %1738 = vrot.lane.b32.xlu1 %v8654_v61, %s4788_s25  ;;  %v8659_v15 = vld [vmem:[#allocation39_spill] sm:$0xff]  ;;  %v1646_v61 = vshll.u32 %v4266_v21, 16 }
 0x164   : > { %1736 = vrot.lane.b32.xlu0 %v8656_v9, %s4788_s25 }
 0x165   : > { %v6069_v52 = vpop.permute.xlu1 %1546 }
 0x166   : > { %8657 = vst [vmem:[#allocation199_spill] sm:$0xff] %v6069_v52  ;;  %v6071_v27 = vpop.permute.xlu0 %1544  ;;  %v8663_v52 = vld [vmem:[#allocation41_spill] sm:$0xff] }
 0x167   : > { %8658 = vst [vmem:[#allocation200_spill] sm:$0xff] %v6071_v27  ;;  %1742 = vrot.lane.b32.xlu1 %v6064_v22, %s4788_s25  ;;  %v1644_v22 = vshrl.u32 %v4266_v21, 16 }
 0x168   : > { %1740 = vrot.lane.b32.xlu0 %v8659_v15, %s4788_s25  ;;  %v1648_v15 = vrot.slane %v1646_v61, 1 }
 0x169   : > { %v6078_v32 = vpop.permute.xlu1 %1550 }
 0x16a   : > { %8660 = vst [vmem:[#allocation201_spill] sm:$0xff] %v6078_v32  ;;  %v6080_v53 = vpop.permute.xlu0 %1548  ;;  %v8667_v32 = vld [vmem:[#allocation44_spill] sm:$0xff] }
 0x16b   : > { %8661 = vst [vmem:[#allocation202_spill] sm:$0xff] %v6080_v53  ;;  %1746 = vrot.lane.b32.xlu1 %v8662_v34, %s4788_s25  ;;  %v8670_v34 = vld [vmem:[#allocation53_spill] sm:$0xff] }
 0x16c   : > { %1744 = vrot.lane.b32.xlu0 %v8663_v52, %s4788_s25  ;;  %v6100_v52 = vor.u32 %v1648_v15, %v1644_v22  ;;  %v8678_v22 = vld [vmem:[#allocation60_spill] sm:$0xff] }
 0x16d   : > { %v6086_v27 = vpop.permute.xlu1 %1554 }
 0x16e   : > { %8664 = vst [vmem:[#allocation203_spill] sm:$0xff] %v6086_v27  ;;  %v6088_v47 = vpop.permute.xlu0 %1552  ;;  %8671 = vst [vmem:[#allocation205_spill] sm:$0xff] %v6100_v52  ;;  %v443_v27 = vld [vmem:[%s4844_s22 + $0x1f4] sm:$0x1] }
 0x16f   : > { %8665 = vst [vmem:[#allocation204_spill] sm:$0xff] %v6088_v47  ;;  %1750 = vrot.lane.b32.xlu1 %v8666_v35, %s4788_s25  ;;  %v8672_v47 = vld [vmem:[#allocation48_spill] sm:$0xff]  ;;  %v4267_v61 = vcombine.low %v5806_v50, %v443_v27 }
 0x170   : > { %1748 = vrot.lane.b32.xlu0 %v8667_v32, %s4788_s25  ;;  %v8682_v27 = vld [vmem:[#allocation64_spill] sm:$0xff] }
 0x171   : > { %v6094_v53 = vpop.permute.xlu1 %1558 }
 0x172   : > { %8668 = vst [vmem:[#allocation50_spill] sm:$0xff] %v6094_v53  ;;  %v6096_v18 = vpop.permute.xlu0 %1556 }
 0x173   : > { %8669 = vst [vmem:[#allocation44_spill] sm:$0xff] %v6096_v18  ;;  %1754 = vrot.lane.b32.xlu1 %v8670_v34, %s4788_s25  ;;  %v8675_v18 = vld [vmem:[#allocation52_spill] sm:$0xff]  ;;  %v1653_v34 = vshll.u32 %v4267_v61, 16 }
 0x174   : > { %1752 = vrot.lane.b32.xlu0 %v8672_v47, %s4788_s25 }
 0x175   : > { %v6105_v9 = vpop.permute.xlu1 %1562 }
 0x176   : > { %8673 = vst [vmem:[#allocation206_spill] sm:$0xff] %v6105_v9  ;;  %v6107_v21 = vpop.permute.xlu0 %1560  ;;  %v8679_v9 = vld [vmem:[#allocation56_spill] sm:$0xff] }
 0x177   : > { %8674 = vst [vmem:[#allocation207_spill] sm:$0xff] %v6107_v21  ;;  %1758 = vrot.lane.b32.xlu1 %v6100_v52, %s4788_s25  ;;  %v1651_v52 = vshrl.u32 %v4267_v61, 16 }
 0x178   : > { %1756 = vrot.lane.b32.xlu0 %v8675_v18, %s4788_s25  ;;  %v1655_v18 = vrot.slane %v1653_v34, 1 }
 0x179   : > { %v6114_v53 = vpop.permute.xlu1 %1566 }
 0x17a   : > { %8676 = vst [vmem:[#allocation208_spill] sm:$0xff] %v6114_v53  ;;  %v6116_v15 = vpop.permute.xlu0 %1564  ;;  %v8683_v53 = vld [vmem:[#allocation59_spill] sm:$0xff] }
 0x17b   : > { %8677 = vst [vmem:[#allocation209_spill] sm:$0xff] %v6116_v15  ;;  %1762 = vrot.lane.b32.xlu1 %v8678_v22, %s4788_s25  ;;  %v6136_v22 = vor.u32 %v1655_v18, %v1651_v52 }
 0x17c   : > { %1760 = vrot.lane.b32.xlu0 %v8679_v9, %s4788_s25 }
 0x17d   : > { %v6122_v21 = vpop.permute.xlu1 %1570  ;;  %8686 = vst [vmem:[#allocation212_spill] sm:$0xff] %v6136_v22 }
 0x17e   : > { %8680 = vst [vmem:[#allocation210_spill] sm:$0xff] %v6122_v21  ;;  %v6124_v50 = vpop.permute.xlu0 %1568  ;;  %v461_v21 = vld [vmem:[%s4844_s22 + $0x23c] sm:$0x1] }
 0x17f   : > { %8681 = vst [vmem:[#allocation211_spill] sm:$0xff] %v6124_v50  ;;  %1766 = vrot.lane.b32.xlu1 %v8682_v27, %s4788_s25  ;;  %v8687_v50 = vld [vmem:[#allocation63_spill] sm:$0xff]  ;;  %v4268_v34 = vcombine.low %v5873_v16, %v461_v21 }
 0x180   : > { %1764 = vrot.lane.b32.xlu0 %v8683_v53, %s4788_s25 }
 0x181   : > { %v6130_v15 = vpop.permute.xlu1 %1574  ;;  %v1660_v18 = vshll.u32 %v4268_v34, 16  ;;  %v1658_v21 = vshrl.u32 %v4268_v34, 16  ;;  %v4684_v34 = vld [vmem:[%s4844_s22 + $0x48] sm:$0xf] }
 0x182   : > { %8684 = vst [vmem:[#allocation64_spill] sm:$0xff] %v6130_v15  ;;  %v6132_v47 = vpop.permute.xlu0 %1572 }
 0x183   : > { %8685 = vst [vmem:[#allocation59_spill] sm:$0xff] %v6132_v47  ;;  %1770 = vrot.lane.b32.xlu1 %v5331_v33, %s4788_s25  ;;  %v8690_v47 = vld [vmem:[#allocation66_spill] sm:$0xff] }
 0x184   : > { %1768 = vrot.lane.b32.xlu0 %v8687_v50, %s4788_s25 }
 0x185   : > { %v6141_v9 = vpop.permute.xlu1 %1578 }
 0x186   : > { %8688 = vst [vmem:[#allocation63_spill] sm:$0xff] %v6141_v9  ;;  %v6143_v61 = vpop.permute.xlu0 %1576  ;;  %v1662_v9 = vrot.slane %v1660_v18, 1  ;;  %v4269_v18 = vcombine.low %v4684_v34, %v4684_v34 }
 0x187   : > { %8689 = vst [vmem:[#allocation213_spill] sm:$0xff] %v6143_v61  ;;  %1774 = vrot.lane.b32.xlu1 %v6136_v22, %s4788_s25 }
 0x188   : > { %1772 = vrot.lane.b32.xlu0 %v8690_v47, %s4788_s25 }
 0x189   : > { %v6150_v15 = vpop.permute.xlu1 %1582 }
 0x18a   : > { %8691 = vst [vmem:[#allocation66_spill] sm:$0xff] %v6150_v15  ;;  %v6152_v52 = vpop.permute.xlu0 %1580 }
 0x18b   : > { %8692 = vst [vmem:[#allocation214_spill] sm:$0xff] %v6152_v52  ;;  %1778 = vrot.lane.b32.xlu1 %v5358_v25, %s4788_s25  ;;  %v6172_v25 = vor.u32 %v1662_v9, %v1658_v21 }
 0x18c   : > { %1776 = vrot.lane.b32.xlu0 %v5342_v39, %s4788_s25 }
 0x18d   : > { %v6158_v61 = vpop.permute.xlu1 %1666  ;;  %8694 = vst [vmem:[#allocation216_spill] sm:$0xff] %v6172_v25 }
 0x18e   : > { %v6160_v16 = vpop.permute.xlu0 %1664 }
 0x18f   : > { %1782 = vrot.lane.b32.xlu1 %v5370_v28, %s4788_s25 }
 0x190   : > { %1780 = vrot.lane.b32.xlu0 %v5354_v14, %s4788_s25 }
 0x191   : > { %v6166_v52 = vpop.permute.xlu1 %1670 }
 0x192   : > { %v6168_v15 = vpop.permute.xlu0 %1668 }
 0x193   : > { %8693 = vst [vmem:[#allocation215_spill] sm:$0xff] %v6168_v15  ;;  %1786 = vrot.lane.b32.xlu1 %v5382_v3, %s4788_s25 }
 0x194   : > { %1784 = vrot.lane.b32.xlu0 %v5366_v44, %s4788_s25  ;;  %v8740_v44 = vld [vmem:[#allocation47_spill] sm:$0xff] }
 0x195   : > { %v6176_v39 = vpop.permute.xlu1 %1674 }
 0x196   : > { %8695 = vst [vmem:[#allocation217_spill] sm:$0xff] %v6176_v39  ;;  %v6178_v28 = vpop.permute.xlu0 %1672  ;;  %v468_v39 = vld [vmem:[%s6403_s30 + $0x18] sm:$0xf] }
 0x197   : > { %8696 = vst [vmem:[#allocation218_spill] sm:$0xff] %v6178_v28  ;;  %1790 = vrot.lane.b32.xlu1 %v6172_v25, %s4788_s25 }
 0x198   : > { %1788 = vrot.lane.b32.xlu0 %v5378_v1, %s4788_s25 }
 0x199   : > { %v6185_v14 = vpop.permute.xlu1 %1678 }
 0x19a   : > { %8697 = vst [vmem:[#allocation219_spill] sm:$0xff] %v6185_v14  ;;  %v6187_v3 = vpop.permute.xlu0 %1676 }
 0x19b   : > { %8698 = vst [vmem:[#allocation220_spill] sm:$0xff] %v6187_v3  ;;  %1825 = vrot.lane.b32.xlu1 %v5436_v26, %s4789_s26 }
 0x19c   : > { %1823 = vrot.lane.b32.xlu0 %v4269_v18, %s4789_s26 }
 0x19d   : > { %v6192_v9 = vpop.permute.xlu1 %1682 }
 0x19e   : > { %8699 = vst [vmem:[#allocation221_spill] sm:$0xff] %v6192_v9  ;;  %v6194_v21 = vpop.permute.xlu0 %1680 }
 0x19f   : > { %8700 = vst [vmem:[#allocation222_spill] sm:$0xff] %v6194_v21  ;;  %1829 = vrot.lane.b32.xlu1 %v5452_v55, %s4789_s26  ;;  %v4685_v21 = vld [vmem:[%s4844_s22 + $0x90] sm:$0xf] }
 0x1a0   : > { %1827 = vrot.lane.b32.xlu0 %v5431_v12, %s4789_s26 }
 0x1a1   : > { %v6200_v34 = vpop.permute.xlu1 %1686 }
 0x1a2   : > { %8701 = vst [vmem:[#allocation223_spill] sm:$0xff] %v6200_v34  ;;  %v6202_v25 = vpop.permute.xlu0 %1684  ;;  %v4270_v34 = vcombine.low %v4685_v21, %v4685_v21 }
 0x1a3   : > { %8702 = vst [vmem:[#allocation224_spill] sm:$0xff] %v6202_v25  ;;  %1833 = vrot.lane.b32.xlu1 %v5468_v6, %s4789_s26 }
 0x1a4   : > { %1831 = vrot.lane.b32.xlu0 %v5446_v37, %s4789_s26 }
 0x1a5   : > { %v6208_v18 = vpop.permute.xlu1 %1690 }
 0x1a6   : > { %8703 = vst [vmem:[#allocation225_spill] sm:$0xff] %v6208_v18  ;;  %v6210_v9 = vpop.permute.xlu0 %1688 }
 0x1a7   : > { %8704 = vst [vmem:[#allocation226_spill] sm:$0xff] %v6210_v9  ;;  %1837 = vrot.lane.b32.xlu1 %v5487_v4, %s4789_s26 }
 0x1a8   : > { %1835 = vrot.lane.b32.xlu0 %v5462_v45, %s4789_s26 }
 0x1a9   : > { %v6217_v1 = vpop.permute.xlu1 %1694 }
 0x1aa   : > { %8705 = vst [vmem:[#allocation227_spill] sm:$0xff] %v6217_v1  ;;  %v6219_v25 = vpop.permute.xlu0 %1692 }
 0x1ab   : > { %8706 = vst [vmem:[#allocation228_spill] sm:$0xff] %v6219_v25  ;;  %1841 = vrot.lane.b32.xlu1 %v5503_v59, %s4789_s26 }
 0x1ac   : > { %1839 = vrot.lane.b32.xlu0 %v4270_v34, %s4789_s26 }
 0x1ad   : > { %v6224_v18 = vpop.permute.xlu1 %1698 }
 0x1ae   : > { %8707 = vst [vmem:[#allocation229_spill] sm:$0xff] %v6224_v18  ;;  %v6226_v9 = vpop.permute.xlu0 %1696 }
 0x1af   : > { %8708 = vst [vmem:[#allocation230_spill] sm:$0xff] %v6226_v9  ;;  %1845 = vrot.lane.b32.xlu1 %v5519_v57, %s4789_s26  ;;  %v4686_v9 = vld [vmem:[%s4844_s22 + $0xd8] sm:$0xf] }
 0x1b0   : > { %1843 = vrot.lane.b32.xlu0 %v5497_v40, %s4789_s26 }
 0x1b1   : > { %v6232_v21 = vpop.permute.xlu1 %1702 }
 0x1b2   : > { %8709 = vst [vmem:[#allocation231_spill] sm:$0xff] %v6232_v21  ;;  %v6234_v1 = vpop.permute.xlu0 %1700  ;;  %v4271_v21 = vcombine.low %v4686_v9, %v4686_v9 }
 0x1b3   : > { %8710 = vst [vmem:[#allocation232_spill] sm:$0xff] %v6234_v1  ;;  %1849 = vrot.lane.b32.xlu1 %v5535_v11, %s4789_s26 }
 0x1b4   : > { %1847 = vrot.lane.b32.xlu0 %v5513_v10, %s4789_s26 }
 0x1b5   : > { %v6240_v34 = vpop.permute.xlu1 %1706 }
 0x1b6   : > { %8711 = vst [vmem:[#allocation233_spill] sm:$0xff] %v6240_v34  ;;  %v6242_v18 = vpop.permute.xlu0 %1704 }
 0x1b7   : > { %8712 = vst [vmem:[#allocation234_spill] sm:$0xff] %v6242_v18  ;;  %1853 = vrot.lane.b32.xlu1 %v5554_v8, %s4789_s26 }
 0x1b8   : > { %1851 = vrot.lane.b32.xlu0 %v5529_v48, %s4789_s26 }
 0x1b9   : > { %v6249_v25 = vpop.permute.xlu1 %1710 }
 0x1ba   : > { %8713 = vst [vmem:[#allocation235_spill] sm:$0xff] %v6249_v25  ;;  %v6251_v1 = vpop.permute.xlu0 %1708 }
 0x1bb   : > { %8714 = vst [vmem:[#allocation236_spill] sm:$0xff] %v6251_v1  ;;  %1857 = vrot.lane.b32.xlu1 %v5570_v19, %s4789_s26 }
 0x1bc   : > { %1855 = vrot.lane.b32.xlu0 %v4271_v21, %s4789_s26 }
 0x1bd   : > { %v6256_v34 = vpop.permute.xlu1 %1714 }
 0x1be   : > { %8715 = vst [vmem:[#allocation237_spill] sm:$0xff] %v6256_v34  ;;  %v6258_v18 = vpop.permute.xlu0 %1712 }
 0x1bf   : > { %8716 = vst [vmem:[#allocation238_spill] sm:$0xff] %v6258_v18  ;;  %1861 = vrot.lane.b32.xlu1 %v5586_v20, %s4789_s26  ;;  %v6281_v18 = vld [vmem:[%s4844_s22 + $0x120] sm:$0xf] }
 0x1c0   : > { %1859 = vrot.lane.b32.xlu0 %v5564_v29, %s4789_s26  ;;  %v8793_v29 = vld [vmem:[#allocation18_spill] sm:$0xff] }
 0x1c1   : > { %v6264_v9 = vpop.permute.xlu1 %1718 }
 0x1c2   : > { %8717 = vst [vmem:[#allocation239_spill] sm:$0xff] %v6264_v9  ;;  %v6266_v25 = vpop.permute.xlu0 %1716 }
 0x1c3   : > { %8718 = vst [vmem:[#allocation240_spill] sm:$0xff] %v6266_v25  ;;  %1865 = vrot.lane.b32.xlu1 %v5602_v54, %s4789_s26  ;;  %v4272_v25 = vcombine.low %v6281_v18, %v6281_v18 }
 0x1c4   : > { %1863 = vrot.lane.b32.xlu0 %v5580_v0, %s4789_s26  ;;  %v8762_v0 = vld [vmem:[#allocation165_spill] sm:$0xff] }
 0x1c5   : > { %v6272_v21 = vpop.permute.xlu1 %1722 }
 0x1c6   : > { %8719 = vst [vmem:[#allocation241_spill] sm:$0xff] %v6272_v21  ;;  %v6274_v34 = vpop.permute.xlu0 %1720 }
 0x1c7   : > { %8720 = vst [vmem:[#allocation242_spill] sm:$0xff] %v6274_v34  ;;  %1869 = vrot.lane.b32.xlu1 %v5621_v42, %s4789_s26 }
 0x1c8   : > { %1867 = vrot.lane.b32.xlu0 %v5596_v31, %s4789_s26  ;;  %v8739_v31 = vld [vmem:[#allocation46_spill] sm:$0xff] }
 0x1c9   : > { %v6285_v9 = vpop.permute.xlu1 %1726 }
 0x1ca   : > { %8721 = vst [vmem:[#allocation243_spill] sm:$0xff] %v6285_v9  ;;  %v6287_v1 = vpop.permute.xlu0 %1724 }
 0x1cb   : > { %8722 = vst [vmem:[#allocation244_spill] sm:$0xff] %v6287_v1  ;;  %1873 = vrot.lane.b32.xlu1 %v5637_v23, %s4789_s26 }
 0x1cc   : > { %1871 = vrot.lane.b32.xlu0 %v4272_v25, %s4789_s26 }
 0x1cd   : > { %v6292_v34 = vpop.permute.xlu1 %1730 }
 0x1ce   : > { %v6294_v21 = vpop.permute.xlu0 %1728 }
 0x1cf   : > { %1877 = vrot.lane.b32.xlu1 %v5653_v30, %s4789_s26  ;;  %v4688_v30 = vld [vmem:[%s4844_s22 + $0x168] sm:$0xf] }
 0x1d0   : > { %1875 = vrot.lane.b32.xlu0 %v5631_v2, %s4789_s26  ;;  %v4273_v23 = vcombine.low %v4688_v30, %v4688_v30 }
 0x1d1   : > { %v6300_v42 = vpop.permute.xlu1 %1734 }
 0x1d2   : > { %8723 = vst [vmem:[#allocation245_spill] sm:$0xff] %v6300_v42  ;;  %v6302_v9 = vpop.permute.xlu0 %1732  ;;  %v8800_v42 = vld [vmem:[#allocation22_spill] sm:$0xff] }
 0x1d3   : > { %8724 = vst [vmem:[#allocation246_spill] sm:$0xff] %v6302_v9  ;;  %1881 = vrot.lane.b32.xlu1 %v5669_v5, %s4789_s26 }
 0x1d4   : > { %1879 = vrot.lane.b32.xlu0 %v5647_v43, %s4789_s26 }
 0x1d5   : > { %v6308_v25 = vpop.permute.xlu1 %1738 }
 0x1d6   : > { %8725 = vst [vmem:[#allocation247_spill] sm:$0xff] %v6308_v25  ;;  %v6310_v1 = vpop.permute.xlu0 %1736  ;;  %v8754_v25 = vld [vmem:[#allocation61_spill] sm:$0xff] }
 0x1d7   : > { %8726 = vst [vmem:[#allocation248_spill] sm:$0xff] %v6310_v1  ;;  %1885 = vrot.lane.b32.xlu1 %v5688_v49, %s4789_s26  ;;  %v8751_v1 = vld [vmem:[#allocation57_spill] sm:$0xff] }
 0x1d8   : > { %1883 = vrot.lane.b32.xlu0 %v5663_v7, %s4789_s26 }
 0x1d9   : > { %v6317_v2 = vpop.permute.xlu1 %1742 }
 0x1da   : > { %8727 = vst [vmem:[#allocation249_spill] sm:$0xff] %v6317_v2  ;;  %v6319_v54 = vpop.permute.xlu0 %1740  ;;  %v8748_v2 = vld [vmem:[#allocation55_spill] sm:$0xff] }
 0x1db   : > { %8728 = vst [vmem:[#allocation250_spill] sm:$0xff] %v6319_v54  ;;  %1889 = vrot.lane.b32.xlu1 %v5704_v24, %s4789_s26  ;;  %v8747_v54 = vld [vmem:[#allocation54_spill] sm:$0xff] }
 0x1dc   : > { %1887 = vrot.lane.b32.xlu0 %v4273_v23, %s4789_s26 }
 0x1dd   : > { %v6324_v5 = vpop.permute.xlu1 %1746 }
 0x1de   : > { %8729 = vst [vmem:[#allocation251_spill] sm:$0xff] %v6324_v5  ;;  %v6326_v43 = vpop.permute.xlu0 %1744 }
 0x1df   : > { %8730 = vst [vmem:[#allocation252_spill] sm:$0xff] %v6326_v43  ;;  %1893 = vrot.lane.b32.xlu1 %v5720_v60, %s4789_s26  ;;  %v4689_v43 = vld [vmem:[%s4844_s22 + $0x1b0] sm:$0xf] }
 0x1e0   : > { %1891 = vrot.lane.b32.xlu0 %v5698_v63, %s4789_s26 }
 0x1e1   : > { %v6332_v30 = vpop.permute.xlu1 %1750 }
 0x1e2   : > { %8731 = vst [vmem:[#allocation253_spill] sm:$0xff] %v6332_v30  ;;  %v6334_v49 = vpop.permute.xlu0 %1748  ;;  %v4274_v30 = vcombine.low %v4689_v43, %v4689_v43 }
 0x1e3   : > { %8732 = vst [vmem:[#allocation254_spill] sm:$0xff] %v6334_v49  ;;  %1897 = vrot.lane.b32.xlu1 %v5736_v36, %s4789_s26 }
 0x1e4   : > { %1895 = vrot.lane.b32.xlu0 %v5714_v46, %s4789_s26 }
 0x1e5   : > { %v6340_v23 = vpop.permute.xlu1 %1754 }
 0x1e6   : > { %8733 = vst [vmem:[#allocation255_spill] sm:$0xff] %v6340_v23  ;;  %v6342_v7 = vpop.permute.xlu0 %1752 }
 0x1e7   : > { %8734 = vst [vmem:[#allocation256_spill] sm:$0xff] %v6342_v7  ;;  %1901 = vrot.lane.b32.xlu1 %v5755_v38, %s4789_s26 }
 0x1e8   : > { %1899 = vrot.lane.b32.xlu0 %v5730_v56, %s4789_s26 }
 0x1e9   : > { %v6349_v5 = vpop.permute.xlu1 %1758 }
 0x1ea   : > { %8735 = vst [vmem:[#allocation257_spill] sm:$0xff] %v6349_v5  ;;  %v6351_v49 = vpop.permute.xlu0 %1756 }
 0x1eb   : > { %8736 = vst [vmem:[#allocation258_spill] sm:$0xff] %v6351_v49  ;;  %1905 = vrot.lane.b32.xlu1 %v5771_v51, %s4789_s26  ;;  %v8743_v49 = vld [vmem:[#allocation49_spill] sm:$0xff] }
 0x1ec   : > { %1903 = vrot.lane.b32.xlu0 %v4274_v30, %s4789_s26  ;;  %v8744_v30 = vld [vmem:[#allocation51_spill] sm:$0xff] }
 0x1ed   : > { %v6356_v23 = vpop.permute.xlu1 %1762 }
 0x1ee   : > { %8737 = vst [vmem:[#allocation259_spill] sm:$0xff] %v6356_v23  ;;  %v6358_v7 = vpop.permute.xlu0 %1760 }
 0x1ef   : > { %8738 = vst [vmem:[#allocation260_spill] sm:$0xff] %v6358_v7  ;;  %1909 = vrot.lane.b32.xlu1 %v8739_v31, %s4789_s26 }
 0x1f0   : > { %1907 = vrot.lane.b32.xlu0 %v8740_v44, %s4789_s26 }
 0x1f1   : > { %v6364_v43 = vpop.permute.xlu1 %1766 }
 0x1f2   : > { %8741 = vst [vmem:[#allocation46_spill] sm:$0xff] %v6364_v43  ;;  %v6366_v5 = vpop.permute.xlu0 %1764  ;;  %v4690_v43 = vld [vmem:[%s4844_s22 + $0x1f8] sm:$0xf] }
 0x1f3   : > { %8742 = vst [vmem:[#allocation47_spill] sm:$0xff] %v6366_v5  ;;  %1913 = vrot.lane.b32.xlu1 %v8743_v49, %s4789_s26  ;;  %v4275_v3 = vcombine.low %v4690_v43, %v4690_v43  ;;  %v8755_v43 = vld [vmem:[#allocation62_spill] sm:$0xff] }
 0x1f4   : > { %1911 = vrot.lane.b32.xlu0 %v8744_v30, %s4789_s26 }
 0x1f5   : > { %v6372_v23 = vpop.permute.xlu1 %1770 }
 0x1f6   : > { %8745 = vst [vmem:[#allocation49_spill] sm:$0xff] %v6372_v23  ;;  %v6374_v7 = vpop.permute.xlu0 %1768 }
 0x1f7   : > { %8746 = vst [vmem:[#allocation51_spill] sm:$0xff] %v6374_v7  ;;  %1917 = vrot.lane.b32.xlu1 %v8747_v54, %s4789_s26 }
 0x1f8   : > { %1915 = vrot.lane.b32.xlu0 %v8748_v2, %s4789_s26 }
 0x1f9   : > { %v6381_v14 = vpop.permute.xlu1 %1774 }
 0x1fa   : > { %8749 = vst [vmem:[#allocation54_spill] sm:$0xff] %v6381_v14  ;;  %v6383_v5 = vpop.permute.xlu0 %1772 }
 0x1fb   : > { %8750 = vst [vmem:[#allocation55_spill] sm:$0xff] %v6383_v5  ;;  %1921 = vrot.lane.b32.xlu1 %v8751_v1, %s4789_s26  ;;  %v464_v5 = vld [vmem:[%s6403_s30 + $0x8] sm:$0xf]  ;;  %v466_v1 = vld [vmem:[%s6403_s30 + $0x10] sm:$0xf] }
 0x1fc   : > { %1919 = vrot.lane.b32.xlu0 %v4275_v3, %s4789_s26  ;;  %v6419_v28 = vcombine.low %v464_v5, %v464_v5  ;;  %v6434_v5 = vcombine.low %v466_v1, %v466_v1  ;;  %v474_v1 = vld [vmem:[%s6403_s30 + $0x30] sm:$0xf] }
 0x1fd   : > { %v6388_v23 = vpop.permute.xlu1 %1778 }
 0x1fe   : > { %8752 = vst [vmem:[#allocation261_spill] sm:$0xff] %v6388_v23  ;;  %v6390_v7 = vpop.permute.xlu0 %1776  ;;  %v8759_v23 = vld [vmem:[#allocation158_spill] sm:$0xff]  ;;  %8763 = vst [vmem:[#allocation267_spill] sm:$0xff] %v6419_v28 }
 0x1ff   : > { %8753 = vst [vmem:[#allocation262_spill] sm:$0xff] %v6390_v7  ;;  %1925 = vrot.lane.b32.xlu1 %v8754_v25, %s4789_s26  ;;  %v8758_v7 = vld [vmem:[#allocation65_spill] sm:$0xff]  ;;  %v462_v25 = vld [vmem:[%s6403_s30] sm:$0xf]  ;;  %8768 = vst [vmem:[#allocation271_spill] sm:$0xff] %v6434_v5 }
 0x200   : > { %1923 = vrot.lane.b32.xlu0 %v8755_v43, %s4789_s26 }
 0x201   : > { %v6398_v14 = vpop.permute.xlu1 %1782 }
 0x202   : > { %8756 = vst [vmem:[#allocation263_spill] sm:$0xff] %v6398_v14  ;;  %v6405_v3 = vpop.permute.xlu0 %1780 }
 0x203   : > { %8757 = vst [vmem:[#allocation264_spill] sm:$0xff] %v6405_v3  ;;  %1929 = vrot.lane.b32.xlu1 %v8758_v7, %s4789_s26  ;;  %v8764_v3 = vld [vmem:[#allocation161_spill] sm:$0xff]  ;;  %v4276_v7 = vcombine.low %v462_v25, %v462_v25  ;;  %v470_v25 = vld [vmem:[%s6403_s30 + $0x20] sm:$0xf] }
 0x204   : > { %1927 = vrot.lane.b32.xlu0 %v8759_v23, %s4789_s26 }
 0x205   : > { %v6412_v14 = vpop.permute.xlu1 %1786 }
 0x206   : > { %8760 = vst [vmem:[#allocation265_spill] sm:$0xff] %v6412_v14  ;;  %v6415_v20 = vpop.permute.xlu0 %1784 }
 0x207   : > { %8761 = vst [vmem:[#allocation266_spill] sm:$0xff] %v6415_v20  ;;  %1933 = vrot.lane.b32.xlu1 %v8762_v0, %s4789_s26  ;;  %v6431_v20 = vcombine.low %v468_v39, %v468_v39  ;;  %v472_v0 = vld [vmem:[%s6403_s30 + $0x28] sm:$0xf]  ;;  %v6448_v39 = vcombine.low %v470_v25, %v470_v25 }
 0x208   : > { %1931 = vrot.lane.b32.xlu0 %v8764_v3, %s4789_s26 }
 0x209   : > { %v6424_v23 = vpop.permute.xlu1 %1790  ;;  %8767 = vst [vmem:[#allocation270_spill] sm:$0xff] %v6431_v20  ;;  %8770 = vst [vmem:[#allocation273_spill] sm:$0xff] %v6448_v39 }
 0x20a   : > { %8765 = vst [vmem:[#allocation268_spill] sm:$0xff] %v6424_v23  ;;  %v6427_v14 = vpop.permute.xlu0 %1788  ;;  %v6444_v23 = vcombine.low %v472_v0, %v472_v0  ;;  %v6462_v0 = vcombine.low %v474_v1, %v474_v1 }
 0x20b   : > { %8766 = vst [vmem:[#allocation269_spill] sm:$0xff] %v6427_v14  ;;  %1937 = vrot.lane.b32.xlu1 %v6419_v28, %s4789_s26  ;;  %v476_v14 = vld [vmem:[%s6403_s30 + $0x38] sm:$0xf] }
 0x20c   : > { %1935 = vrot.lane.b32.xlu0 %v4276_v7, %s4789_s26  ;;  %8769 = vst [vmem:[#allocation272_spill] sm:$0xff] %v6444_v23  ;;  %v6458_v19 = vcombine.low %v476_v14, %v476_v14  ;;  %8774 = vst [vmem:[#allocation277_spill] sm:$0xff] %v6462_v0  ;;  %v8779_v14 = vld [vmem:[#allocation10_spill] sm:$0xff] }
 0x20d   : > { %v6437_v3 = vpop.permute.xlu1 %1825 }
 0x20e   : > { %v6440_v43 = vpop.permute.xlu0 %1823  ;;  %8773 = vst [vmem:[#allocation276_spill] sm:$0xff] %v6458_v19 }
 0x20f   : > { %1941 = vrot.lane.b32.xlu1 %v6431_v20, %s4789_s26 }
 0x210   : > { %1939 = vrot.lane.b32.xlu0 %v6434_v5, %s4789_s26 }
 0x211   : > { %v6451_v7 = vpop.permute.xlu1 %1829 }
 0x212   : > { %8771 = vst [vmem:[#allocation274_spill] sm:$0xff] %v6451_v7  ;;  %v6454_v28 = vpop.permute.xlu0 %1827 }
 0x213   : > { %8772 = vst [vmem:[#allocation275_spill] sm:$0xff] %v6454_v28  ;;  %1945 = vrot.lane.b32.xlu1 %v6444_v23, %s4789_s26  ;;  %v8804_v28 = vld [vmem:[#allocation24_spill] sm:$0xff] }
 0x214   : > { %1943 = vrot.lane.b32.xlu0 %v6448_v39, %s4789_s26 }
 0x215   : > { %v6464_v20 = vpop.permute.xlu1 %1833 }
 0x216   : > { %8775 = vst [vmem:[#allocation278_spill] sm:$0xff] %v6464_v20  ;;  %v6466_v25 = vpop.permute.xlu0 %1831 }
 0x217   : > { %8776 = vst [vmem:[#allocation279_spill] sm:$0xff] %v6466_v25  ;;  %1949 = vrot.lane.b32.xlu1 %v6458_v19, %s4789_s26  ;;  %v8789_v25 = vld [vmem:[#allocation16_spill] sm:$0xff] }
 0x218   : > { %1947 = vrot.lane.b32.xlu0 %v6462_v0, %s4789_s26 }
 0x219   : > { %v6472_v5 = vpop.permute.xlu1 %1837 }
 0x21a   : > { %8777 = vst [vmem:[#allocation280_spill] sm:$0xff] %v6472_v5  ;;  %v6474_v23 = vpop.permute.xlu0 %1835  ;;  %v8785_v5 = vld [vmem:[#allocation14_spill] sm:$0xff] }
 0x21b   : > { %8778 = vst [vmem:[#allocation281_spill] sm:$0xff] %v6474_v23  ;;  %2033 = vrot.lane.b32.xlu1 %v8599_v41, %s4790_s5  ;;  %v8784_v23 = vld [vmem:[#allocation13_spill] sm:$0xff] }
 0x21c   : > { %2031 = vrot.lane.b32.xlu0 %v8779_v14, %s4790_s5 }
 0x21d   : > { %v6480_v1 = vpop.permute.xlu1 %1841 }
 0x21e   : > { %8780 = vst [vmem:[#allocation10_spill] sm:$0xff] %v6480_v1  ;;  %v6482_v39 = vpop.permute.xlu0 %1839 }
 0x21f   : > { %8781 = vst [vmem:[#allocation282_spill] sm:$0xff] %v6482_v39  ;;  %2037 = vrot.lane.b32.xlu1 %v8603_v13, %s4790_s5  ;;  %v8788_v39 = vld [vmem:[#allocation15_spill] sm:$0xff] }
 0x220   : > { %2035 = vrot.lane.b32.xlu0 %v8598_v58, %s4790_s5 }
 0x221   : > { %v6488_v19 = vpop.permute.xlu1 %1845 }
 0x222   : > { %8782 = vst [vmem:[#allocation283_spill] sm:$0xff] %v6488_v19  ;;  %v6490_v0 = vpop.permute.xlu0 %1843 }
 0x223   : > { %8783 = vst [vmem:[#allocation284_spill] sm:$0xff] %v6490_v0  ;;  %2041 = vrot.lane.b32.xlu1 %v8784_v23, %s4790_s5  ;;  %v8792_v0 = vld [vmem:[#allocation17_spill] sm:$0xff] }
 0x224   : > { %2039 = vrot.lane.b32.xlu0 %v8785_v5, %s4790_s5 }
 0x225   : > { %v6496_v14 = vpop.permute.xlu1 %1849 }
 0x226   : > { %8786 = vst [vmem:[#allocation13_spill] sm:$0xff] %v6496_v14  ;;  %v6498_v1 = vpop.permute.xlu0 %1847 }
 0x227   : > { %8787 = vst [vmem:[#allocation14_spill] sm:$0xff] %v6498_v1  ;;  %2045 = vrot.lane.b32.xlu1 %v8788_v39, %s4790_s5  ;;  %v8796_v1 = vld [vmem:[#allocation20_spill] sm:$0xff] }
 0x228   : > { %2043 = vrot.lane.b32.xlu0 %v8789_v25, %s4790_s5 }
 0x229   : > { %v6504_v20 = vpop.permute.xlu1 %1853 }
 0x22a   : > { %8790 = vst [vmem:[#allocation15_spill] sm:$0xff] %v6504_v20  ;;  %v6506_v19 = vpop.permute.xlu0 %1851 }
 0x22b   : > { %8791 = vst [vmem:[#allocation16_spill] sm:$0xff] %v6506_v19  ;;  %2049 = vrot.lane.b32.xlu1 %v8792_v0, %s4790_s5  ;;  %v8799_v19 = vld [vmem:[#allocation21_spill] sm:$0xff] }
 0x22c   : > { %2047 = vrot.lane.b32.xlu0 %v8793_v29, %s4790_s5 }
 0x22d   : > { %v6512_v22 = vpop.permute.xlu1 %1857 }
 0x22e   : > { %8794 = vst [vmem:[#allocation17_spill] sm:$0xff] %v6512_v22  ;;  %v6514_v14 = vpop.permute.xlu0 %1855 }
 0x22f   : > { %8795 = vst [vmem:[#allocation18_spill] sm:$0xff] %v6514_v14  ;;  %2053 = vrot.lane.b32.xlu1 %v8619_v17, %s4790_s5  ;;  %v8803_v14 = vld [vmem:[#allocation23_spill] sm:$0xff] }
 0x230   : > { %2051 = vrot.lane.b32.xlu0 %v8796_v1, %s4790_s5 }
 0x231   : > { %v6520_v9 = vpop.permute.xlu1 %1861 }
 0x232   : > { %8797 = vst [vmem:[#allocation20_spill] sm:$0xff] %v6520_v9  ;;  %v6522_v20 = vpop.permute.xlu0 %1859 }
 0x233   : > { %8798 = vst [vmem:[#allocation285_spill] sm:$0xff] %v6522_v20  ;;  %2057 = vrot.lane.b32.xlu1 %v8799_v19, %s4790_s5  ;;  %v8807_v20 = vld [vmem:[#allocation25_spill] sm:$0xff]  ;;  %v8808_v19 = vld [vmem:[#allocation26_spill] sm:$0xff] }
 0x234   : > { %2055 = vrot.lane.b32.xlu0 %v8800_v42, %s4790_s5 }
 0x235   : > { %v6528_v29 = vpop.permute.xlu1 %1865 }
 0x236   : > { %8801 = vst [vmem:[#allocation22_spill] sm:$0xff] %v6528_v29  ;;  %v6530_v22 = vpop.permute.xlu0 %1863 }
 0x237   : > { %8802 = vst [vmem:[#allocation286_spill] sm:$0xff] %v6530_v22  ;;  %2061 = vrot.lane.b32.xlu1 %v8803_v14, %s4790_s5  ;;  %v8811_v22 = vld [vmem:[#allocation27_spill] sm:$0xff]  ;;  %v8812_v14 = vld [vmem:[#allocation28_spill] sm:$0xff] }
 0x238   : > { %2059 = vrot.lane.b32.xlu0 %v8804_v28, %s4790_s5 }
 0x239   : > { %v6536_v7 = vpop.permute.xlu1 %1869 }
 0x23a   : > { %8805 = vst [vmem:[#allocation287_spill] sm:$0xff] %v6536_v7  ;;  %v6538_v9 = vpop.permute.xlu0 %1867 }
 0x23b   : > { %8806 = vst [vmem:[#allocation288_spill] sm:$0xff] %v6538_v9  ;;  %2065 = vrot.lane.b32.xlu1 %v8807_v20, %s4790_s5  ;;  %v8815_v9 = vld [vmem:[#allocation29_spill] sm:$0xff]  ;;  %v8816_v20 = vld [vmem:[#allocation30_spill] sm:$0xff] }
 0x23c   : > { %2063 = vrot.lane.b32.xlu0 %v8808_v19, %s4790_s5 }
 0x23d   : > { %v6544_v15 = vpop.permute.xlu1 %1873 }
 0x23e   : > { %8809 = vst [vmem:[#allocation26_spill] sm:$0xff] %v6544_v15  ;;  %v6546_v29 = vpop.permute.xlu0 %1871 }
 0x23f   : > { %8810 = vst [vmem:[#allocation289_spill] sm:$0xff] %v6546_v29  ;;  %2069 = vrot.lane.b32.xlu1 %v8811_v22, %s4790_s5  ;;  %v8819_v29 = vld [vmem:[#allocation31_spill] sm:$0xff]  ;;  %v8820_v22 = vld [vmem:[#allocation32_spill] sm:$0xff] }
 0x240   : > { %2067 = vrot.lane.b32.xlu0 %v8812_v14, %s4790_s5 }
 0x241   : > { %v6552_v28 = vpop.permute.xlu1 %1877 }
 0x242   : > { %8813 = vst [vmem:[#allocation290_spill] sm:$0xff] %v6552_v28  ;;  %v6554_v7 = vpop.permute.xlu0 %1875 }
 0x243   : > { %8814 = vst [vmem:[#allocation291_spill] sm:$0xff] %v6554_v7  ;;  %2073 = vrot.lane.b32.xlu1 %v8815_v9, %s4790_s5  ;;  %v8823_v7 = vld [vmem:[#allocation33_spill] sm:$0xff]  ;;  %v8824_v9 = vld [vmem:[#allocation34_spill] sm:$0xff] }
 0x244   : > { %2071 = vrot.lane.b32.xlu0 %v8816_v20, %s4790_s5 }
 0x245   : > { %v6560_v19 = vpop.permute.xlu1 %1881 }
 0x246   : > { %8817 = vst [vmem:[#allocation292_spill] sm:$0xff] %v6560_v19  ;;  %v6562_v15 = vpop.permute.xlu0 %1879 }
 0x247   : > { %8818 = vst [vmem:[#allocation293_spill] sm:$0xff] %v6562_v15  ;;  %2077 = vrot.lane.b32.xlu1 %v8819_v29, %s4790_s5  ;;  %v8825_v15 = vld [vmem:[#allocation36_spill] sm:$0xff]  ;;  %v8829_v29 = vld [vmem:[#allocation38_spill] sm:$0xff] }
 0x248   : > { %2075 = vrot.lane.b32.xlu0 %v8820_v22, %s4790_s5 }
 0x249   : > { %v6568_v14 = vpop.permute.xlu1 %1885 }
 0x24a   : > { %8821 = vst [vmem:[#allocation294_spill] sm:$0xff] %v6568_v14  ;;  %v6570_v28 = vpop.permute.xlu0 %1883 }
 0x24b   : > { %8822 = vst [vmem:[#allocation295_spill] sm:$0xff] %v6570_v28  ;;  %2081 = vrot.lane.b32.xlu1 %v8823_v7, %s4790_s5  ;;  %v4669_v28 = vld [vmem:[%s8207_s2 + $0x38] sm:$0xff]  }
 0x24c   : > { %2079 = vrot.lane.b32.xlu0 %v8824_v9, %s4790_s5  ;;  %4380 = vmatprep.subr.bf16.mxu0 %v4669_v28  ;;  %v8828_v9 = vld [vmem:[#allocation37_spill] sm:$0xff] }
 0x24d   : > { %v6576_v20 = vpop.permute.xlu1 %1889  ;;  %4460 = vmatprep.subr.bf16.mxu1 %v4669_v28  ;;  %4381 = vmatpush3.bf16.msra.mxu0 %v4669_v28 }
 0x24e   : > { %v6578_v19 = vpop.permute.xlu0 %1887  ;;  %4468 = vmatpush3.bf16.msra.mxu1 %v4669_v28 }
 0x24f   : > { %2085 = vrot.lane.b32.xlu1 %v8651_v62, %s4790_s5  ;;  %v4670_v62 = vld [vmem:[%s8207_s2 + $0x30] sm:$0xff]  }
 0x250   : > { %2083 = vrot.lane.b32.xlu0 %v8825_v15, %s4790_s5  ;;  %4382 = vmatprep.subr.bf16.mxu0 %v4670_v62 }
 0x251   : > { %v6587_v14 = vpop.permute.xlu1 %1893  ;;  %4461 = vmatprep.subr.bf16.mxu1 %v4670_v62  ;;  %4383 = vmatpush3.bf16.msra.mxu0 %v4670_v62 }
 0x252   : > { %8826 = vst [vmem:[#allocation34_spill] sm:$0xff] %v6587_v14  ;;  %v6589_v7 = vpop.permute.xlu0 %1891  ;;  %4469 = vmatpush3.bf16.msra.mxu1 %v4670_v62 }
 0x253   : > { %8827 = vst [vmem:[#allocation296_spill] sm:$0xff] %v6589_v7  ;;  %2089 = vrot.lane.b32.xlu1 %v8828_v9, %s4790_s5  ;;  %v8832_v7 = vld [vmem:[#allocation39_spill] sm:$0xff]  ;;  %v8833_v9 = vld [vmem:[#allocation40_spill] sm:$0xff] }
 0x254   : > { %2087 = vrot.lane.b32.xlu0 %v8829_v29, %s4790_s5  ;;  %v4671_v29 = vld [vmem:[%s8207_s2 + $0x28] sm:$0xff]  }
 0x255   : > { %v6598_v15 = vpop.permute.xlu1 %1897  ;;  %4384 = vmatprep.subr.bf16.mxu0 %v4671_v29  ;;  %4462 = vmatprep.subr.bf16.mxu1 %v4671_v29 }
 0x256   : > { %8830 = vst [vmem:[#allocation297_spill] sm:$0xff] %v6598_v15  ;;  %v6600_v22 = vpop.permute.xlu0 %1895  ;;  %4385 = vmatpush3.bf16.msra.mxu0 %v4671_v29  ;;  %4470 = vmatpush3.bf16.msra.mxu1 %v4671_v29 }
 0x257   : > { %8831 = vst [vmem:[#allocation298_spill] sm:$0xff] %v6600_v22  ;;  %2093 = vrot.lane.b32.xlu1 %v8832_v7, %s4790_s5  ;;  %v8836_v22 = vld [vmem:[#allocation41_spill] sm:$0xff]  ;;  %v8837_v7 = vld [vmem:[#allocation42_spill] sm:$0xff] }
 0x258   : > { %2091 = vrot.lane.b32.xlu0 %v8833_v9, %s4790_s5  ;;  %v4672_v9 = vld [vmem:[%s8207_s2 + $0x20] sm:$0xff]  }
 0x259   : > { %v6609_v14 = vpop.permute.xlu1 %1901  ;;  %4386 = vmatprep.subr.bf16.mxu0 %v4672_v9  ;;  %4463 = vmatprep.subr.bf16.mxu1 %v4672_v9 }
 0x25a   : > { %8834 = vst [vmem:[#allocation299_spill] sm:$0xff] %v6609_v14  ;;  %v6611_v28 = vpop.permute.xlu0 %1899  ;;  %4387 = vmatpush3.bf16.msra.mxu0 %v4672_v9  ;;  %4471 = vmatpush3.bf16.msra.mxu1 %v4672_v9 }
 0x25b   : > { %8835 = vst [vmem:[#allocation300_spill] sm:$0xff] %v6611_v28  ;;  %2097 = vrot.lane.b32.xlu1 %v8836_v22, %s4790_s5  ;;  %v8839_v28 = vld [vmem:[#allocation45_spill] sm:$0xff] }
 0x25c   : > { %2095 = vrot.lane.b32.xlu0 %v8837_v7, %s4790_s5  ;;  %v4673_v7 = vld [vmem:[%s8207_s2 + $0x18] sm:$0xff]  }
 0x25d   : > { %v6620_v15 = vpop.permute.xlu1 %1905  ;;  %4388 = vmatprep.subr.bf16.mxu0 %v4673_v7  ;;  %4464 = vmatprep.subr.bf16.mxu1 %v4673_v7 }
 0x25e   : > { %v6622_v62 = vpop.permute.xlu0 %1903  ;;  %4389 = vmatpush3.bf16.msra.mxu0 %v4673_v7  ;;  %4472 = vmatpush3.bf16.msra.mxu1 %v4673_v7 }
 0x25f   : > { %8838 = vst [vmem:[#allocation41_spill] sm:$0xff] %v6622_v62  ;;  %2101 = vrot.lane.b32.xlu1 %v8667_v32, %s4790_s5  ;;  %v4674_v62 = vld [vmem:[%s8207_s2 + $0x10] sm:$0xff]  }
 0x260   : > { %2099 = vrot.lane.b32.xlu0 %v8839_v28, %s4790_s5  ;;  %4390 = vmatprep.subr.bf16.mxu0 %v4674_v62 }
 0x261   : > { %v6631_v14 = vpop.permute.xlu1 %1909  ;;  %4465 = vmatprep.subr.bf16.mxu1 %v4674_v62 }
 0x262   : > { %8840 = vst [vmem:[#allocation42_spill] sm:$0xff] %v6631_v14  ;;  %v6633_v29 = vpop.permute.xlu0 %1907  ;;  %4391 = vmatpush3.bf16.msra.mxu0 %v4674_v62  ;;  %4473 = vmatpush3.bf16.msra.mxu1 %v4674_v62 }
 0x263   : > { %2164 = vrot.lane.b32.xlu1 %v5431_v12, %s4791_s20  ;;  %v4675_v12 = vld [vmem:[%s8207_s2 + $0x8] sm:$0xff]  }
 0x264   : > { %2162 = vrot.lane.b32.xlu0 %v5436_v26, %s4791_s20  ;;  %4392 = vmatprep.subr.bf16.mxu0 %v4675_v12 }
 0x265   : > { %v6642_v9 = vpop.permute.xlu1 %1913  ;;  %4466 = vmatprep.subr.bf16.mxu1 %v4675_v12 }
 0x266   : > { %v6644_v14 = vpop.permute.xlu0 %1911  ;;  %4393 = vmatpush3.bf16.msra.mxu0 %v4675_v12  ;;  %4474 = vmatpush3.bf16.msra.mxu1 %v4675_v12 }
 0x267   : > { %2228 = vrot.lane.b32.xlu1 %v5698_v63, %s4791_s20 }
 0x268   : > { %2226 = vrot.lane.b32.xlu0 %v5704_v24, %s4791_s20  ;;  %v4676_v24 = vld [vmem:[%s8207_s2] sm:$0xff]  }
 0x269   : > { %v6653_v26 = vpop.permute.xlu1 %1917  ;;  %4394 = vmatprep.subr.bf16.mxu0 %v4676_v24  ;;  %4467 = vmatprep.subr.bf16.mxu1 %v4676_v24 }
 0x26a   : > { %v6655_v7 = vpop.permute.xlu0 %1915  ;;  %4395 = vmatpush3.bf16.msra.mxu0 %v4676_v24  ;;  %4475 = vmatpush3.bf16.msra.mxu1 %v4676_v24  ;;  %v8853_v24 = vld [vmem:[#allocation48_spill] sm:$0xff] }
 0x26b   : > { %2168 = vrot.lane.b32.xlu1 %v5446_v37, %s4791_s20 }
 0x26c   : > { %2166 = vrot.lane.b32.xlu0 %v5452_v55, %s4791_s20 }
 0x26d   : > { %v6664_v63 = vpop.permute.xlu1 %1921 }
 0x26e   : > { %8841 = vst [vmem:[#allocation45_spill] sm:$0xff] %v6664_v63  ;;  %v6666_v62 = vpop.permute.xlu0 %1919 }
 0x26f   : > { %8842 = vst [vmem:[#allocation301_spill] sm:$0xff] %v6666_v62  ;;  %2232 = vrot.lane.b32.xlu1 %v5714_v46, %s4791_s20 }
 0x270   : > { %2230 = vrot.lane.b32.xlu0 %v5720_v60, %s4791_s20 }
 0x271   : > { %v6672_v37 = vpop.permute.xlu1 %1925 }
 0x272   : > { %8843 = vst [vmem:[#allocation302_spill] sm:$0xff] %v6672_v37  ;;  %v6674_v55 = vpop.permute.xlu0 %1923 }
 0x273   : > { %8844 = vst [vmem:[#allocation303_spill] sm:$0xff] %v6674_v55  ;;  %2302 = vrot.lane.b32.xlu1 %v8598_v58, %s4792_s28 }
 0x274   : > { %2300 = vrot.lane.b32.xlu0 %v8599_v41, %s4792_s28 }
 0x275   : > { %v6680_v12 = vpop.permute.xlu1 %1929 }
 0x276   : > { %8845 = vst [vmem:[#allocation304_spill] sm:$0xff] %v6680_v12  ;;  %v6682_v62 = vpop.permute.xlu0 %1927 }
 0x277   : > { %8846 = vst [vmem:[#allocation305_spill] sm:$0xff] %v6682_v62  ;;  %2366 = vrot.lane.b32.xlu1 %v8839_v28, %s4792_s28  ;;  %v8864_v62 = vld [vmem:[#allocation56_spill] sm:$0xff] }
 0x278   : > { %2364 = vrot.lane.b32.xlu0 %v8836_v22, %s4792_s28 }
 0x279   : > { %v6688_v46 = vpop.permute.xlu1 %1933 }
 0x27a   : > { %8847 = vst [vmem:[#allocation306_spill] sm:$0xff] %v6688_v46  ;;  %v6690_v60 = vpop.permute.xlu0 %1931  ;;  %v8863_v46 = vld [vmem:[#allocation205_spill] sm:$0xff] }
 0x27b   : > { %8848 = vst [vmem:[#allocation307_spill] sm:$0xff] %v6690_v60  ;;  %2306 = vrot.lane.b32.xlu1 %v8785_v5, %s4792_s28  ;;  %v8862_v60 = vld [vmem:[#allocation172_spill] sm:$0xff] }
 0x27c   : > { %2304 = vrot.lane.b32.xlu0 %v8603_v13, %s4792_s28 }
 0x27d   : > { %v6696_v58 = vpop.permute.xlu1 %1937 }
 0x27e   : > { %8849 = vst [vmem:[#allocation308_spill] sm:$0xff] %v6696_v58  ;;  %v6698_v41 = vpop.permute.xlu0 %1935  ;;  %v8857_v58 = vld [vmem:[#allocation53_spill] sm:$0xff] }
 0x27f   : > { %8850 = vst [vmem:[#allocation309_spill] sm:$0xff] %v6698_v41  ;;  %2370 = vrot.lane.b32.xlu1 %v8666_v35, %s4792_s28  ;;  %v8856_v41 = vld [vmem:[#allocation52_spill] sm:$0xff] }
 0x280   : > { %2368 = vrot.lane.b32.xlu0 %v8667_v32, %s4792_s28 }
 0x281   : > { %v6704_v22 = vpop.permute.xlu1 %1941 }
 0x282   : > { %8851 = vst [vmem:[#allocation310_spill] sm:$0xff] %v6704_v22  ;;  %v6706_v28 = vpop.permute.xlu0 %1939 }
 0x283   : > { %8852 = vst [vmem:[#allocation311_spill] sm:$0xff] %v6706_v28  ;;  %2105 = vrot.lane.b32.xlu1 %v8853_v24, %s4790_s5  ;;  %v8861_v28 = vld [vmem:[#allocation145_spill] sm:$0xff] }
 0x284   : > { %2103 = vrot.lane.b32.xlu0 %v8666_v35, %s4790_s5 }
 0x285   : > { %v6712_v13 = vpop.permute.xlu1 %1945 }
 0x286   : > { %8854 = vst [vmem:[#allocation48_spill] sm:$0xff] %v6712_v13  ;;  %v6714_v5 = vpop.permute.xlu0 %1943 }
 0x287   : > { %8855 = vst [vmem:[#allocation312_spill] sm:$0xff] %v6714_v5  ;;  %2109 = vrot.lane.b32.xlu1 %v8856_v41, %s4790_s5 }
 0x288   : > { %2107 = vrot.lane.b32.xlu0 %v8857_v58, %s4790_s5 }
 0x289   : > { %v6720_v32 = vpop.permute.xlu1 %1949 }
 0x28a   : > { %8858 = vst [vmem:[#allocation52_spill] sm:$0xff] %v6720_v32  ;;  %v6722_v22 = vpop.permute.xlu0 %1947 }
 0x28b   : > { %8859 = vst [vmem:[#allocation53_spill] sm:$0xff] %v6722_v22  ;;  %2172 = vrot.lane.b32.xlu1 %v5462_v45, %s4791_s20  ;;  %v8860_v22 = vld [vmem:[#allocation95_spill] sm:$0xff] }
 0x28c   : > { %2170 = vrot.lane.b32.xlu0 %v5468_v6, %s4791_s20 }
 0x28d   : > { %v6728_v35 = vpop.permute.xlu1 %2033 }
 0x28e   : > { %v6730_v13 = vpop.permute.xlu0 %2031 }
 0x28f   : > { %2236 = vrot.lane.b32.xlu1 %v5730_v56, %s4791_s20 }
 0x290   : > { %2234 = vrot.lane.b32.xlu0 %v5736_v36, %s4791_s20 }
 0x291   : > { %v6736_v5 = vpop.permute.xlu1 %2037 }
 0x292   : > { %v6738_v32 = vpop.permute.xlu0 %2035 }
 0x293   : > { %2176 = vrot.lane.b32.xlu1 %v8860_v22, %s4791_s20 }
 0x294   : > { %2174 = vrot.lane.b32.xlu0 %v5487_v4, %s4791_s20 }
 0x295   : > { %v6744_v45 = vpop.permute.xlu1 %2041 }
 0x296   : > { %v6746_v6 = vpop.permute.xlu0 %2039 }
 0x297   : > { %2240 = vrot.lane.b32.xlu1 %v8861_v28, %s4791_s20 }
 0x298   : > { %2238 = vrot.lane.b32.xlu0 %v5755_v38, %s4791_s20 }
 0x299   : > { %v6752_v56 = vpop.permute.xlu1 %2045 }
 0x29a   : > { %v6754_v36 = vpop.permute.xlu0 %2043 }
 0x29b   : > { %2310 = vrot.lane.b32.xlu1 %v8789_v25, %s4792_s28 }
 0x29c   : > { %2308 = vrot.lane.b32.xlu0 %v8784_v23, %s4792_s28 }
 0x29d   : > { %v6760_v4 = vpop.permute.xlu1 %2049 }
 0x29e   : > { %v6762_v22 = vpop.permute.xlu0 %2047 }
 0x29f   : > { %2374 = vrot.lane.b32.xlu1 %v8857_v58, %s4792_s28 }
 0x2a0   : > { %2372 = vrot.lane.b32.xlu0 %v8853_v24, %s4792_s28 }
 0x2a1   : > { %v6768_v38 = vpop.permute.xlu1 %2053 }
 0x2a2   : > { %v6770_v28 = vpop.permute.xlu0 %2051 }
 0x2a3   : > { %2314 = vrot.lane.b32.xlu1 %v8862_v60, %s4792_s28  ;;  %v8865_v60 = vld [vmem:[#allocation58_spill] sm:$0xff] }
 0x2a4   : > { %2312 = vrot.lane.b32.xlu0 %v8788_v39, %s4792_s28 }
 0x2a5   : > { %v6776_v23 = vpop.permute.xlu1 %2057 }
 0x2a6   : > { %v6778_v25 = vpop.permute.xlu0 %2055 }
 0x2a7   : > { %2378 = vrot.lane.b32.xlu1 %v8863_v46, %s4792_s28  ;;  %v8866_v46 = vld [vmem:[#allocation60_spill] sm:$0xff] }
 0x2a8   : > { %2376 = vrot.lane.b32.xlu0 %v8856_v41, %s4792_s28 }
 0x2a9   : > { %v6784_v58 = vpop.permute.xlu1 %2061 }
 0x2aa   : > { %v6786_v24 = vpop.permute.xlu0 %2059 }
 0x2ab   : > { %2113 = vrot.lane.b32.xlu1 %v8864_v62, %s4790_s5 }
 0x2ac   : > { %2111 = vrot.lane.b32.xlu0 %v8865_v60, %s4790_s5 }
 0x2ad   : > { %v6792_v39 = vpop.permute.xlu1 %2065 }
 0x2ae   : > { %v6794_v12 = vpop.permute.xlu0 %2063 }
 0x2af   : > { %2117 = vrot.lane.b32.xlu1 %v8683_v53, %s4790_s5 }
 0x2b0   : > { %2115 = vrot.lane.b32.xlu0 %v8866_v46, %s4790_s5 }
 0x2b1   : > { %v6800_v41 = vpop.permute.xlu1 %2069 }
 0x2b2   : > { %8867 = vst [vmem:[#allocation95_spill] sm:$0xff] %v6800_v41  ;;  %v6802_v55 = vpop.permute.xlu0 %2067 }
 0x2b3   : > { %2180 = vrot.lane.b32.xlu1 %v5497_v40, %s4791_s20 }
 0x2b4   : > { %2178 = vrot.lane.b32.xlu0 %v5503_v59, %s4791_s20 }
 0x2b5   : > { %v6808_v60 = vpop.permute.xlu1 %2073 }
 0x2b6   : > { %v6810_v37 = vpop.permute.xlu0 %2071 }
 0x2b7   : > { %2244 = vrot.lane.b32.xlu1 %v8740_v44, %s4791_s20 }
 0x2b8   : > { %2242 = vrot.lane.b32.xlu0 %v5771_v51, %s4791_s20 }
 0x2b9   : > { %v6816_v63 = vpop.permute.xlu1 %2077 }
 0x2ba   : > { %8868 = vst [vmem:[#allocation145_spill] sm:$0xff] %v6816_v63  ;;  %v6818_v41 = vpop.permute.xlu0 %2075 }
 0x2bb   : > { %8869 = vst [vmem:[#allocation172_spill] sm:$0xff] %v6818_v41  ;;  %2184 = vrot.lane.b32.xlu1 %v5513_v10, %s4791_s20 }
 0x2bc   : > { %2182 = vrot.lane.b32.xlu0 %v5519_v57, %s4791_s20 }
 0x2bd   : > { %v6824_v59 = vpop.permute.xlu1 %2081 }
 0x2be   : > { %8870 = vst [vmem:[#allocation205_spill] sm:$0xff] %v6824_v59  ;;  %v6826_v40 = vpop.permute.xlu0 %2079 }
 0x2bf   : > { %8871 = vst [vmem:[#allocation56_spill] sm:$0xff] %v6826_v40  ;;  %2248 = vrot.lane.b32.xlu1 %v8744_v30, %s4791_s20  ;;  %v8880_v40 = vld [vmem:[#allocation159_spill] sm:$0xff] }
 0x2c0   : > { %2246 = vrot.lane.b32.xlu0 %v8739_v31, %s4791_s20 }
 0x2c1   : > { %v6832_v44 = vpop.permute.xlu1 %2085 }
 0x2c2   : > { %8872 = vst [vmem:[#allocation58_spill] sm:$0xff] %v6832_v44  ;;  %v6834_v51 = vpop.permute.xlu0 %2083 }
 0x2c3   : > { %8873 = vst [vmem:[#allocation60_spill] sm:$0xff] %v6834_v51  ;;  %2318 = vrot.lane.b32.xlu1 %v8796_v1, %s4792_s28 }
 0x2c4   : > { %2316 = vrot.lane.b32.xlu0 %v8792_v0, %s4792_s28 }
 0x2c5   : > { %v6840_v10 = vpop.permute.xlu1 %2089 }
 0x2c6   : > { %8874 = vst [vmem:[#allocation313_spill] sm:$0xff] %v6840_v10  ;;  %v6842_v57 = vpop.permute.xlu0 %2087  ;;  %v8878_v10 = vld [vmem:[#allocation76_spill] sm:$0xff] }
 0x2c7   : > { %8875 = vst [vmem:[#allocation314_spill] sm:$0xff] %v6842_v57  ;;  %2382 = vrot.lane.b32.xlu1 %v8866_v46, %s4792_s28  ;;  %v4691_v57 = vld [vmem:[%s4844_s22 + $0x8] sm:$0xf] }
 0x2c8   : > { %2380 = vrot.lane.b32.xlu0 %v8864_v62, %s4792_s28  ;;  %v2434_v51 = vsel %vm2428_vm0, %v4691_v57, %v8878_v10 }
 0x2c9   : > { %v6848_v31 = vpop.permute.xlu1 %2093  ;;  %v2625_v59 = vsel %vm2621_vm1, %v2434_v51, %v8880_v40  ;;  %v8882_v40 = vld [vmem:[#allocation104_spill] sm:$0xff]  ;;  %v4693_v51 = vld [vmem:[%s4844_s22 + $0x128] sm:$0xf] }
 0x2ca   : > { %8876 = vst [vmem:[#allocation315_spill] sm:$0xff] %v6848_v31  ;;  %v6850_v30 = vpop.permute.xlu0 %2091  ;;  %v2754_v10 = vsel %vm2750_vm2, %v2625_v59, %v6158_v61 }
 0x2cb   : > { %8877 = vst [vmem:[#allocation316_spill] sm:$0xff] %v6850_v30  ;;  %2322 = vrot.lane.b32.xlu1 %v8800_v42, %s4792_s28 }
 0x2cc   : > { %2320 = vrot.lane.b32.xlu0 %v8619_v17, %s4792_s28 }
 0x2cd   : > { %v2098_v0 = vpop.permute.xlu1 %2097 }
 0x2ce   : > { %v6856_v1 = vpop.permute.xlu0 %2095 }
 0x2cf   : > { %2386 = vrot.lane.b32.xlu1 %v8682_v27, %s4792_s28 }
 0x2d0   : > { %2384 = vrot.lane.b32.xlu0 %v8683_v53, %s4792_s28 }
 0x2d1   : > { %v6862_v62 = vpop.permute.xlu1 %2101 }
 0x2d2   : > { %v6864_v46 = vpop.permute.xlu0 %2099 }
 0x2d3   : > { %2121 = vrot.lane.b32.xlu1 %v8687_v50, %s4790_s5 }
 0x2d4   : > { %2119 = vrot.lane.b32.xlu0 %v8682_v27, %s4790_s5 }
 0x2d5   : > { %v2165_v42 = vpop.permute.xlu1 %2164 }
 0x2d6   : > { %v2163_v17 = vpop.permute.xlu0 %2162 }
 0x2d7   : > { %2125 = vrot.lane.b32.xlu1 %v8690_v47, %s4790_s5 }
 0x2d8   : > { %2123 = vrot.lane.b32.xlu0 %v5331_v33, %s4790_s5 }
 0x2d9   : > { %v2229_v53 = vpop.permute.xlu1 %2228 }
 0x2da   : > { %v2227_v30 = vpop.permute.xlu0 %2226 }
 0x2db   : > { %2188 = vrot.lane.b32.xlu1 %v5529_v48, %s4791_s20  ;;  %v4692_v48 = vld [vmem:[%s4844_s22] sm:$0xf] }
 0x2dc   : > { %2186 = vrot.lane.b32.xlu0 %v5535_v11, %s4791_s20  ;;  %v8879_v11 = vld [vmem:[#allocation72_spill] sm:$0xff] }
 0x2dd   : > { %v6878_v31 = vpop.permute.xlu1 %2168  ;;  %v2431_v44 = vsel %vm2428_vm0, %v4692_v48, %v8879_v11  ;;  %v2883_v48 = vsel %vm2879_vm3, %v2754_v10, %v6437_v3  ;;  %v8883_v11 = vld [vmem:[#allocation113_spill] sm:$0xff] }
 0x2de   : > { %v6880_v27 = vpop.permute.xlu0 %2166  ;;  %v3012_v59 = vsel %vm3008_vm4, %v2883_v48, %v6728_v35 }
 0x2df   : > { %2252 = vrot.lane.b32.xlu1 %v8748_v2, %s4791_s20  ;;  %v8881_v2 = vld [vmem:[#allocation160_spill] sm:$0xff] }
 0x2e0   : > { %2250 = vrot.lane.b32.xlu0 %v8743_v49, %s4791_s20  ;;  %v2623_v63 = vsel %vm2621_vm1, %v2431_v44, %v8881_v2  ;;  %v2530_v44 = vsel %vm2428_vm0, %v4693_v51, %v8883_v11 }
 0x2e1   : > { %v6894_v41 = vpop.permute.xlu1 %2232  ;;  %v2752_v49 = vsel %vm2750_vm2, %v2623_v63, %v6160_v16  ;;  %v8884_v16 = vld [vmem:[#allocation114_spill] sm:$0xff]  ;;  %v8885_v63 = vld [vmem:[#allocation185_spill] sm:$0xff] }
 0x2e2   : > { %v6900_v57 = vpop.permute.xlu0 %2230  ;;  %v2881_v61 = vsel %vm2879_vm3, %v2752_v49, %v6440_v43  ;;  %v2527_v3 = vsel %vm2428_vm0, %v6281_v18, %v8884_v16  ;;  %v2689_v2 = vsel %vm2621_vm1, %v2530_v44, %v8885_v63  ;;  %v8886_v49 = vld [vmem:[#allocation186_spill] sm:$0xff] }
 0x2e3   : > { %2192 = vrot.lane.b32.xlu1 %v8882_v40, %s4791_s20  ;;  %v3010_v10 = vsel %vm3008_vm4, %v2881_v61, %v6730_v13  ;;  %v3141_v40 = vsel %vm3137_vm5, %v3012_v59, %v2165_v42  ;;  %v2687_v35 = vsel %vm2621_vm1, %v2527_v3, %v8886_v49  ;;  %v8887_v42 = vld [vmem:[#allocation153_spill] sm:$0xff]  ;;  %v8888_v59 = vld [vmem:[#allocation75_spill] sm:$0xff]  ;;  %v4695_v3 = vld [vmem:[%s4844_s22 + $0x10] sm:$0xf] }
 0x2e4   : > { %2190 = vrot.lane.b32.xlu0 %v5554_v8, %s4791_s20  ;;  %v2818_v8 = vsel %vm2750_vm2, %v2689_v2, %v6292_v34  ;;  %v3139_v48 = vsel %vm3137_vm5, %v3010_v10, %v2163_v17  ;;  %v2816_v11 = vsel %vm2750_vm2, %v2687_v35, %v6294_v21  ;;  %v4694_v61 = vld [vmem:[%s4844_s22 + $0x18] sm:$0xf]  ;;  %v8890_v2 = vld [vmem:[#allocation162_spill] sm:$0xff]  ;;  %v8891_v49 = vld [vmem:[#allocation163_spill] sm:$0xff] }
 0x2e5   : > { %v2303_v43 = vpop.permute.xlu1 %2302  ;;  %v2947_v13 = vsel %vm2879_vm3, %v2818_v8, %v6576_v20  ;;  %v2440_v34 = vsel %vm2428_vm0, %v4694_v61, %v8888_v59  ;;  %v2945_v17 = vsel %vm2879_vm3, %v2816_v11, %v6578_v19  ;;  %v8889_v20 = vld [vmem:[#allocation71_spill] sm:$0xff]  ;;  %v8894_v11 = vld [vmem:[#allocation24_spill] sm:$0xff] }
 0x2e6   : > { %v2301_v51 = vpop.permute.xlu0 %2300  ;;  %v3270_v18 = vsel %vm3266_vm6, %v3141_v40, %v2303_v43  ;;  %v3076_v16 = vsel %vm3008_vm4, %v2947_v13, %v2098_v0  ;;  %v2437_v63 = vsel %vm2428_vm0, %v4695_v3, %v8889_v20  ;;  %v2629_v10 = vsel %vm2621_vm1, %v2440_v34, %v8890_v2  ;;  %v8897_v34 = vld [vmem:[#allocation21_spill] sm:$0xff]  ;;  %v8899_v20 = vld [vmem:[#allocation187_spill] sm:$0xff] }
 0x2e7   : > { %2256 = vrot.lane.b32.xlu1 %v8887_v42, %s4791_s20  ;;  %v3268_v44 = vsel %vm3266_vm6, %v3139_v48, %v2301_v51  ;;  %v3074_v40 = vsel %vm3008_vm4, %v2945_v17, %v6856_v1  ;;  %v3205_v43 = vsel %vm3137_vm5, %v3076_v16, %v2229_v53  ;;  %v2627_v0 = vsel %vm2621_vm1, %v2437_v63, %v8891_v49  ;;  %v8892_v51 = vld [vmem:[#allocation215_spill] sm:$0xff]  ;;  %v8893_v1 = vld [vmem:[#allocation274_spill] sm:$0xff]  ;;  %v4696_v42 = vld [vmem:[%s4844_s22 + $0x138] sm:$0xf] }
 0x2e8   : > { %2254 = vrot.lane.b32.xlu0 %v8747_v54, %s4791_s20  ;;  %v4295_v21 = vcombine.low %v3268_v44, %v3270_v18  ;;  %v2758_v54 = vsel %vm2750_vm2, %v2629_v10, %v6166_v52  ;;  %v3203_v35 = vsel %vm3137_vm5, %v3074_v40, %v2227_v30  ;;  %v2756_v18 = vsel %vm2750_vm2, %v2627_v0, %v8892_v51  ;;  %v8895_v44 = vld [vmem:[#allocation117_spill] sm:$0xff]  ;;  %v8896_v30 = vld [vmem:[#allocation275_spill] sm:$0xff]  ;;  %v4697_v16 = vld [vmem:[%s4844_s22 + $0x130] sm:$0xf] }
 0x2e9   : > { %v2367_v19 = vpop.permute.xlu1 %2366  ;;  %v2887_v53 = vsel %vm2879_vm3, %v2758_v54, %v8893_v1  ;;  %v2536_v52 = vsel %vm2428_vm0, %v4696_v42, %v8895_v44  ;;  %v2885_v61 = vsel %vm2879_vm3, %v2756_v18, %v8896_v30  ;;  %v8904_v18 = vld [vmem:[#allocation296_spill] sm:$0xff] }
 0x2ea   : > { %4396 = vmatprep.mubr.bf16.mxu0 %v4295_v21  ;;  %v2365_v8 = vpop.permute.xlu0 %2364  ;;  %v3334_v48 = vsel %vm3266_vm6, %v3205_v43, %v2367_v19  ;;  %v3016_v59 = vsel %vm3008_vm4, %v2887_v53, %v6736_v5  ;;  %v8898_v21 = vld [vmem:[#allocation118_spill] sm:$0xff]  ;;  %v2693_v63 = vsel %vm2621_vm1, %v2536_v52, %v8899_v20  ;;  %v3014_v2 = vsel %vm3008_vm4, %v2885_v61, %v6738_v32  ;;  %v8900_v43 = vld [vmem:[#allocation188_spill] sm:$0xff]  ;;  %v8901_v19 = vld [vmem:[#allocation245_spill] sm:$0xff] }
 0x2eb   : > { %2326 = vrot.lane.b32.xlu1 %v8894_v11, %s4792_s28  ;;  %v3332_v13 = vsel %vm3266_vm6, %v3203_v35, %v2365_v8  ;;  %v2533_v3 = vsel %vm2428_vm0, %v4697_v16, %v8898_v21  ;;  %v3145_v10 = vsel %vm3137_vm5, %v3016_v59, %v6878_v31  ;;  %v2822_v49 = vsel %vm2750_vm2, %v2693_v63, %v8901_v19  ;;  %v8902_v8 = vld [vmem:[#allocation246_spill] sm:$0xff]  ;;  %v8905_v30 = vld [vmem:[#allocation180_spill] sm:$0xff]  ;;  %v8906_v61 = vld [vmem:[#allocation23_spill] sm:$0xff] }
 0x2ec   : > { %2324 = vrot.lane.b32.xlu0 %v8897_v34, %s4792_s28  ;;  %v4311_v17 = vcombine.low %v3332_v13, %v3334_v48  ;;  %v2691_v5 = vsel %vm2621_vm1, %v2533_v3, %v8900_v43  ;;  %v3143_v0 = vsel %vm3137_vm5, %v3014_v2, %v6880_v27  ;;  %v8903_v48 = vld [vmem:[#allocation34_spill] sm:$0xff]  ;;  %v8907_v59 = vld [vmem:[#allocation212_spill] sm:$0xff]  ;;  %v8910_v20 = vld [vmem:[#allocation69_spill] sm:$0xff] }
 0x2ed   : > { %v2307_v40 = vpop.permute.xlu1 %2306  ;;  %v2820_v32 = vsel %vm2750_vm2, %v2691_v5, %v8902_v8  ;;  %v2951_v31 = vsel %vm2879_vm3, %v2822_v49, %v8903_v48  ;;  %v8909_v16 = vld [vmem:[#allocation68_spill] sm:$0xff]  ;;  %v8911_v63 = vld [vmem:[#allocation70_spill] sm:$0xff]  ;;  %v4698_v49 = vld [vmem:[%s4844_s22 + $0x28] sm:$0xf] }
 0x2ee   : > { %v3274_v54 = vsel %vm3266_vm6, %v3145_v10, %v2307_v40  ;;  %4428 = vmatprep.mubr.bf16.mxu1 %v4311_v17  ;;  %v2305_v35 = vpop.permute.xlu0 %2304  ;;  %v2949_v1 = vsel %vm2879_vm3, %v2820_v32, %v8904_v18  ;;  %v3080_v27 = vsel %vm3008_vm4, %v2951_v31, %v6862_v62  ;;  %v8908_v17 = vld [vmem:[#allocation67_spill] sm:$0xff]  ;;  %v8913_v40 = vld [vmem:[#allocation108_spill] sm:$0xff]  ;;  %v8914_v19 = vld [vmem:[#allocation62_spill] sm:$0xff] }
 0x2ef   : > { %v3272_v51 = vsel %vm3266_vm6, %v3143_v0, %v2305_v35  ;;  %2390 = vrot.lane.b32.xlu1 %v5331_v33, %s4792_s28  ;;  %v3078_v11 = vsel %vm3008_vm4, %v2949_v1, %v6864_v46  ;;  %v3209_v13 = vsel %vm3137_vm5, %v3080_v27, %v6894_v41  ;;  %v8912_v10 = vld [vmem:[#allocation107_spill] sm:$0xff]  ;;  %v8916_v35 = vld [vmem:[#allocation57_spill] sm:$0xff]  ;;  %v4699_v8 = vld [vmem:[%s4844_s22 + $0x20] sm:$0xf] }
 0x2f0   : > { %v4296_v53 = vcombine.low %v3272_v51, %v3274_v54  ;;  %2388 = vrot.lane.b32.xlu0 %v8687_v50, %s4792_s28  ;;  %v3207_v33 = vsel %vm3137_vm5, %v3078_v11, %v6900_v57  ;;  %v8915_v0 = vld [vmem:[#allocation79_spill] sm:$0xff]  ;;  %v8917_v32 = vld [vmem:[#allocation80_spill] sm:$0xff]  ;;  %v8918_v31 = vld [vmem:[#allocation166_spill] sm:$0xff] }
 0x2f1   : > { %v2371_v42 = vpop.permute.xlu1 %2370  ;;  %v2446_v54 = vsel %vm2428_vm0, %v4698_v49, %v8915_v0  ;;  %v2443_v48 = vsel %vm2428_vm0, %v4699_v8, %v8917_v32  ;;  %v8919_v1 = vld [vmem:[#allocation167_spill] sm:$0xff]  ;;  %v8927_v49 = vld [vmem:[#allocation122_spill] sm:$0xff] }
 0x2f2   : > { %v3338_v44 = vsel %vm3266_vm6, %v3209_v13, %v2371_v42  ;;  %4397 = vmatmul.mubr.bf16.vlgmr.msra.gmra.mxu0 %v4296_v53  ;;  %v2369_v52 = vpop.permute.xlu0 %2368  ;;  %v2633_v51 = vsel %vm2621_vm1, %v2446_v54, %v8918_v31  ;;  %v2631_v27 = vsel %vm2621_vm1, %v2443_v48, %v8919_v1  ;;  %v8920_v53 = vld [vmem:[#allocation217_spill] sm:$0xff]  ;;  %v8921_v42 = vld [vmem:[#allocation218_spill] sm:$0xff]  ;;  %v8929_v31 = vld [vmem:[#allocation191_spill] sm:$0xff] }
 0x2f3   : > { %v3336_v62 = vsel %vm3266_vm6, %v3207_v33, %v2369_v52  ;;  %2330 = vrot.lane.b32.xlu1 %v8905_v30, %s4792_s28  ;;  %v2762_v11 = vsel %vm2750_vm2, %v2633_v51, %v8920_v53  ;;  %v2760_v33 = vsel %vm2750_vm2, %v2631_v27, %v8921_v42  ;;  %v4700_v30 = vld [vmem:[%s4844_s22 + $0x148] sm:$0xf]  ;;  %v8928_v54 = vld [vmem:[#allocation190_spill] sm:$0xff]  ;;  %v8931_v42 = vld [vmem:[#allocation248_spill] sm:$0xff] }
 0x2f4   : > { %v4312_v50 = vcombine.low %v3336_v62, %v3338_v44  ;;  %2328 = vrot.lane.b32.xlu0 %v8906_v61, %s4792_s28  ;;  %v8922_v44 = vld [vmem:[#allocation278_spill] sm:$0xff]  ;;  %v8923_v62 = vld [vmem:[#allocation111_spill] sm:$0xff] }
 0x2f5   : > { %v2106_v46 = vpop.permute.xlu1 %2105  ;;  %v2891_v52 = vsel %vm2879_vm3, %v2762_v11, %v8922_v44  ;;  %v8930_v51 = vld [vmem:[#allocation247_spill] sm:$0xff]  ;;  %v8932_v44 = vld [vmem:[#allocation297_spill] sm:$0xff] }
 0x2f6   : > { %4429 = vmatmul.mubr.bf16.vlgmr.msra.gmra.mxu1 %v4312_v50  ;;  %v2104_v41 = vpop.permute.xlu0 %2103  ;;  %v8924_v50 = vld [vmem:[#allocation121_spill] sm:$0xff] }
 0x2f7   : > { %2394 = vrot.lane.b32.xlu1 %v8907_v59, %s4792_s28  ;;  %v2542_v61 = vsel %vm2428_vm0, %v4700_v30, %v8924_v50  ;;  %v8925_v59 = vld [vmem:[#allocation279_spill] sm:$0xff]  ;;  %v8934_v30 = vld [vmem:[#allocation81_spill] sm:$0xff] }
 0x2f8   : > { %2392 = vrot.lane.b32.xlu0 %v8690_v47, %s4792_s28 }
 0x2f9   : > { %v7021_v57 = vpop.permute.xlu1 %2109 }
 0x2fa   : > { %v7023_v34 = vpop.permute.xlu0 %2107 }
 0x2fb   : > { %2129 = vrot.lane.b32.xlu1 %v8908_v17, %s4790_s5 }
 0x2fc   : > { %2127 = vrot.lane.b32.xlu0 %v8909_v16, %s4790_s5  ;;  %v2889_v16 = vsel %vm2879_vm3, %v2760_v33, %v8925_v59 }
 0x2fd   : > { %v2173_v21 = vpop.permute.xlu1 %2172  ;;  %v3018_v8 = vsel %vm3008_vm4, %v2889_v16, %v6746_v6 }
 0x2fe   : > { %v2171_v3 = vpop.permute.xlu0 %2170 }
 0x2ff   : > { %2133 = vrot.lane.b32.xlu1 %v8910_v20, %s4790_s5  ;;  %v3147_v27 = vsel %vm3137_vm5, %v3018_v8, %v2171_v3 }
 0x300   : > { %2131 = vrot.lane.b32.xlu0 %v8911_v63, %s4790_s5 }
 0x301   : > { %v2237_v47 = vpop.permute.xlu1 %2236 }
 0x302   : > { %v2235_v2 = vpop.permute.xlu0 %2234 }
 0x303   : > { %2196 = vrot.lane.b32.xlu1 %v8912_v10, %s4791_s20  ;;  %v3020_v10 = vsel %vm3008_vm4, %v2891_v52, %v6744_v45  ;;  %v8933_v52 = vld [vmem:[#allocation158_spill] sm:$0xff] }
 0x304   : > { %2194 = vrot.lane.b32.xlu0 %v8913_v40, %s4791_s20  ;;  %v8926_v40 = vld [vmem:[#allocation112_spill] sm:$0xff]  ;;  %v3149_v32 = vsel %vm3137_vm5, %v3020_v10, %v2173_v21  ;;  %v8936_v10 = vld [vmem:[#allocation61_spill] sm:$0xff] }
 0x305   : > { %v7037_v43 = vpop.permute.xlu1 %2176 }
 0x306   : > { %v7039_v5 = vpop.permute.xlu0 %2174 }
 0x307   : > { %2260 = vrot.lane.b32.xlu1 %v8914_v19, %s4791_s20  ;;  %v4701_v19 = vld [vmem:[%s4844_s22 + $0x140] sm:$0xf] }
 0x308   : > { %2258 = vrot.lane.b32.xlu0 %v8916_v35, %s4791_s20  ;;  %v2539_v0 = vsel %vm2428_vm0, %v4701_v19, %v8927_v49  ;;  %v2697_v35 = vsel %vm2621_vm1, %v2542_v61, %v8928_v54  ;;  %v8935_v61 = vld [vmem:[#allocation298_spill] sm:$0xff] }
 0x309   : > { %v7053_v18 = vpop.permute.xlu1 %2240  ;;  %v2695_v45 = vsel %vm2621_vm1, %v2539_v0, %v8929_v31  ;;  %v2826_v1 = vsel %vm2750_vm2, %v2697_v35, %v8930_v51  ;;  %v8937_v19 = vld [vmem:[#allocation82_spill] sm:$0xff]  ;;  %v8938_v0 = vld [vmem:[#allocation168_spill] sm:$0xff]  ;;  %v8940_v31 = vld [vmem:[#allocation219_spill] sm:$0xff] }
 0x30a   : > { %v7059_v13 = vpop.permute.xlu0 %2238  ;;  %v2824_v33 = vsel %vm2750_vm2, %v2695_v45, %v8931_v42  ;;  %v2955_v6 = vsel %vm2879_vm3, %v2826_v1, %v8932_v44  ;;  %v4704_v44 = vld [vmem:[%s4844_s22 + $0x158] sm:$0xf] }
 0x30b   : > { %2200 = vrot.lane.b32.xlu1 %v8923_v62, %s4791_s20  ;;  %v4702_v62 = vld [vmem:[%s4844_s22 + $0x38] sm:$0xf]  ;;  %v2953_v3 = vsel %vm2879_vm3, %v2824_v33, %v8935_v61  ;;  %v3084_v59 = vsel %vm3008_vm4, %v2955_v6, %v2106_v46  ;;  %v8943_v33 = vld [vmem:[#allocation28_spill] sm:$0xff] }
 0x30c   : > { %2198 = vrot.lane.b32.xlu0 %v8926_v40, %s4791_s20  ;;  %v2452_v50 = vsel %vm2428_vm0, %v4702_v62, %v8934_v30  ;;  %v4703_v40 = vld [vmem:[%s4844_s22 + $0x30] sm:$0xf]  ;;  %v3082_v35 = vsel %vm3008_vm4, %v2953_v3, %v2104_v41  ;;  %v3213_v8 = vsel %vm3137_vm5, %v3084_v59, %v2237_v47  ;;  %v8944_v6 = vld [vmem:[#allocation125_spill] sm:$0xff]  ;;  %v8947_v3 = vld [vmem:[#allocation126_spill] sm:$0xff] }
 0x30d   : > { %v2311_v48 = vpop.permute.xlu1 %2310  ;;  %v2449_v49 = vsel %vm2428_vm0, %v4703_v40, %v8937_v19  ;;  %v2637_v54 = vsel %vm2621_vm1, %v2452_v50, %v8938_v0  ;;  %v3211_v51 = vsel %vm3137_vm5, %v3082_v35, %v2235_v2  ;;  %v8942_v41 = vld [vmem:[#allocation280_spill] sm:$0xff]  ;;  %v8945_v2 = vld [vmem:[#allocation281_spill] sm:$0xff] }
 0x30e   : > { %v3278_v53 = vsel %vm3266_vm6, %v3149_v32, %v2311_v48  ;;  %v2309_v11 = vpop.permute.xlu0 %2308  ;;  %v8939_v48 = vld [vmem:[#allocation169_spill] sm:$0xff]  ;;  %v2766_v45 = vsel %vm2750_vm2, %v2637_v54, %v8940_v31  ;;  %v4705_v61 = vld [vmem:[%s4844_s22 + $0x150] sm:$0xf]  ;;  %v8952_v31 = vld [vmem:[#allocation299_spill] sm:$0xff] }
 0x30f   : > { %v3276_v21 = vsel %vm3266_vm6, %v3147_v27, %v2309_v11  ;;  %2264 = vrot.lane.b32.xlu1 %v8933_v52, %s4791_s20  ;;  %v2635_v46 = vsel %vm2621_vm1, %v2449_v49, %v8939_v48  ;;  %v2895_v47 = vsel %vm2879_vm3, %v2766_v45, %v8942_v41  ;;  %v8946_v50 = vld [vmem:[#allocation25_spill] sm:$0xff]  ;;  %v2545_v59 = vsel %vm2428_vm0, %v4705_v61, %v8947_v3  ;;  %v8960_v3 = vld [vmem:[#allocation115_spill] sm:$0xff] }
 0x310   : > { %v4297_v16 = vcombine.low %v3276_v21, %v3278_v53  ;;  %2262 = vrot.lane.b32.xlu0 %v8936_v10, %s4791_s20  ;;  %v8941_v53 = vld [vmem:[#allocation220_spill] sm:$0xff]  ;;  %v2548_v21 = vsel %vm2428_vm0, %v4704_v44, %v8944_v6  ;;  %v3024_v62 = vsel %vm3008_vm4, %v2895_v47, %v6752_v56  ;;  %v8949_v0 = vld [vmem:[#allocation193_spill] sm:$0xff]  ;;  %v8955_v44 = vld [vmem:[#allocation27_spill] sm:$0xff] }
 0x311   : > { %v2375_v32 = vpop.permute.xlu1 %2374  ;;  %v2764_v11 = vsel %vm2750_vm2, %v2635_v46, %v8941_v53  ;;  %v3153_v19 = vsel %vm3137_vm5, %v3024_v62, %v7037_v43  ;;  %v2699_v56 = vsel %vm2621_vm1, %v2545_v59, %v8949_v0  ;;  %v8950_v54 = vld [vmem:[#allocation249_spill] sm:$0xff]  ;;  %v8951_v46 = vld [vmem:[#allocation250_spill] sm:$0xff]  ;;  %v8961_v59 = vld [vmem:[#allocation116_spill] sm:$0xff] }
 0x312   : > { %v3342_v1 = vsel %vm3266_vm6, %v3213_v8, %v2375_v32  ;;  %4400 = vmatprep.mubr.bf16.mxu0 %v4297_v16  ;;  %v2373_v27 = vpop.permute.xlu0 %2372  ;;  %v2893_v52 = vsel %vm2879_vm3, %v2764_v11, %v8945_v2  ;;  %v8948_v16 = vld [vmem:[#allocation192_spill] sm:$0xff]  ;;  %v8957_v2 = vld [vmem:[#allocation73_spill] sm:$0xff] }
 0x313   : > { %v3340_v42 = vsel %vm3266_vm6, %v3211_v51, %v2373_v27  ;;  %2334 = vrot.lane.b32.xlu1 %v8943_v33, %s4792_s28  ;;  %v2701_v10 = vsel %vm2621_vm1, %v2548_v21, %v8948_v16  ;;  %v3022_v40 = vsel %vm3008_vm4, %v2893_v52, %v6754_v36  ;;  %v2828_v36 = vsel %vm2750_vm2, %v2699_v56, %v8951_v46  ;;  %v8953_v51 = vld [vmem:[#allocation300_spill] sm:$0xff]  ;;  %v8954_v33 = vld [vmem:[#allocation30_spill] sm:$0xff]  ;;  %v8964_v56 = vld [vmem:[#allocation65_spill] sm:$0xff] }
 0x314   : > { %v4313_v30 = vcombine.low %v3340_v42, %v3342_v1  ;;  %2332 = vrot.lane.b32.xlu0 %v8946_v50, %s4792_s28  ;;  %v2830_v35 = vsel %vm2750_vm2, %v2701_v10, %v8950_v54  ;;  %v3151_v8 = vsel %vm3137_vm5, %v3022_v40, %v7039_v5  ;;  %v2957_v1 = vsel %vm2879_vm3, %v2828_v36, %v8953_v51  ;;  %v8959_v50 = vld [vmem:[#allocation78_spill] sm:$0xff]  ;;  %v8962_v40 = vld [vmem:[#allocation161_spill] sm:$0xff]  ;;  %v4707_v54 = vld [vmem:[%s4844_s22 + $0x48] sm:$0xf] }
 0x315   : > { %v2315_v49 = vpop.permute.xlu1 %2314  ;;  %v2959_v43 = vsel %vm2879_vm3, %v2830_v35, %v8952_v31  ;;  %v3086_v53 = vsel %vm3008_vm4, %v2957_v1, %v7023_v34  ;;  %v8965_v35 = vld [vmem:[#allocation84_spill] sm:$0xff]  ;;  %v4708_v1 = vld [vmem:[%s4844_s22 + $0x60] sm:$0xf] }
 0x316   : > { %v3282_v32 = vsel %vm3266_vm6, %v3153_v19, %v2315_v49  ;;  %4432 = vmatprep.mubr.bf16.mxu1 %v4313_v30  ;;  %v2313_v48 = vpop.permute.xlu0 %2312  ;;  %v3088_v5 = vsel %vm3008_vm4, %v2959_v43, %v7021_v57  ;;  %v8958_v30 = vld [vmem:[#allocation77_spill] sm:$0xff]  ;;  %v4706_v19 = vld [vmem:[%s4844_s22 + $0x50] sm:$0xf]  ;;  %v8963_v49 = vld [vmem:[#allocation83_spill] sm:$0xff] }
 0x317   : > { %v3280_v45 = vsel %vm3266_vm6, %v3151_v8, %v2313_v48  ;;  %2398 = vrot.lane.b32.xlu1 %v8911_v63, %s4792_s28  ;;  %v3217_v11 = vsel %vm3137_vm5, %v3088_v5, %v7053_v18  ;;  %v3215_v63 = vsel %vm3137_vm5, %v3086_v53, %v7059_v13  ;;  %v8956_v13 = vld [vmem:[#allocation74_spill] sm:$0xff]  ;;  %v2458_v0 = vsel %vm2428_vm0, %v4706_v19, %v8963_v49  ;;  %v8967_v36 = vld [vmem:[#allocation4_spill] sm:$0xff]  ;;  %v8968_v43 = vld [vmem:[#allocation221_spill] sm:$0xff] }
 0x318   : > { %v4298_v27 = vcombine.low %v3280_v45, %v3282_v32  ;;  %2396 = vrot.lane.b32.xlu0 %v8908_v17, %s4792_s28  ;;  %v2455_v8 = vsel %vm2428_vm0, %v4707_v54, %v8965_v35  ;;  %v8966_v32 = vld [vmem:[#allocation2_spill] sm:$0xff]  ;;  %v8969_v5 = vld [vmem:[#allocation85_spill] sm:$0xff]  ;;  %v8976_v19 = vld [vmem:[#allocation120_spill] sm:$0xff] }
 0x319   : > { %v2379_v41 = vpop.permute.xlu1 %2378  ;;  %v2641_v48 = vsel %vm2621_vm1, %v2458_v0, %v8966_v32  ;;  %v2639_v31 = vsel %vm2621_vm1, %v2455_v8, %v8967_v36  ;;  %v8970_v53 = vld [vmem:[#allocation222_spill] sm:$0xff]  ;;  %v4711_v49 = vld [vmem:[%s4844_s22 + $0x168] sm:$0xf] }
 0x31a   : > { %v3346_v47 = vsel %vm3266_vm6, %v3217_v11, %v2379_v41  ;;  %4401 = vmatmul.mubr.bf16.gmra.mxu0 %v4298_v27  ;;  %v2377_v42 = vpop.permute.xlu0 %2376  ;;  %v2770_v45 = vsel %vm2750_vm2, %v2641_v48, %v8968_v43  ;;  %v2464_v27 = vsel %vm2428_vm0, %v4708_v1, %v8969_v5  ;;  %v2768_v11 = vsel %vm2750_vm2, %v2639_v31, %v8970_v53  ;;  %v8971_v41 = vld [vmem:[#allocation10_spill] sm:$0xff]  ;;  %v8979_v36 = vld [vmem:[#allocation195_spill] sm:$0xff] }
 0x31b   : > { %v3344_v57 = vsel %vm3266_vm6, %v3215_v63, %v2377_v42  ;;  %2338 = vrot.lane.b32.xlu1 %v8954_v33, %s4792_s28  ;;  %v2899_v63 = vsel %vm2879_vm3, %v2770_v45, %v8971_v41  ;;  %v4709_v42 = vld [vmem:[%s4844_s22 + $0x58] sm:$0xf]  ;;  %v8977_v0 = vld [vmem:[#allocation130_spill] sm:$0xff]  ;;  %v8980_v31 = vld [vmem:[#allocation251_spill] sm:$0xff] }
 0x31c   : > { %v4314_v17 = vcombine.low %v3344_v57, %v3346_v47  ;;  %2336 = vrot.lane.b32.xlu0 %v8955_v44, %s4792_s28  ;;  %v8972_v47 = vld [vmem:[#allocation119_spill] sm:$0xff]  ;;  %v8973_v57 = vld [vmem:[#allocation86_spill] sm:$0xff]  ;;  %v8974_v44 = vld [vmem:[#allocation129_spill] sm:$0xff] }
 0x31d   : > { %v7175_v34 = vpop.permute.xlu1 %2113  ;;  %v2461_v33 = vsel %vm2428_vm0, %v4709_v42, %v8973_v57  ;;  %v8978_v54 = vld [vmem:[#allocation194_spill] sm:$0xff]  ;;  %v8982_v41 = vld [vmem:[#allocation252_spill] sm:$0xff] }
 0x31e   : > { %4433 = vmatmul.mubr.bf16.gmra.mxu1 %v4314_v17  ;;  %v7177_v18 = vpop.permute.xlu0 %2111  ;;  %v4710_v17 = vld [vmem:[%s4844_s22 + $0x170] sm:$0xf]  ;;  %v4712_v53 = vld [vmem:[%s4844_s22 + $0x180] sm:$0xf] }
 0x31f   : > { %2402 = vrot.lane.b32.xlu1 %v8956_v13, %s4792_s28  ;;  %v8983_v42 = vld [vmem:[#allocation164_spill] sm:$0xff]  ;;  %v8984_v57 = vld [vmem:[#allocation134_spill] sm:$0xff] }
 0x320   : > { %2400 = vrot.lane.b32.xlu0 %v8910_v20, %s4792_s28 }
 0x321   : > { %v7183_v6 = vpop.permute.xlu1 %2117 }
 0x322   : > { %v7185_v21 = vpop.permute.xlu0 %2115 }
 0x323   : > { %2137 = vrot.lane.b32.xlu1 %v8957_v2, %s4790_s5 }
 0x324   : > { %2135 = vrot.lane.b32.xlu0 %v8956_v13, %s4790_s5  ;;  %v2554_v13 = vsel %vm2428_vm0, %v4710_v17, %v8974_v44  ;;  %v465_v44 = vld [vmem:[%s6403_s30 + $0xc] sm:$0x1] }
 0x325   : > { %v2181_v52 = vpop.permute.xlu1 %2180  ;;  %v2705_v35 = vsel %vm2621_vm1, %v2554_v13, %v8978_v54  ;;  %v8985_v13 = vld [vmem:[#allocation41_spill] sm:$0xff]  ;;  %v463_v54 = vld [vmem:[%s6403_s30 + $0x4] sm:$0x1] }
 0x326   : > { %v2179_v62 = vpop.permute.xlu0 %2178  ;;  %v2834_v43 = vsel %vm2750_vm2, %v2705_v35, %v8980_v31  ;;  %v469_v31 = vld [vmem:[%s6403_s30 + $0x1c] sm:$0x1] }
 0x327   : > { %2141 = vrot.lane.b32.xlu1 %v8958_v30, %s4790_s5 }
 0x328   : > { %2139 = vrot.lane.b32.xlu0 %v8959_v50, %s4790_s5 }
 0x329   : > { %v2245_v20 = vpop.permute.xlu1 %2244 }
 0x32a   : > { %v2243_v61 = vpop.permute.xlu0 %2242 }
 0x32b   : > { %2204 = vrot.lane.b32.xlu1 %v8960_v3, %s4791_s20  ;;  %v8975_v3 = vld [vmem:[#allocation282_spill] sm:$0xff] }
 0x32c   : > { %2202 = vrot.lane.b32.xlu0 %v8961_v59, %s4791_s20  ;;  %v2897_v59 = vsel %vm2879_vm3, %v2768_v11, %v8975_v3  ;;  %v8981_v11 = vld [vmem:[#allocation133_spill] sm:$0xff] }
 0x32d   : > { %v7199_v16 = vpop.permute.xlu1 %2184  ;;  %v3026_v8 = vsel %vm3008_vm4, %v2897_v59, %v6762_v22  ;;  %v2560_v22 = vsel %vm2428_vm0, %v4712_v53, %v8981_v11  ;;  %v8992_v53 = vld [vmem:[#allocation283_spill] sm:$0xff] }
 0x32e   : > { %v7201_v10 = vpop.permute.xlu0 %2182  ;;  %v3155_v45 = vsel %vm3137_vm5, %v3026_v8, %v2179_v62  ;;  %v4713_v62 = vld [vmem:[%s4844_s22 + $0x178] sm:$0xf] }
 0x32f   : > { %2268 = vrot.lane.b32.xlu1 %v8962_v40, %s4791_s20  ;;  %v3028_v40 = vsel %vm3008_vm4, %v2899_v63, %v6760_v4  ;;  %v2963_v63 = vsel %vm2879_vm3, %v2834_v43, %v6620_v15  ;;  %v2557_v17 = vsel %vm2428_vm0, %v4713_v62, %v8984_v57  ;;  %v8986_v15 = vld [vmem:[#allocation165_spill] sm:$0xff] }
 0x330   : > { %2266 = vrot.lane.b32.xlu0 %v8964_v56, %s4791_s20  ;;  %v2551_v56 = vsel %vm2428_vm0, %v4711_v49, %v8977_v0  ;;  %v3157_v32 = vsel %vm3137_vm5, %v3028_v40, %v2181_v52  ;;  %v3092_v59 = vsel %vm3008_vm4, %v2963_v63, %v7175_v34  ;;  %v8988_v0 = vld [vmem:[#allocation3_spill] sm:$0xff]  ;;  %v8994_v63 = vld [vmem:[#allocation284_spill] sm:$0xff]  ;;  %v8995_v57 = vld [vmem:[#allocation29_spill] sm:$0xff] }
 0x331   : > { %v7215_v46 = vpop.permute.xlu1 %2248  ;;  %v2703_v4 = vsel %vm2621_vm1, %v2551_v56, %v8979_v36  ;;  %v2643_v56 = vsel %vm2621_vm1, %v2461_v33, %v8988_v0  ;;  %v3221_v8 = vsel %vm3137_vm5, %v3092_v59, %v2245_v20  ;;  %v8990_v36 = vld [vmem:[#allocation223_spill] sm:$0xff] }
 0x332   : > { %v7221_v51 = vpop.permute.xlu0 %2246  ;;  %v2832_v52 = vsel %vm2750_vm2, %v2703_v4, %v8982_v41  ;;  %v4714_v20 = vld [vmem:[%s6403_s30 + $0x8] sm:$0xf]  ;;  %v8993_v41 = vld [vmem:[#allocation32_spill] sm:$0xff] }
 0x333   : > { %2208 = vrot.lane.b32.xlu1 %v8972_v47, %s4791_s20  ;;  %v2961_v3 = vsel %vm2879_vm3, %v2832_v52, %v8985_v13 }
 0x334   : > { %2206 = vrot.lane.b32.xlu0 %v8976_v19, %s4791_s20  ;;  %v8987_v19 = vld [vmem:[#allocation6_spill] sm:$0xff]  ;;  %v3090_v35 = vsel %vm3008_vm4, %v2961_v3, %v7177_v18  ;;  %v4716_v3 = vld [vmem:[%s6403_s30 + $0x18] sm:$0xf] }
 0x335   : > { %v2319_v48 = vpop.permute.xlu1 %2318  ;;  %v2645_v49 = vsel %vm2621_vm1, %v2464_v27, %v8987_v19  ;;  %v3219_v27 = vsel %vm3137_vm5, %v3090_v35, %v2243_v61  ;;  %v4715_v61 = vld [vmem:[%s6403_s30] sm:$0xf]  ;;  %v4287_v59 = vcombine.low %v4716_v3, %v469_v31 }
 0x336   : > { %v3286_v1 = vsel %vm3266_vm6, %v3157_v32, %v2319_v48  ;;  %v2317_v5 = vpop.permute.xlu0 %2316  ;;  %v8989_v32 = vld [vmem:[#allocation196_spill] sm:$0xff]  ;;  %v2774_v4 = vsel %vm2750_vm2, %v2645_v49, %v8990_v36  ;;  %v4284_v52 = vcombine.low %v4715_v61, %v463_v54  ;;  %v8997_v49 = vld [vmem:[#allocation253_spill] sm:$0xff] }
 0x337   : > { %v3284_v47 = vsel %vm3266_vm6, %v3155_v45, %v2317_v5  ;;  %2272 = vrot.lane.b32.xlu1 %v8983_v42, %s4791_s20  ;;  %v2709_v48 = vsel %vm2621_vm1, %v2560_v22, %v8989_v32  ;;  %v8991_v45 = vld [vmem:[#allocation224_spill] sm:$0xff]  ;;  %v2903_v11 = vsel %vm2879_vm3, %v2774_v4, %v8992_v53  ;;  %v9001_v53 = vld [vmem:[#allocation31_spill] sm:$0xff] }
 0x338   : > { %v4299_v40 = vcombine.low %v3284_v47, %v3286_v1  ;;  %2270 = vrot.lane.b32.xlu0 %v8986_v15, %s4791_s20  ;;  %v2772_v18 = vsel %vm2750_vm2, %v2643_v56, %v8991_v45  ;;  %v4285_v1 = vcombine.low %v4714_v20, %v465_v44  ;;  %v467_v5 = vld [vmem:[%s6403_s30 + $0x14] sm:$0x1]  ;;  %v3032_v42 = vsel %vm3008_vm4, %v2903_v11, %v6768_v38  ;;  %v8996_v44 = vld [vmem:[#allocation197_spill] sm:$0xff]  ;;  %v4717_v38 = vld [vmem:[%s6403_s30 + $0x10] sm:$0xf] }
 0x339   : > { %v2383_v34 = vpop.permute.xlu1 %2382  ;;  %v2901_v47 = vsel %vm2879_vm3, %v2772_v18, %v8994_v63  ;;  %v2707_v13 = vsel %vm2621_vm1, %v2557_v17, %v8996_v44  ;;  %v3161_v15 = vsel %vm3137_vm5, %v3032_v42, %v7199_v16  ;;  %v2838_v0 = vsel %vm2750_vm2, %v2709_v48, %v8997_v49  ;;  %v9000_v18 = vld [vmem:[#allocation189_spill] sm:$0xff]  ;;  %v9002_v61 = vld [vmem:[#allocation216_spill] sm:$0xff] }
 0x33a   : > { %v3350_v43 = vsel %vm3266_vm6, %v3221_v8, %v2383_v34  ;;  %4404 = vmatprep.mubr.bf16.mxu0 %v4299_v40  ;;  %v2381_v33 = vpop.permute.xlu0 %2380  ;;  %v3030_v40 = vsel %vm3008_vm4, %v2901_v47, %v6770_v28  ;;  %v4286_v56 = vcombine.low %v4717_v38, %v467_v5  ;;  %v8998_v8 = vld [vmem:[#allocation254_spill] sm:$0xff]  ;;  %v1985_v48 = vshll.u32 %v4285_v1, 16  ;;  %v9004_v49 = vld [vmem:[#allocation124_spill] sm:$0xff] }
 0x33b   : > { %v3348_v22 = vsel %vm3266_vm6, %v3219_v27, %v2381_v33  ;;  %2342 = vrot.lane.b32.xlu1 %v8993_v41, %s4792_s28  ;;  %v3159_v54 = vsel %vm3137_vm5, %v3030_v40, %v7201_v10  ;;  %v2836_v34 = vsel %vm2750_vm2, %v2707_v13, %v8998_v8  ;;  %v8999_v28 = vld [vmem:[#allocation42_spill] sm:$0xff]  ;;  %v1978_v31 = vshll.u32 %v4284_v52, 16  ;;  %v9007_v8 = vld [vmem:[#allocation267_spill] sm:$0xff] }
 0x33c   : > { %v4315_v62 = vcombine.low %v3348_v22, %v3350_v43  ;;  %2340 = vrot.lane.b32.xlu0 %v8995_v57, %s4792_s28  ;;  %v2967_v32 = vsel %vm2879_vm3, %v2838_v0, %v8999_v28  ;;  %v2965_v36 = vsel %vm2879_vm3, %v2836_v34, %v6633_v29  ;;  %v1987_v20 = vrot.slane %v1985_v48, 1  ;;  %v4719_v34 = vld [vmem:[%s4844_s22 + $0x68] sm:$0xf]  ;;  %v9008_v28 = vld [vmem:[#allocation88_spill] sm:$0xff] }
 0x33d   : > { %v2323_v19 = vpop.permute.xlu1 %2322  ;;  %v3096_v10 = vsel %vm3008_vm4, %v2967_v32, %v7183_v6  ;;  %v3094_v27 = vsel %vm3008_vm4, %v2965_v36, %v7185_v21  ;;  %v1999_v5 = vshll.u32 %v4287_v59, 16  ;;  %v1980_v11 = vrot.slane %v1978_v31, 1 }
 0x33e   : > { %v3290_v35 = vsel %vm3266_vm6, %v3161_v15, %v2323_v19  ;;  %4436 = vmatprep.mubr.bf16.mxu1 %v4315_v62  ;;  %v2321_v17 = vpop.permute.xlu0 %2320  ;;  %v3225_v43 = vsel %vm3137_vm5, %v3096_v10, %v7215_v46  ;;  %v1976_v46 = vshrl.u32 %v4284_v52, 16  ;;  %v1992_v22 = vshll.u32 %v4286_v56, 16  ;;  %v9003_v19 = vld [vmem:[#allocation123_spill] sm:$0xff]  ;;  %v4720_v10 = vld [vmem:[%s4844_s22 + $0x80] sm:$0xf] }
 0x33f   : > { %v3288_v16 = vsel %vm3266_vm6, %v3159_v54, %v2321_v17  ;;  %2406 = vrot.lane.b32.xlu1 %v8959_v50, %s4792_s28  ;;  %v3223_v50 = vsel %vm3137_vm5, %v3094_v27, %v7221_v51  ;;  %v2001_v47 = vrot.slane %v1999_v5, 1  ;;  %v1990_v62 = vshrl.u32 %v4286_v56, 16  ;;  %v9005_v56 = vld [vmem:[#allocation271_spill] sm:$0xff]  ;;  %v4718_v54 = vld [vmem:[%s4844_s22 + $0x70] sm:$0xf]  ;;  %v9011_v27 = vld [vmem:[#allocation5_spill] sm:$0xff] }
 0x340   : > { %v4300_v4 = vcombine.low %v3288_v16, %v3290_v35  ;;  %2404 = vrot.lane.b32.xlu0 %v8957_v2, %s4792_s28  ;;  %v1983_v2 = vshrl.u32 %v4285_v1, 16  ;;  %v1997_v1 = vshrl.u32 %v4287_v59, 16  ;;  %v1981_v42 = vor.u32 %v1980_v11, %v1976_v46  ;;  %v9006_v35 = vld [vmem:[#allocation87_spill] sm:$0xff]  ;;  %v9009_v16 = vld [vmem:[#allocation8_spill] sm:$0xff]  ;;  %v471_v46 = vld [vmem:[%s6403_s30 + $0x24] sm:$0x1] }
 0x341   : > { %v2387_v33 = vpop.permute.xlu1 %2386  ;;  %v1994_v52 = vrot.slane %v1992_v22, 1  ;;  %v2470_v17 = vsel %vm2428_vm0, %v4718_v54, %v9006_v35  ;;  %v2467_v32 = vsel %vm2428_vm0, %v4719_v34, %v9008_v28  ;;  %v9016_v11 = vld [vmem:[#allocation13_spill] sm:$0xff]  ;;  %v9021_v35 = vld [vmem:[#allocation128_spill] sm:$0xff] }
 0x342   : > { %v3354_v29 = vsel %vm3266_vm6, %v3225_v43, %v2387_v33  ;;  %4405 = vmatmul.mubr.bf16.gmra.mxu0 %v4300_v4  ;;  %v2385_v45 = vpop.permute.xlu0 %2384  ;;  %v7353_v63 = vor.u32 %v1987_v20, %v1983_v2  ;;  %v7363_v13 = vor.u32 %v2001_v47, %v1997_v1  ;;  %v2649_v48 = vsel %vm2621_vm1, %v2470_v17, %v9009_v16  ;;  %v9010_v4 = vld [vmem:[#allocation89_spill] sm:$0xff]  ;;  %v4722_v2 = vld [vmem:[%s4844_s22 + $0x190] sm:$0xf]  ;;  %v4723_v1 = vld [vmem:[%s4844_s22 + $0x188] sm:$0xf] }
 0x343   : > { %v3352_v6 = vsel %vm3266_vm6, %v3223_v50, %v2385_v45  ;;  %2346 = vrot.lane.b32.xlu1 %v9000_v18, %s4792_s28  ;;  %v7366_v3 = vor.u32 %v1994_v52, %v1990_v62  ;;  %v2476_v31 = vsel %vm2428_vm0, %v4720_v10, %v9010_v4  ;;  %v2647_v43 = vsel %vm2621_vm1, %v2467_v32, %v9011_v27  ;;  %v9012_v33 = vld [vmem:[#allocation225_spill] sm:$0xff]  ;;  %v9018_v47 = vld [vmem:[#allocation138_spill] sm:$0xff]  ;;  %v9019_v52 = vld [vmem:[#allocation139_spill] sm:$0xff] }
 0x344   : > { %v4316_v21 = vcombine.low %v3352_v6, %v3354_v29  ;;  %2344 = vrot.lane.b32.xlu0 %v9001_v53, %s4792_s28  ;;  %v2778_v50 = vsel %vm2750_vm2, %v2649_v48, %v9012_v33  ;;  %v4721_v45 = vld [vmem:[%s4844_s22 + $0x78] sm:$0xf]  ;;  %v9013_v6 = vld [vmem:[#allocation90_spill] sm:$0xff]  ;;  %v9022_v17 = vld [vmem:[#allocation199_spill] sm:$0xff] }
 0x345   : > { %v7347_v51 = vpop.permute.xlu1 %2121  ;;  %v2473_v18 = vsel %vm2428_vm0, %v4721_v45, %v9013_v6  ;;  %v9014_v20 = vld [vmem:[#allocation137_spill] sm:$0xff]  ;;  %v2907_v22 = vsel %vm2879_vm3, %v2778_v50, %v9016_v11  ;;  %v4724_v62 = vld [vmem:[%s4844_s22 + $0x1a0] sm:$0xf]  ;;  %v9023_v34 = vld [vmem:[#allocation200_spill] sm:$0xff] }
 0x346   : > { %4437 = vmatmul.mubr.bf16.gmra.mxu1 %v4316_v21  ;;  %v7349_v41 = vpop.permute.xlu0 %2119  ;;  %v2566_v5 = vsel %vm2428_vm0, %v4722_v2, %v9014_v20  ;;  %v9015_v21 = vld [vmem:[#allocation226_spill] sm:$0xff]  ;;  %v3036_v54 = vsel %vm3008_vm4, %v2907_v22, %v6776_v23  ;;  %v9024_v10 = vld [vmem:[#allocation255_spill] sm:$0xff]  ;;  %v4726_v45 = vld [vmem:[%s4844_s22 + $0x198] sm:$0xf] }
 0x347   : > { %2410 = vrot.lane.b32.xlu1 %v9002_v61, %s4792_s28  ;;  %v2776_v53 = vsel %vm2750_vm2, %v2647_v43, %v9015_v21  ;;  %v9017_v61 = vld [vmem:[#allocation127_spill] sm:$0xff]  ;;  %v4725_v23 = vld [vmem:[%s6403_s30 + $0x20] sm:$0xf]  ;;  %v9025_v6 = vld [vmem:[#allocation140_spill] sm:$0xff] }
 0x348   : > { %2408 = vrot.lane.b32.xlu0 %v8958_v30, %s4792_s28  ;;  %v7440_v27 = vcombine.low %v4725_v23, %v471_v46  ;;  %v2569_v2 = vsel %vm2428_vm0, %v4726_v45, %v9025_v6  ;;  %v9027_v21 = vld [vmem:[#allocation273_spill] sm:$0xff]  ;;  %v473_v46 = vld [vmem:[%s6403_s30 + $0x2c] sm:$0x1] }
 0x349   : > { %v7357_v57 = vpop.permute.xlu1 %2125  ;;  %v4728_v6 = vld [vmem:[%s6403_s30 + $0x38] sm:$0xf] }
 0x34a   : > { %v7359_v44 = vpop.permute.xlu0 %2123 }
 0x34b   : > { %2145 = vrot.lane.b32.xlu1 %v7353_v63, %s4790_s5 }
 0x34c   : > { %2143 = vrot.lane.b32.xlu0 %v1981_v42, %s4790_s5  ;;  %v2563_v42 = vsel %vm2428_vm0, %v4723_v1, %v9018_v47  ;;  %v9029_v1 = vld [vmem:[#allocation270_spill] sm:$0xff] }
 0x34d   : > { %v2189_v59 = vpop.permute.xlu1 %2188  ;;  %v2711_v28 = vsel %vm2621_vm1, %v2563_v42, %v9023_v34  ;;  %v9031_v42 = vld [vmem:[#allocation201_spill] sm:$0xff]  ;;  %v9034_v34 = vld [vmem:[#allocation15_spill] sm:$0xff] }
 0x34e   : > { %v2187_v30 = vpop.permute.xlu0 %2186  ;;  %v3165_v16 = vsel %vm3137_vm5, %v3036_v54, %v2189_v59 }
 0x34f   : > { %2149 = vrot.lane.b32.xlu1 %v7363_v13, %s4790_s5 }
 0x350   : > { %2147 = vrot.lane.b32.xlu0 %v7366_v3, %s4790_s5 }
 0x351   : > { %v2253_v40 = vpop.permute.xlu1 %2252 }
 0x352   : > { %v7372_v15 = vpop.permute.xlu0 %2250 }
 0x353   : > { %2212 = vrot.lane.b32.xlu1 %v9003_v19, %s4791_s20  ;;  %v2572_v19 = vsel %vm2428_vm0, %v4724_v62, %v9019_v52 }
 0x354   : > { %2210 = vrot.lane.b32.xlu0 %v9004_v49, %s4791_s20  ;;  %v9020_v49 = vld [vmem:[#allocation14_spill] sm:$0xff]  ;;  %v2717_v62 = vsel %vm2621_vm1, %v2572_v19, %v9031_v42  ;;  %v2006_v19 = vshll.u32 %v7440_v27, 16 }
 0x355   : > { %v7378_v0 = vpop.permute.xlu1 %2192 }
 0x356   : > { %v7380_v38 = vpop.permute.xlu0 %2190 }
 0x357   : > { %2276 = vrot.lane.b32.xlu1 %v9005_v56, %s4791_s20  ;;  %v2905_v56 = vsel %vm2879_vm3, %v2776_v53, %v9020_v49  ;;  %v9032_v49 = vld [vmem:[#allocation227_spill] sm:$0xff] }
 0x358   : > { %2274 = vrot.lane.b32.xlu0 %v9007_v8, %s4791_s20  ;;  %v2713_v8 = vsel %vm2621_vm1, %v2566_v5, %v9022_v17  ;;  %v3034_v32 = vsel %vm3008_vm4, %v2905_v56, %v6778_v25  ;;  %v9026_v25 = vld [vmem:[#allocation256_spill] sm:$0xff]  ;;  %v477_v56 = vld [vmem:[%s6403_s30 + $0x3c] sm:$0x1] }
 0x359   : > { %v7394_v36 = vpop.permute.xlu1 %2256  ;;  %v2842_v4 = vsel %vm2750_vm2, %v2713_v8, %v9024_v10  ;;  %v3163_v43 = vsel %vm3137_vm5, %v3034_v32, %v2187_v30  ;;  %v2840_v20 = vsel %vm2750_vm2, %v2711_v28, %v9026_v25  ;;  %v9028_v30 = vld [vmem:[#allocation7_spill] sm:$0xff]  ;;  %v9033_v17 = vld [vmem:[#allocation228_spill] sm:$0xff]  ;;  %v4291_v25 = vcombine.low %v4728_v6, %v477_v56 }
 0x35a   : > { %v7403_v29 = vpop.permute.xlu0 %2254  ;;  %v2971_v59 = vsel %vm2879_vm3, %v2842_v4, %v6642_v9  ;;  %v2653_v53 = vsel %vm2621_vm1, %v2476_v31, %v9028_v30  ;;  %v2969_v11 = vsel %vm2879_vm3, %v2840_v20, %v6644_v14  ;;  %v9030_v9 = vld [vmem:[#allocation170_spill] sm:$0xff]  ;;  %v9037_v10 = vld [vmem:[#allocation16_spill] sm:$0xff] }
 0x35b   : > { %2216 = vrot.lane.b32.xlu1 %v9017_v61, %s4791_s20  ;;  %v3100_v22 = vsel %vm3008_vm4, %v2971_v59, %v7347_v51  ;;  %v2651_v47 = vsel %vm2621_vm1, %v2473_v18, %v9030_v9  ;;  %v3098_v31 = vsel %vm3008_vm4, %v2969_v11, %v7349_v41  ;;  %v2782_v51 = vsel %vm2750_vm2, %v2653_v53, %v9032_v49  ;;  %v475_v20 = vld [vmem:[%s6403_s30 + $0x34] sm:$0x1]  ;;  %v9040_v11 = vld [vmem:[#allocation258_spill] sm:$0xff] }
 0x35c   : > { %2214 = vrot.lane.b32.xlu0 %v9021_v35, %s4791_s20  ;;  %v3229_v52 = vsel %vm3137_vm5, %v3100_v22, %v2253_v40  ;;  %v3227_v54 = vsel %vm3137_vm5, %v3098_v31, %v7372_v15  ;;  %v2780_v41 = vsel %vm2750_vm2, %v2651_v47, %v9033_v17  ;;  %v4727_v40 = vld [vmem:[%s6403_s30 + $0x28] sm:$0xf]  ;;  %v2911_v28 = vsel %vm2879_vm3, %v2782_v51, %v9034_v34  ;;  %v9035_v15 = vld [vmem:[#allocation36_spill] sm:$0xff] }
 0x35d   : > { %v2327_v48 = vpop.permute.xlu1 %2326  ;;  %v4289_v8 = vcombine.low %v4727_v40, %v473_v46  ;;  %v2909_v4 = vsel %vm2879_vm3, %v2780_v41, %v9037_v10  ;;  %v3040_v23 = vsel %vm3008_vm4, %v2911_v28, %v6784_v58  ;;  %v2004_v53 = vshrl.u32 %v7440_v27, 16  ;;  %v9044_v10 = vld [vmem:[#allocation132_spill] sm:$0xff] }
 0x35e   : > { %v3294_v33 = vsel %vm3266_vm6, %v3165_v16, %v2327_v48  ;;  %v2325_v50 = vpop.permute.xlu0 %2324  ;;  %v9036_v16 = vld [vmem:[#allocation202_spill] sm:$0xff]  ;;  %v3169_v59 = vsel %vm3137_vm5, %v3040_v23, %v7378_v0  ;;  %v2008_v46 = vrot.slane %v2006_v19, 1  ;;  %v9047_v6 = vld [vmem:[#allocation272_spill] sm:$0xff] }
 0x35f   : > { %v3292_v5 = vsel %vm3266_vm6, %v3163_v43, %v2325_v50  ;;  %2280 = vrot.lane.b32.xlu1 %v9027_v21, %s4791_s20  ;;  %v2715_v48 = vsel %vm2621_vm1, %v2569_v2, %v9036_v16  ;;  %v9039_v50 = vld [vmem:[#allocation257_spill] sm:$0xff]  ;;  %v3038_v2 = vsel %vm3008_vm4, %v2909_v4, %v6786_v24  ;;  %v2013_v0 = vshll.u32 %v4289_v8, 16 }
 0x360   : > { %v4301_v61 = vcombine.low %v3292_v5, %v3294_v33  ;;  %2278 = vrot.lane.b32.xlu0 %v9029_v1, %s4791_s20  ;;  %v9038_v33 = vld [vmem:[#allocation33_spill] sm:$0xff]  ;;  %v2846_v45 = vsel %vm2750_vm2, %v2717_v62, %v9039_v50  ;;  %v3167_v58 = vsel %vm3137_vm5, %v3038_v2, %v7380_v38  ;;  %v2844_v22 = vsel %vm2750_vm2, %v2715_v48, %v9040_v11  ;;  %v4729_v38 = vld [vmem:[%s6403_s30 + $0x30] sm:$0xf]  ;;  %v9043_v48 = vld [vmem:[#allocation131_spill] sm:$0xff] }
 0x361   : > { %v2391_v14 = vpop.permute.xlu1 %2390  ;;  %v2975_v24 = vsel %vm2879_vm3, %v2846_v45, %v6653_v26  ;;  %v4290_v1 = vcombine.low %v4729_v38, %v475_v20  ;;  %v2973_v9 = vsel %vm2879_vm3, %v2844_v22, %v6655_v7  ;;  %v2015_v49 = vrot.slane %v2013_v0, 1  ;;  %v9046_v50 = vld [vmem:[#allocation91_spill] sm:$0xff]  ;;  %v4731_v20 = vld [vmem:[%s4844_s22 + $0x90] sm:$0xf]  ;;  %v9053_v0 = vld [vmem:[#allocation17_spill] sm:$0xff] }
 0x362   : > { %v3358_v35 = vsel %vm3266_vm6, %v3229_v52, %v2391_v14  ;;  %4408 = vmatprep.mubr.bf16.mxu0 %v4301_v61  ;;  %v2389_v18 = vpop.permute.xlu0 %2388  ;;  %v3104_v27 = vsel %vm3008_vm4, %v2975_v24, %v7357_v57  ;;  %v3102_v26 = vsel %vm3008_vm4, %v2973_v9, %v7359_v44  ;;  %v2009_v52 = vor.u32 %v2008_v46, %v2004_v53  ;;  %v9041_v14 = vld [vmem:[#allocation38_spill] sm:$0xff]  ;;  %v9048_v2 = vld [vmem:[#allocation92_spill] sm:$0xff]  ;;  %v9051_v46 = vld [vmem:[#allocation229_spill] sm:$0xff] }
 0x363   : > { %v3356_v32 = vsel %vm3266_vm6, %v3227_v54, %v2389_v18  ;;  %2350 = vrot.lane.b32.xlu1 %v9035_v15, %s4792_s28  ;;  %v3233_v42 = vsel %vm3137_vm5, %v3104_v27, %v7394_v36  ;;  %v3231_v62 = vsel %vm3137_vm5, %v3102_v26, %v7403_v29  ;;  %v2027_v44 = vshll.u32 %v4291_v25, 16  ;;  %v9042_v36 = vld [vmem:[#allocation35_spill] sm:$0xff]  ;;  %v9052_v24 = vld [vmem:[#allocation230_spill] sm:$0xff] }
 0x364   : > { %v4317_v43 = vcombine.low %v3356_v32, %v3358_v35  ;;  %2348 = vrot.lane.b32.xlu0 %v9038_v33, %s4792_s28  ;;  %v2020_v56 = vshll.u32 %v4290_v1, 16  ;;  %v2025_v18 = vshrl.u32 %v4291_v25, 16  ;;  %v2018_v17 = vshrl.u32 %v4290_v1, 16  ;;  %v4730_v33 = vld [vmem:[%s4844_s22 + $0x98] sm:$0xf]  ;;  %v9054_v1 = vld [vmem:[#allocation135_spill] sm:$0xff] }
 0x365   : > { %v2331_v5 = vpop.permute.xlu1 %2330  ;;  %v2029_v19 = vrot.slane %v2027_v44, 1  ;;  %v2482_v45 = vsel %vm2428_vm0, %v4730_v33, %v9046_v50  ;;  %v478_v25 = vld [vmem:[%s6403_s30 + $0x40] sm:$0xf]  ;;  %v4732_v27 = vld [vmem:[%s4844_s22 + $0xa8] sm:$0xf]  ;;  %v9063_v50 = vld [vmem:[#allocation260_spill] sm:$0xff] }
 0x366   : > { %v3298_v21 = vsel %vm3266_vm6, %v3169_v59, %v2331_v5  ;;  %4440 = vmatprep.mubr.bf16.mxu1 %v4317_v43  ;;  %v2329_v30 = vpop.permute.xlu0 %2328  ;;  %v2022_v41 = vrot.slane %v2020_v56, 1  ;;  %v9045_v43 = vld [vmem:[#allocation277_spill] sm:$0xff]  ;;  %v2479_v59 = vsel %vm2428_vm0, %v4731_v20, %v9048_v2  ;;  %v9049_v5 = vld [vmem:[#allocation12_spill] sm:$0xff]  ;;  %v4292_v9 = vcombine.low %v478_v25, %v478_v25  ;;  %v4735_v2 = vld [vmem:[%s4844_s22 + $0xa0] sm:$0xf] }
 0x367   : > { %v3296_v61 = vsel %vm3266_vm6, %v3167_v58, %v2329_v30  ;;  %2414 = vrot.lane.b32.xlu1 %v7366_v3, %s4792_s28  ;;  %v7546_v34 = vor.u32 %v2029_v19, %v2025_v18  ;;  %v2657_v58 = vsel %vm2621_vm1, %v2482_v45, %v9049_v5  ;;  %v9050_v30 = vld [vmem:[#allocation9_spill] sm:$0xff] }
 0x368   : > { %v4302_v47 = vcombine.low %v3296_v61, %v3298_v21  ;;  %2412 = vrot.lane.b32.xlu0 %v7353_v63, %s4792_s28  ;;  %v2011_v63 = vshrl.u32 %v4289_v8, 16  ;;  %v7549_v28 = vor.u32 %v2022_v41, %v2018_v17  ;;  %v2655_v53 = vsel %vm2621_vm1, %v2479_v59, %v9050_v30  ;;  %v9061_v17 = vld [vmem:[#allocation204_spill] sm:$0xff]  ;;  %v9062_v41 = vld [vmem:[#allocation259_spill] sm:$0xff]  ;;  %v9065_v59 = vld [vmem:[#allocation94_spill] sm:$0xff] }
 0x369   : > { %v2395_v3 = vpop.permute.xlu1 %2394  ;;  %v2786_v11 = vsel %vm2750_vm2, %v2657_v58, %v9051_v46  ;;  %v2784_v61 = vsel %vm2750_vm2, %v2655_v53, %v9052_v24  ;;  %v2485_v5 = vsel %vm2428_vm0, %v4735_v2, %v9065_v59  ;;  %v9066_v58 = vld [vmem:[#allocation301_spill] sm:$0xff]  ;;  %v9067_v46 = vld [vmem:[#allocation276_spill] sm:$0xff]  ;;  %v9068_v24 = vld [vmem:[#allocation143_spill] sm:$0xff] }
 0x36a   : > { %v3362_v31 = vsel %vm3266_vm6, %v3233_v42, %v2395_v3  ;;  %4409 = vmatmul.mubr.bf16.gmra.mxu0 %v4302_v47  ;;  %v2393_v7 = vpop.permute.xlu0 %2392  ;;  %v7536_v35 = vor.u32 %v2015_v49, %v2011_v63  ;;  %v2915_v38 = vsel %vm2879_vm3, %v2786_v11, %v9053_v0  ;;  %v9055_v47 = vld [vmem:[#allocation93_spill] sm:$0xff]  ;;  %v4734_v63 = vld [vmem:[%s4844_s22 + $0x1b0] sm:$0xf]  ;;  %v9059_v49 = vld [vmem:[#allocation142_spill] sm:$0xff] }
 0x36b   : > { %v3360_v57 = vsel %vm3266_vm6, %v3231_v62, %v2393_v7  ;;  %2354 = vrot.lane.b32.xlu1 %v9041_v14, %s4792_s28  ;;  %v2488_v26 = vsel %vm2428_vm0, %v4732_v27, %v9055_v47  ;;  %v4733_v42 = vld [vmem:[%s4844_s22 + $0x1b8] sm:$0xf]  ;;  %v479_v14 = vld [vmem:[%s6403_s30 + $0x44] sm:$0x1]  ;;  %v2575_v44 = vsel %vm2428_vm0, %v4734_v63, %v9059_v49  ;;  %v4736_v11 = vld [vmem:[%s4844_s22 + $0x1c8] sm:$0xf] }
 0x36c   : > { %v4318_v51 = vcombine.low %v3360_v57, %v3362_v31  ;;  %2352 = vrot.lane.b32.xlu0 %v9042_v36, %s4792_s28  ;;  %v9056_v3 = vld [vmem:[#allocation141_spill] sm:$0xff]  ;;  %v9057_v31 = vld [vmem:[#allocation18_spill] sm:$0xff]  ;;  %v9058_v57 = vld [vmem:[#allocation136_spill] sm:$0xff]  ;;  %v4293_v20 = vcombine.low %v478_v25, %v479_v14  ;;  %v2584_v25 = vsel %vm2428_vm0, %v4736_v11, %v9068_v24 }
 0x36d   : > { %v7531_v54 = vpop.permute.xlu1 %2129  ;;  %v2578_v62 = vsel %vm2428_vm0, %v4733_v42, %v9056_v3  ;;  %v2913_v7 = vsel %vm2879_vm3, %v2784_v61, %v9057_v31  ;;  %v9069_v61 = vld [vmem:[#allocation11_spill] sm:$0xff]  ;;  %v4737_v63 = vld [vmem:[%s4844_s22 + $0x1c0] sm:$0xf]  ;;  %v9075_v49 = vld [vmem:[#allocation144_spill] sm:$0xff] }
 0x36e   : > { %4441 = vmatmul.mubr.bf16.gmra.mxu1 %v4318_v51  ;;  %v7533_v29 = vpop.permute.xlu0 %2127  ;;  %v9060_v51 = vld [vmem:[#allocation203_spill] sm:$0xff]  ;;  %v3042_v56 = vsel %vm3008_vm4, %v2913_v7, %v6794_v12  ;;  %v2661_v0 = vsel %vm2621_vm1, %v2488_v26, %v9069_v61  ;;  %v9072_v7 = vld [vmem:[#allocation232_spill] sm:$0xff]  ;;  %v2296_v14 = vshll.u32 %v4293_v20, 16 }
 0x36f   : > { %2418 = vrot.lane.b32.xlu1 %v2009_v52, %s4792_s28  ;;  %v2721_v36 = vsel %vm2621_vm1, %v2578_v62, %v9060_v51  ;;  %v9070_v27 = vld [vmem:[#allocation171_spill] sm:$0xff] }
 0x370   : > { %2416 = vrot.lane.b32.xlu0 %v7363_v13, %s4792_s28  ;;  %v9071_v47 = vld [vmem:[#allocation231_spill] sm:$0xff] }
 0x371   : > { %v7540_v40 = vpop.permute.xlu1 %2133  ;;  %v2790_v42 = vsel %vm2750_vm2, %v2661_v0, %v9071_v47  ;;  %v9085_v0 = vld [vmem:[#allocation198_spill] sm:$0xff] }
 0x372   : > { %v7542_v8 = vpop.permute.xlu0 %2131 }
 0x373   : > { %2153 = vrot.lane.b32.xlu1 %v7536_v35, %s4790_s5 }
 0x374   : > { %2151 = vrot.lane.b32.xlu0 %v2009_v52, %s4790_s5  ;;  %v3044_v52 = vsel %vm3008_vm4, %v2915_v38, %v6792_v39  ;;  %v2719_v39 = vsel %vm2621_vm1, %v2575_v44, %v9061_v17  ;;  %v9076_v44 = vld [vmem:[#allocation285_spill] sm:$0xff]  ;;  %v9079_v17 = vld [vmem:[#allocation50_spill] sm:$0xff] }
 0x375   : > { %v2197_v32 = vpop.permute.xlu1 %2196  ;;  %v2848_v45 = vsel %vm2750_vm2, %v2719_v39, %v9063_v50  ;;  %v2725_v39 = vsel %vm2621_vm1, %v2584_v25, %v9079_v17  ;;  %v9081_v50 = vld [vmem:[#allocation46_spill] sm:$0xff]  ;;  %v4740_v17 = vld [vmem:[%s4844_s22 + $0x1d8] sm:$0xf] }
 0x376   : > { %v2195_v13 = vpop.permute.xlu0 %2194  ;;  %v3173_v18 = vsel %vm3137_vm5, %v3044_v52, %v2197_v32  ;;  %v9073_v52 = vld [vmem:[#allocation20_spill] sm:$0xff] }
 0x377   : > { %2157 = vrot.lane.b32.xlu1 %v7546_v34, %s4790_s5 }
 0x378   : > { %2155 = vrot.lane.b32.xlu0 %v7549_v28, %s4790_s5 }
 0x379   : > { %v2261_v15 = vpop.permute.xlu1 %2260 }
 0x37a   : > { %v2259_v16 = vpop.permute.xlu0 %2258 }
 0x37b   : > { %2220 = vrot.lane.b32.xlu1 %v9043_v48, %s4791_s20  ;;  %v2850_v48 = vsel %vm2750_vm2, %v2721_v36, %v9062_v41  ;;  %v9077_v36 = vld [vmem:[#allocation95_spill] sm:$0xff]  ;;  %v9080_v41 = vld [vmem:[#allocation44_spill] sm:$0xff] }
 0x37c   : > { %2218 = vrot.lane.b32.xlu0 %v9044_v10, %s4791_s20  ;;  %v3171_v10 = vsel %vm3137_vm5, %v3042_v56, %v2195_v13  ;;  %v2977_v13 = vsel %vm2879_vm3, %v2848_v45, %v9066_v58  ;;  %v2854_v45 = vsel %vm2750_vm2, %v2725_v39, %v9081_v50  ;;  %v9094_v39 = vld [vmem:[#allocation146_spill] sm:$0xff]  ;;  %v9096_v50 = vld [vmem:[#allocation147_spill] sm:$0xff] }
 0x37d   : > { %v7559_v4 = vpop.permute.xlu1 %2200  ;;  %v3106_v38 = vsel %vm3008_vm4, %v2977_v13, %v7533_v29  ;;  %v2919_v29 = vsel %vm2879_vm3, %v2790_v42, %v9073_v52  ;;  %v2298_v13 = vrot.slane %v2296_v14, 1  ;;  %v4739_v52 = vld [vmem:[%s4844_s22 + $0xb0] sm:$0xf] }
 0x37e   : > { %v7561_v23 = vpop.permute.xlu0 %2198  ;;  %v3235_v3 = vsel %vm3137_vm5, %v3106_v38, %v2259_v16  ;;  %v2581_v16 = vsel %vm2428_vm0, %v4737_v63, %v9075_v49  ;;  %v3048_v56 = vsel %vm3008_vm4, %v2919_v29, %v9077_v36  ;;  %v9090_v63 = vld [vmem:[#allocation174_spill] sm:$0xff] }
 0x37f   : > { %2284 = vrot.lane.b32.xlu1 %v9045_v43, %s4791_s20  ;;  %v9092_v36 = vld [vmem:[#allocation234_spill] sm:$0xff] }
 0x380   : > { %2282 = vrot.lane.b32.xlu0 %v9047_v6, %s4791_s20  ;;  %v9064_v6 = vld [vmem:[#allocation45_spill] sm:$0xff] }
 0x381   : > { %v7576_v21 = vpop.permute.xlu1 %2264  ;;  %v2979_v12 = vsel %vm2879_vm3, %v2850_v48, %v9064_v6  ;;  %v2723_v48 = vsel %vm2621_vm1, %v2581_v16, %v9080_v41  ;;  %v9082_v6 = vld [vmem:[#allocation47_spill] sm:$0xff]  ;;  %v9091_v16 = vld [vmem:[#allocation233_spill] sm:$0xff]  ;;  %v2590_v41 = vsel %vm2428_vm0, %v4740_v17, %v9094_v39 }
 0x382   : > { %v7582_v22 = vpop.permute.xlu0 %2262  ;;  %v3108_v30 = vsel %vm3008_vm4, %v2979_v12, %v7531_v54  ;;  %v2659_v54 = vsel %vm2621_vm1, %v2485_v5, %v9070_v27  ;;  %v2852_v12 = vsel %vm2750_vm2, %v2723_v48, %v9082_v6  ;;  %v9083_v5 = vld [vmem:[#allocation302_spill] sm:$0xff] }
 0x383   : > { %2224 = vrot.lane.b32.xlu1 %v9054_v1, %s4791_s20  ;;  %v3237_v1 = vsel %vm3137_vm5, %v3108_v30, %v2261_v15  ;;  %v2788_v26 = vsel %vm2750_vm2, %v2659_v54, %v9072_v7  ;;  %v9084_v30 = vld [vmem:[#allocation303_spill] sm:$0xff]  ;;  %v9087_v7 = vld [vmem:[#allocation96_spill] sm:$0xff]  ;;  %v9095_v48 = vld [vmem:[#allocation286_spill] sm:$0xff] }
 0x384   : > { %2222 = vrot.lane.b32.xlu0 %v9058_v57, %s4791_s20  ;;  %v9074_v57 = vld [vmem:[#allocation40_spill] sm:$0xff]  ;;  %v2917_v51 = vsel %vm2879_vm3, %v2788_v26, %v9076_v44  ;;  %v9097_v6 = vld [vmem:[#allocation206_spill] sm:$0xff] }
 0x385   : > { %v2335_v19 = vpop.permute.xlu1 %2334 }
 0x386   : > { %v3302_v43 = vsel %vm3266_vm6, %v3173_v18, %v2335_v19  ;;  %v2333_v33 = vpop.permute.xlu0 %2332  ;;  %v9078_v19 = vld [vmem:[#allocation37_spill] sm:$0xff] }
 0x387   : > { %v3300_v32 = vsel %vm3266_vm6, %v3171_v10, %v2333_v33  ;;  %2288 = vrot.lane.b32.xlu1 %v4292_v9, %s4791_s20  ;;  %v3046_v10 = vsel %vm3008_vm4, %v2917_v51, %v6802_v55  ;;  %v2983_v55 = vsel %vm2879_vm3, %v2854_v45, %v9083_v5  ;;  %v9098_v5 = vld [vmem:[#allocation207_spill] sm:$0xff] }
 0x388   : > { %v4303_v53 = vcombine.low %v3300_v32, %v3302_v43  ;;  %2286 = vrot.lane.b32.xlu0 %v9067_v46, %s4791_s20  ;;  %v3177_v43 = vsel %vm3137_vm5, %v3048_v56, %v7559_v4  ;;  %v3175_v32 = vsel %vm3137_vm5, %v3046_v10, %v7561_v23  ;;  %v2294_v4 = vshrl.u32 %v4293_v20, 16 }
 0x389   : > { %v2399_v9 = vpop.permute.xlu1 %2398  ;;  %v3112_v23 = vsel %vm3008_vm4, %v2983_v55, %v7540_v40 }
 0x38a   : > { %v3366_v62 = vsel %vm3266_vm6, %v3237_v1, %v2399_v9  ;;  %4412 = vmatprep.mubr.bf16.mxu0 %v4303_v53  ;;  %v2397_v31 = vpop.permute.xlu0 %2396  ;;  %v2981_v53 = vsel %vm2879_vm3, %v2852_v12, %v9084_v30  ;;  %v3241_v24 = vsel %vm3137_vm5, %v3112_v23, %v7576_v21  ;;  %v2729_v12 = vsel %vm2621_vm1, %v2590_v41, %v9097_v6  ;;  %v9100_v23 = vld [vmem:[#allocation98_spill] sm:$0xff]  ;;  %v9111_v41 = vld [vmem:[#allocation208_spill] sm:$0xff] }
 0x38b   : > { %v3364_v15 = vsel %vm3266_vm6, %v3235_v3, %v2397_v31  ;;  %2358 = vrot.lane.b32.xlu1 %v9074_v57, %s4792_s28  ;;  %v3110_v11 = vsel %vm3008_vm4, %v2981_v53, %v7542_v8  ;;  %v9086_v8 = vld [vmem:[#allocation39_spill] sm:$0xff]  ;;  %v4738_v31 = vld [vmem:[%s4844_s22 + $0xb8] sm:$0xf] }
 0x38c   : > { %v4319_v18 = vcombine.low %v3364_v15, %v3366_v62  ;;  %2356 = vrot.lane.b32.xlu0 %v9078_v19, %s4792_s28  ;;  %v2494_v26 = vsel %vm2428_vm0, %v4738_v31, %v9087_v7  ;;  %v9089_v15 = vld [vmem:[#allocation173_spill] sm:$0xff]  ;;  %v4742_v53 = vld [vmem:[%s4844_s22 + $0xc8] sm:$0xf] }
 0x38d   : > { %v2339_v33 = vpop.permute.xlu1 %2338  ;;  %v2665_v57 = vsel %vm2621_vm1, %v2494_v26, %v9089_v15  ;;  %v9105_v31 = vld [vmem:[#allocation43_spill] sm:$0xff] }
 0x38e   : > { %v3306_v2 = vsel %vm3266_vm6, %v3177_v43, %v2339_v33  ;;  %4444 = vmatprep.mubr.bf16.mxu1 %v4319_v18  ;;  %v2337_v59 = vpop.permute.xlu0 %2336  ;;  %v2794_v44 = vsel %vm2750_vm2, %v2665_v57, %v9091_v16  ;;  %v9093_v18 = vld [vmem:[#allocation22_spill] sm:$0xff]  ;;  %v4741_v33 = vld [vmem:[%s4844_s22 + $0x1d0] sm:$0xf]  ;;  %v9106_v26 = vld [vmem:[#allocation175_spill] sm:$0xff] }
 0x38f   : > { %v3304_v58 = vsel %vm3266_vm6, %v3175_v32, %v2337_v59  ;;  %2422 = vrot.lane.b32.xlu1 %v7549_v28, %s4792_s28  ;;  %v3239_v28 = vsel %vm3137_vm5, %v3110_v11, %v7582_v22  ;;  %v2923_v19 = vsel %vm2879_vm3, %v2794_v44, %v9093_v18  ;;  %v2587_v45 = vsel %vm2428_vm0, %v4741_v33, %v9096_v50  ;;  %v4745_v57 = vld [vmem:[%s4844_s22 + $0x1e0] sm:$0xf]  ;;  %v9113_v33 = vld [vmem:[#allocation145_spill] sm:$0xff] }
 0x390   : > { %v4304_v46 = vcombine.low %v3304_v58, %v3306_v2  ;;  %2420 = vrot.lane.b32.xlu0 %v7536_v35, %s4792_s28  ;;  %v2299_v35 = vor.u32 %v2298_v13, %v2294_v4  ;;  %v3052_v43 = vsel %vm3008_vm4, %v2923_v19, %v6808_v60  ;;  %v2727_v55 = vsel %vm2621_vm1, %v2587_v45, %v9098_v5  ;;  %v9099_v58 = vld [vmem:[#allocation49_spill] sm:$0xff]  ;;  %v9110_v19 = vld [vmem:[#allocation287_spill] sm:$0xff] }
 0x391   : > { %v2403_v25 = vpop.permute.xlu1 %2402  ;;  %v2858_v60 = vsel %vm2750_vm2, %v2729_v12, %v9099_v58  ;;  %v9114_v12 = vld [vmem:[#allocation209_spill] sm:$0xff] }
 0x392   : > { %v3370_v20 = vsel %vm3266_vm6, %v3241_v24, %v2403_v25  ;;  %4413 = vmatmul.mubr.bf16.gmra.mxu0 %v4304_v46  ;;  %v2401_v61 = vpop.permute.xlu0 %2400  ;;  %v2500_v46 = vsel %vm2428_vm0, %v4742_v53, %v9100_v23  ;;  %v9102_v24 = vld [vmem:[#allocation304_spill] sm:$0xff] }
 0x393   : > { %v3368_v40 = vsel %vm3266_vm6, %v3239_v28, %v2401_v61  ;;  %2362 = vrot.lane.b32.xlu1 %v9085_v0, %s4792_s28  ;;  %v2987_v25 = vsel %vm2879_vm3, %v2858_v60, %v9102_v24  ;;  %v9103_v61 = vld [vmem:[#allocation99_spill] sm:$0xff]  ;;  %v9104_v0 = vld [vmem:[#allocation305_spill] sm:$0xff]  ;;  %v9116_v60 = vld [vmem:[#allocation54_spill] sm:$0xff] }
 0x394   : > { %v4320_v38 = vcombine.low %v3368_v40, %v3370_v20  ;;  %2360 = vrot.lane.b32.xlu0 %v9086_v8, %s4792_s28  ;;  %v4743_v20 = vld [vmem:[%s4844_s22 + $0xc0] sm:$0xf]  ;;  %v9118_v53 = vld [vmem:[#allocation172_spill] sm:$0xff] }
 0x395   : > { %v2138_v21 = vpop.permute.xlu1 %2137  ;;  %v2497_v40 = vsel %vm2428_vm0, %v4743_v20, %v9103_v61 }
 0x396   : > { %4445 = vmatmul.mubr.bf16.gmra.mxu1 %v4320_v38  ;;  %v2136_v1 = vpop.permute.xlu0 %2135  ;;  %v3116_v38 = vsel %vm3008_vm4, %v2987_v25, %v2138_v21  ;;  %v9107_v21 = vld [vmem:[#allocation148_spill] sm:$0xff] }
 0x397   : > { %2426 = vrot.lane.b32.xlu1 %v2299_v35, %s4792_s28 }
 0x398   : > { %2424 = vrot.lane.b32.xlu0 %v7546_v34, %s4792_s28  ;;  %v9088_v34 = vld [vmem:[#allocation97_spill] sm:$0xff] }
 0x399   : > { %v7703_v22 = vpop.permute.xlu1 %2141  ;;  %v2491_v29 = vsel %vm2428_vm0, %v4739_v52, %v9088_v34  ;;  %v2669_v52 = vsel %vm2621_vm1, %v2500_v46, %v9106_v26 }
 0x39a   : > { %v7705_v9 = vpop.permute.xlu0 %2139  ;;  %v2663_v49 = vsel %vm2621_vm1, %v2491_v29, %v9090_v63  ;;  %v2593_v63 = vsel %vm2428_vm0, %v4745_v57, %v9107_v21 }
 0x39b   : > { %v2792_v56 = vsel %vm2750_vm2, %v2663_v49, %v9092_v36  ;;  %v9108_v49 = vld [vmem:[#allocation235_spill] sm:$0xff] }
 0x39c   : > { %v2921_v10 = vsel %vm2879_vm3, %v2792_v56, %v9095_v48  ;;  %v2798_v16 = vsel %vm2750_vm2, %v2669_v52, %v9108_v49  ;;  %v9109_v56 = vld [vmem:[#allocation176_spill] sm:$0xff] }
 0x39d   : > { %v2205_v27 = vpop.permute.xlu1 %2204  ;;  %v3050_v32 = vsel %vm3008_vm4, %v2921_v10, %v6810_v37  ;;  %v9101_v37 = vld [vmem:[#allocation51_spill] sm:$0xff]  ;;  %v2667_v18 = vsel %vm2621_vm1, %v2497_v40, %v9109_v56  ;;  %v2927_v17 = vsel %vm2879_vm3, %v2798_v16, %v9110_v19  ;;  %v9112_v10 = vld [vmem:[#allocation236_spill] sm:$0xff] }
 0x39e   : > { %v2203_v54 = vpop.permute.xlu0 %2202  ;;  %v3181_v2 = vsel %vm3137_vm5, %v3052_v43, %v2205_v27  ;;  %v2856_v11 = vsel %vm2750_vm2, %v2727_v55, %v9101_v37  ;;  %v7770_v27 = vld [vmem:[%s8208_s3] ss:$0 sm:$0xff]  ;;  %v2796_v43 = vsel %vm2750_vm2, %v2667_v18, %v9112_v10  ;;  %v3056_v50 = vsel %vm3008_vm4, %v2927_v17, %v9113_v33  ;;  %v9120_v40 = vld [vmem:[#allocation307_spill] sm:$0xff]  ;;  %v4747_v33 = vld [vmem:[%s4844_s22 + $0xd8] sm:$0xf] }
 0x39f   : > { %v3179_v4 = vsel %vm3137_vm5, %v3050_v32, %v2203_v54  ;;  %v2985_v35 = vsel %vm2879_vm3, %v2856_v11, %v9104_v0  ;;  %v4744_v54 = vld [vmem:[%s4844_s22 + $0x1e8] sm:$0xf]  ;;  %v2731_v32 = vsel %vm2621_vm1, %v2593_v63, %v9114_v12 }
 0x3a0   : > { %v2596_v7 = vsel %vm2428_vm0, %v4744_v54, %v9105_v31  ;;  %v3114_v34 = vsel %vm3008_vm4, %v2985_v35, %v2136_v1 }
 0x3a1   : > { %v2269_v47 = vpop.permute.xlu1 %2268  ;;  %v2733_v48 = vsel %vm2621_vm1, %v2596_v7, %v9111_v41 }
 0x3a2   : > { %v2267_v42 = vpop.permute.xlu0 %2266  ;;  %v3245_v29 = vsel %vm3137_vm5, %v3116_v38, %v2269_v47 }
 0x3a3   : > { %v3243_v44 = vsel %vm3137_vm5, %v3114_v34, %v2267_v42 }
 0x3a5   : > { %v7707_v3 = vpop.permute.xlu1 %2208 }
 0x3a6   : > { %v7709_v62 = vpop.permute.xlu0 %2206  ;;  %v3185_v5 = vsel %vm3137_vm5, %v3056_v50, %v7707_v3  ;;  %v9119_v3 = vld [vmem:[#allocation306_spill] sm:$0xff]  ;;  %v9123_v50 = vld [vmem:[#allocation101_spill] sm:$0xff] }
 0x3a9   : > { %v7719_v14 = vpop.permute.xlu1 %2272 }
 0x3aa   : > { %v7725_v51 = vpop.permute.xlu0 %2270 }
 0x3ad   : > { %v2343_v59 = vpop.permute.xlu1 %2342 }
 0x3ae   : > { %v3310_v13 = vsel %vm3266_vm6, %v3181_v2, %v2343_v59  ;;  %v2341_v30 = vpop.permute.xlu0 %2340  ;;  %v9115_v2 = vld [vmem:[#allocation288_spill] sm:$0xff] }
 0x3af   : > { %v3308_v28 = vsel %vm3266_vm6, %v3179_v4, %v2341_v30  ;;  %v2925_v59 = vsel %vm2879_vm3, %v2796_v43, %v9115_v2  ;;  %v2862_v4 = vsel %vm2750_vm2, %v2733_v48, %v9116_v60  ;;  %v9122_v48 = vld [vmem:[#allocation177_spill] sm:$0xff]  ;;  %v9127_v60 = vld [vmem:[#allocation102_spill] sm:$0xff] }
 0x3b0   : > { %v4305_v8 = vcombine.low %v3308_v28, %v3310_v13  ;;  %v9117_v13 = vld [vmem:[#allocation55_spill] sm:$0xff]  ;;  %v3054_v23 = vsel %vm3008_vm4, %v2925_v59, %v9118_v53  ;;  %v2991_v24 = vsel %vm2879_vm3, %v2862_v4, %v9119_v3  ;;  %v9126_v59 = vld [vmem:[#allocation26_spill] sm:$0xff] }
 0x3b1   : > { %v2407_v15 = vpop.permute.xlu1 %2406  ;;  %v2860_v30 = vsel %vm2750_vm2, %v2731_v32, %v9117_v13  ;;  %v3183_v25 = vsel %vm3137_vm5, %v3054_v23, %v7709_v62  ;;  %v3120_v35 = vsel %vm3008_vm4, %v2991_v24, %v7703_v22  ;;  %v9125_v32 = vld [vmem:[#allocation178_spill] sm:$0xff]  ;;  %v4750_v3 = vld [vmem:[%s4844_s22 + $0xe8] sm:$0xf] }
 0x3b2   : > { %v3374_v36 = vsel %vm3266_vm6, %v3245_v29, %v2407_v15  ;;  %v4398_v1 = vpop.f32.mrf.mxu0  ;;  %4416 = vmatprep.mubr.bf16.mxu0 %v4305_v8  ;;  %v2405_v47 = vpop.permute.xlu0 %2404  ;;  %v2989_v0 = vsel %vm2879_vm3, %v2860_v30, %v9120_v40  ;;  %v3249_v62 = vsel %vm3137_vm5, %v3120_v35, %v7719_v14  ;;  %v4749_v13 = vld [vmem:[%s4844_s22 + $0x200] sm:$0xf]  ;;  %v9128_v30 = vld [vmem:[#allocation149_spill] sm:$0xff]  ;;  %v9131_v24 = vld [vmem:[#allocation103_spill] sm:$0xff] }
 0x3b3   : > { %v3701_v39 = vadd.f32 %v4398_v1, %v7770_v27  ;;  %v3372_v42 = vsel %vm3266_vm6, %v3243_v44, %v2405_v47  ;;  %v3118_v22 = vsel %vm3008_vm4, %v2989_v0, %v7705_v9  ;;  %v2602_v53 = vsel %vm2428_vm0, %v4749_v13, %v9128_v30  ;;  %v9129_v23 = vld [vmem:[#allocation238_spill] sm:$0xff] }
 0x3b4   : > { %v4321_v45 = vcombine.low %v3372_v42, %v3374_v36  ;;  %v3692_v6 = vpop.f32.mrf.mxu0  ;;  %v3247_v15 = vsel %vm3137_vm5, %v3118_v22, %v7725_v51  ;;  %v9121_v42 = vld [vmem:[#allocation100_spill] sm:$0xff] }
 0x3b5   : > { %3949 = vst [vmem:[%s7789_s7 + $0x10] sm:$0xff] %v3701_v39  ;;  %v3693_v55 = vadd.f32 %v7770_v27, %v3692_v6  ;;  %v2347_v58 = vpop.permute.xlu1 %2346  ;;  %v4746_v39 = vld [vmem:[%s4844_s22 + $0xe0] sm:$0xf]  ;;  %v9124_v6 = vld [vmem:[#allocation237_spill] sm:$0xff]  ;;  %v4752_v22 = vld [vmem:[%s4844_s22 + $0x210] sm:$0xf] }
 0x3b6   : > { %v3314_v46 = vsel %vm3266_vm6, %v3185_v5, %v2347_v58  ;;  %v4399_v37 = vpop.f32.mrf.mxu0  ;;  %v4430_v11 = vpop.f32.mrf.mxu1  ;;  %4448 = vmatprep.mubr.bf16.mxu1 %v4321_v45  ;;  %v2506_v41 = vsel %vm2428_vm0, %v4746_v39, %v9121_v42  ;;  %v2503_v45 = vsel %vm2428_vm0, %v4747_v33, %v9123_v50  ;;  %v4748_v58 = vld [vmem:[%s4844_s22 + $0xf0] sm:$0xf]  ;;  %v9141_v42 = vld [vmem:[#allocation262_spill] sm:$0xff]  ;;  %v9142_v33 = vld [vmem:[#allocation19_spill] sm:$0xff] }
 0x3b7   : > { %3947 = vst [vmem:[%s7789_s7] sm:$0xff] %v3693_v55  ;;  %v3704_v28 = vadd.f32 %v4399_v37, %v7770_v27  ;;  %v3829_v20 = vadd.f32 %v4430_v11, %v7770_v27  ;;  %v2345_v61 = vpop.permute.xlu0 %2344  ;;  %v2673_v10 = vsel %vm2621_vm1, %v2506_v41, %v9122_v48  ;;  %v2671_v2 = vsel %vm2621_vm1, %v2503_v45, %v9125_v32  ;;  %v9130_v37 = vld [vmem:[#allocation205_spill] sm:$0xff] }
 0x3b8   : > { %v3312_v38 = vsel %vm3266_vm6, %v3183_v25, %v2345_v61  ;;  %v3695_v8 = vpop.f32.mrf.mxu0  ;;  %v3820_v54 = vpop.f32.mrf.mxu1  ;;  %v2802_v12 = vsel %vm2750_vm2, %v2673_v10, %v9124_v6  ;;  %v2512_v4 = vsel %vm2428_vm0, %v4748_v58, %v9127_v60  ;;  %v2509_v25 = vsel %vm2428_vm0, %v4750_v3, %v9131_v24  ;;  %v9133_v61 = vld [vmem:[#allocation289_spill] sm:$0xff] }
 0x3b9   : > { %3950 = vst [vmem:[%s7789_s7 + $0x18] sm:$0xff] %v3704_v28  ;;  %3981 = vst [vmem:[%s7789_s7 + $0x110] sm:$0xff] %v3829_v20  ;;  %v4306_v31 = vcombine.low %v3312_v38, %v3314_v46  ;;  %v3696_v7 = vadd.f32 %v7770_v27, %v3695_v8  ;;  %v3821_v26 = vadd.f32 %v7770_v27, %v3820_v54  ;;  %v2411_v52 = vpop.permute.xlu1 %2410  ;;  %v9132_v28 = vld [vmem:[#allocation210_spill] sm:$0xff]  ;;  %v4751_v38 = vld [vmem:[%s4844_s22 + $0x1f8] sm:$0xf] }
 0x3ba   : > { %v3378_v34 = vsel %vm3266_vm6, %v3249_v62, %v2411_v52  ;;  %v4431_v29 = vpop.f32.mrf.mxu1  ;;  %v2931_v5 = vsel %vm2879_vm3, %v2802_v12, %v9126_v59  ;;  %v2800_v46 = vsel %vm2750_vm2, %v2671_v2, %v9129_v23  ;;  %v2737_v20 = vsel %vm2621_vm1, %v2602_v53, %v9132_v28  ;;  %v9134_v8 = vld [vmem:[#allocation150_spill] sm:$0xff]  ;;  %v9135_v62 = vld [vmem:[#allocation261_spill] sm:$0xff]  ;;  %v9144_v2 = vld [vmem:[#allocation179_spill] sm:$0xff] }
 0x3bb   : > { %3948 = vst [vmem:[%s7789_s7 + $0x8] sm:$0xff] %v3696_v7  ;;  %3979 = vst [vmem:[%s7789_s7 + $0x100] sm:$0xff] %v3821_v26  ;;  %4417 = vmatmul.mubr.bf16.gmra.mxu0 %v4306_v31  ;;  %v3832_v14 = vadd.f32 %v4431_v29, %v7770_v27  ;;  %v2409_v57 = vpop.permute.xlu0 %2408  ;;  %v3060_v11 = vsel %vm3008_vm4, %v2931_v5, %v9130_v37  ;;  %v2929_v40 = vsel %vm2879_vm3, %v2800_v46, %v9133_v61  ;;  %v9136_v7 = vld [vmem:[#allocation56_spill] sm:$0xff]  ;;  %v9143_v45 = vld [vmem:[#allocation309_spill] sm:$0xff] }
 0x3bc   : > { %v3376_v21 = vsel %vm3266_vm6, %v3247_v15, %v2409_v57  ;;  %v3823_v63 = vpop.f32.mrf.mxu1  ;;  %v2599_v54 = vsel %vm2428_vm0, %v4751_v38, %v9134_v8  ;;  %v2866_v31 = vsel %vm2750_vm2, %v2737_v20, %v9135_v62  ;;  %v3058_v26 = vsel %vm3008_vm4, %v2929_v40, %v9136_v7  ;;  %v9138_v15 = vld [vmem:[#allocation211_spill] sm:$0xff]  ;;  %v9139_v57 = vld [vmem:[#allocation308_spill] sm:$0xff]  ;;  %v9147_v53 = vld [vmem:[#allocation290_spill] sm:$0xff] }
 0x3bd   : > { %3982 = vst [vmem:[%s7789_s7 + $0x118] sm:$0xff] %v3832_v14  ;;  %v4322_v49 = vcombine.low %v3376_v21, %v3378_v34  ;;  %v3824_v9 = vadd.f32 %v7770_v27, %v3823_v63  ;;  %v2146_v16 = vpop.permute.xlu1 %2145  ;;  %v9137_v34 = vld [vmem:[#allocation151_spill] sm:$0xff]  ;;  %v2735_v14 = vsel %vm2621_vm1, %v2599_v54, %v9138_v15  ;;  %v2995_v21 = vsel %vm2879_vm3, %v2866_v31, %v9139_v57  ;;  %v9153_v31 = vld [vmem:[#allocation264_spill] sm:$0xff] }
 0x3be   : > { %v2608_v29 = vsel %vm2428_vm0, %v4752_v22, %v9137_v34  ;;  %v2864_v41 = vsel %vm2750_vm2, %v2735_v14, %v9141_v42  ;;  %v3124_v48 = vsel %vm3008_vm4, %v2995_v21, %v2146_v16  ;;  %v2677_v50 = vsel %vm2621_vm1, %v2512_v4, %v9142_v33  ;;  %v9145_v5 = vld [vmem:[#allocation239_spill] sm:$0xff]  ;;  %v9146_v4 = vld [vmem:[#allocation64_spill] sm:$0xff] }
 0x3bf   : > { %3980 = vst [vmem:[%s7789_s7 + $0x108] sm:$0xff] %v3824_v9  ;;  %4449 = vmatmul.mubr.bf16.gmra.mxu1 %v4322_v49  ;;  %v2144_v44 = vpop.permute.xlu0 %2143  ;;  %v4753_v9 = vld [vmem:[%s4844_s22 + $0x208] sm:$0xf]  ;;  %v2993_v6 = vsel %vm2879_vm3, %v2864_v41, %v9143_v45  ;;  %v2675_v59 = vsel %vm2621_vm1, %v2509_v25, %v9144_v2  ;;  %v2806_v58 = vsel %vm2750_vm2, %v2677_v50, %v9145_v5  ;;  %v9150_v25 = vld [vmem:[#allocation58_spill] sm:$0xff] }
 0x3c0   : > { %v3122_v16 = vsel %vm3008_vm4, %v2993_v6, %v2144_v44  ;;  %v2741_v30 = vsel %vm2621_vm1, %v2608_v29, %v9146_v4  ;;  %v9149_v44 = vld [vmem:[#allocation240_spill] sm:$0xff]  ;;  %v9151_v40 = vld [vmem:[#allocation291_spill] sm:$0xff]  ;;  %v9155_v29 = vld [vmem:[#allocation310_spill] sm:$0xff] }
 0x3c1   : > { %v7848_v51 = vpop.permute.xlu1 %2149  ;;  %v2804_v24 = vsel %vm2750_vm2, %v2675_v59, %v9149_v44  ;;  %v9152_v54 = vld [vmem:[#allocation263_spill] sm:$0xff] }
 0x3c2   : > { %v2870_v62 = vsel %vm2750_vm2, %v2741_v30, %v9152_v54  ;;  %v9163_v54 = vld [vmem:[#allocation109_spill] sm:$0xff] }
 0x3c3   : > { %v7850_v36 = vpop.permute.xlu0 %2147  ;;  %v2999_v15 = vsel %vm2879_vm3, %v2870_v62, %v9155_v29  ;;  %v4758_v29 = vld [vmem:[%s4844_s22 + $0x108] sm:$0xf] }
 0x3c5   : > { %v2213_v1 = vpop.permute.xlu1 %2212 }
 0x3c6   : > { %v3189_v0 = vsel %vm3137_vm5, %v3060_v11, %v2213_v1  ;;  %v9140_v1 = vld [vmem:[#allocation152_spill] sm:$0xff]  ;;  %v9148_v11 = vld [vmem:[#allocation59_spill] sm:$0xff] }
 0x3c7   : > { %v2211_v47 = vpop.permute.xlu0 %2210  ;;  %v2605_v39 = vsel %vm2428_vm0, %v4753_v9, %v9140_v1  ;;  %v3128_v1 = vsel %vm3008_vm4, %v2999_v15, %v7848_v51  ;;  %v9167_v15 = vld [vmem:[#allocation110_spill] sm:$0xff] }
 0x3c8   : > { %v3187_v63 = vsel %vm3137_vm5, %v3058_v26, %v2211_v47  ;;  %v2739_v3 = vsel %vm2621_vm1, %v2605_v39, %v9148_v11  ;;  %v9154_v26 = vld [vmem:[#allocation60_spill] sm:$0xff]  ;;  %v9158_v11 = vld [vmem:[#allocation181_spill] sm:$0xff] }
 0x3c9   : > { %v2277_v56 = vpop.permute.xlu1 %2276  ;;  %v2868_v7 = vsel %vm2750_vm2, %v2739_v3, %v9153_v31  ;;  %v4757_v31 = vld [vmem:[%s4844_s22 + $0x220] sm:$0xf] }
 0x3ca   : > { %v3253_v47 = vsel %vm3137_vm5, %v3124_v48, %v2277_v56  ;;  %v2935_v56 = vsel %vm2879_vm3, %v2806_v58, %v9147_v53 }
 0x3cb   : > { %v2275_v18 = vpop.permute.xlu0 %2274  ;;  %v3064_v28 = vsel %vm3008_vm4, %v2935_v56, %v9150_v25  ;;  %v9159_v25 = vld [vmem:[#allocation106_spill] sm:$0xff] }
 0x3cc   : > { %v3251_v23 = vsel %vm3137_vm5, %v3122_v16, %v2275_v18  ;;  %v2933_v18 = vsel %vm2879_vm3, %v2804_v24, %v9151_v40  ;;  %v4755_v24 = vld [vmem:[%s4844_s22 + $0xf8] sm:$0xf]  ;;  %v9161_v40 = vld [vmem:[#allocation182_spill] sm:$0xff] }
 0x3cd   : > { %v7852_v19 = vpop.permute.xlu1 %2216 }
 0x3cf   : > { %v7854_v17 = vpop.permute.xlu0 %2214 }
 0x3d1   : > { %v7861_v43 = vpop.permute.xlu1 %2280 }
 0x3d3   : > { %v7872_v55 = vpop.permute.xlu0 %2278 }
 0x3d5   : > { %v2351_v35 = vpop.permute.xlu1 %2350 }
 0x3d6   : > { %v3318_v52 = vsel %vm3266_vm6, %v3189_v0, %v2351_v35  ;;  %v3193_v0 = vsel %vm3137_vm5, %v3064_v28, %v7852_v19  ;;  %v2515_v28 = vsel %vm2428_vm0, %v4755_v24, %v9159_v25  ;;  %v9178_v24 = vld [vmem:[#allocation183_spill] sm:$0xff] }
 0x3d7   : > { %v2349_v49 = vpop.permute.xlu0 %2348 }
 0x3d8   : > { %v3316_v10 = vsel %vm3266_vm6, %v3187_v63, %v2349_v49  ;;  %v9156_v49 = vld [vmem:[#allocation311_spill] sm:$0xff] }
 0x3d9   : > { %v4307_v12 = vcombine.low %v3316_v10, %v3318_v52  ;;  %v2415_v32 = vpop.permute.xlu1 %2414  ;;  %v3062_v52 = vsel %vm3008_vm4, %v2933_v18, %v9154_v26  ;;  %v2997_v9 = vsel %vm2879_vm3, %v2868_v7, %v9156_v49  ;;  %v2679_v18 = vsel %vm2621_vm1, %v2515_v28, %v9161_v40  ;;  %v9164_v7 = vld [vmem:[#allocation154_spill] sm:$0xff]  ;;  %v9179_v28 = vld [vmem:[#allocation312_spill] sm:$0xff] }
 0x3da   : > { %v3382_v60 = vsel %vm3266_vm6, %v3253_v47, %v2415_v32  ;;  %v4402_v13 = vpop.f32.mrf.mxu0  ;;  %v3191_v14 = vsel %vm3137_vm5, %v3062_v52, %v7854_v17  ;;  %v3257_v17 = vsel %vm3137_vm5, %v3128_v1, %v7861_v43  ;;  %v3126_v51 = vsel %vm3008_vm4, %v2997_v9, %v7850_v36  ;;  %v9165_v52 = vld [vmem:[#allocation242_spill] sm:$0xff] }
 0x3db   : > { %v3717_v46 = vadd.f32 %v4402_v13, %v7770_v27  ;;  %4420 = vmatprep.mubr.bf16.mxu0 %v4307_v12  ;;  %v2413_v37 = vpop.permute.xlu0 %2412  ;;  %v3255_v47 = vsel %vm3137_vm5, %v3126_v51, %v7872_v55  ;;  %v2614_v26 = vsel %vm2428_vm0, %v4757_v31, %v9164_v7  ;;  %v4760_v51 = vld [vmem:[%s4844_s22 + $0x230] sm:$0xf] }
 0x3dc   : > { %v3380_v20 = vsel %vm3266_vm6, %v3251_v23, %v2413_v37  ;;  %v3708_v61 = vpop.f32.mrf.mxu0  ;;  %v4754_v23 = vld [vmem:[%s4844_s22 + $0x100] sm:$0xf] }
 0x3dd   : > { %3953 = vst [vmem:[%s7789_s7 + $0x30] sm:$0xff] %v3717_v46  ;;  %v4323_v35 = vcombine.low %v3380_v20, %v3382_v60  ;;  %v3709_v38 = vadd.f32 %v7770_v27, %v3708_v61  ;;  %v2355_v8 = vpop.permute.xlu1 %2354  ;;  %v9157_v46 = vld [vmem:[#allocation105_spill] sm:$0xff] }
 0x3de   : > { %v3322_v22 = vsel %vm3266_vm6, %v3193_v0, %v2355_v8  ;;  %v4403_v34 = vpop.f32.mrf.mxu0  ;;  %v4434_v19 = vpop.f32.mrf.mxu1  ;;  %v2518_v37 = vsel %vm2428_vm0, %v4754_v23, %v9157_v46  ;;  %v9160_v20 = vld [vmem:[#allocation241_spill] sm:$0xff]  ;;  %v9162_v0 = vld [vmem:[#allocation292_spill] sm:$0xff]  ;;  %v9177_v46 = vld [vmem:[#allocation266_spill] sm:$0xff] }
 0x3df   : > { %3951 = vst [vmem:[%s7789_s7 + $0x20] sm:$0xff] %v3709_v38  ;;  %v3720_v57 = vadd.f32 %v4403_v34, %v7770_v27  ;;  %v3845_v21 = vadd.f32 %v4434_v19, %v7770_v27  ;;  %4452 = vmatprep.mubr.bf16.mxu1 %v4323_v35  ;;  %v2353_v63 = vpop.permute.xlu0 %2352  ;;  %v2681_v3 = vsel %vm2621_vm1, %v2518_v37, %v9158_v11  ;;  %v4756_v8 = vld [vmem:[%s4844_s22 + $0x110] sm:$0xf]  ;;  %v9166_v34 = vld [vmem:[#allocation313_spill] sm:$0xff] }
 0x3e0   : > { %v3320_v39 = vsel %vm3266_vm6, %v3191_v14, %v2353_v63  ;;  %v3711_v42 = vpop.f32.mrf.mxu0  ;;  %v3836_v41 = vpop.f32.mrf.mxu1  ;;  %v2810_v61 = vsel %vm2750_vm2, %v2681_v3, %v9160_v20  ;;  %v2524_v62 = vsel %vm2428_vm0, %v4756_v8, %v9163_v54  ;;  %v2521_v14 = vsel %vm2428_vm0, %v4758_v29, %v9167_v15  ;;  %v9169_v63 = vld [vmem:[#allocation293_spill] sm:$0xff] }
 0x3e1   : > { %3954 = vst [vmem:[%s7789_s7 + $0x38] sm:$0xff] %v3720_v57  ;;  %3985 = vst [vmem:[%s7789_s7 + $0x130] sm:$0xff] %v3845_v21  ;;  %v4308_v48 = vcombine.low %v3320_v39, %v3322_v22  ;;  %v3712_v10 = vadd.f32 %v7770_v27, %v3711_v42  ;;  %v3837_v33 = vadd.f32 %v7770_v27, %v3836_v41  ;;  %v2419_v50 = vpop.permute.xlu1 %2418  ;;  %v9168_v57 = vld [vmem:[#allocation63_spill] sm:$0xff]  ;;  %v4759_v39 = vld [vmem:[%s4844_s22 + $0x218] sm:$0xf] }
 0x3e2   : > { %v3386_v45 = vsel %vm3266_vm6, %v3257_v17, %v2419_v50  ;;  %v4435_v6 = vpop.f32.mrf.mxu1  ;;  %v2939_v35 = vsel %vm2879_vm3, %v2810_v61, %v9162_v0  ;;  %v2808_v22 = vsel %vm2750_vm2, %v2679_v18, %v9165_v52  ;;  %v2745_v21 = vsel %vm2621_vm1, %v2614_v26, %v9168_v57  ;;  %v9170_v42 = vld [vmem:[#allocation155_spill] sm:$0xff]  ;;  %v9171_v17 = vld [vmem:[#allocation265_spill] sm:$0xff]  ;;  %v9180_v18 = vld [vmem:[#allocation184_spill] sm:$0xff] }
 0x3e3   : > { %3952 = vst [vmem:[%s7789_s7 + $0x28] sm:$0xff] %v3712_v10  ;;  %3983 = vst [vmem:[%s7789_s7 + $0x120] sm:$0xff] %v3837_v33  ;;  %4421 = vmatmul.mubr.bf16.gmra.mxu0 %v4308_v48  ;;  %v3848_v43 = vadd.f32 %v4435_v6, %v7770_v27  ;;  %v2417_v12 = vpop.permute.xlu0 %2416  ;;  %v3068_v19 = vsel %vm3008_vm4, %v2939_v35, %v9166_v34  ;;  %v2937_v49 = vsel %vm2879_vm3, %v2808_v22, %v9169_v63  ;;  %v9172_v10 = vld [vmem:[#allocation314_spill] sm:$0xff]  ;;  %v9181_v35 = vld [vmem:[#allocation243_spill] sm:$0xff] }
 0x3e4   : > { %v3384_v32 = vsel %vm3266_vm6, %v3255_v47, %v2417_v12  ;;  %v3839_v2 = vpop.f32.mrf.mxu1  ;;  %v2611_v41 = vsel %vm2428_vm0, %v4759_v39, %v9170_v42  ;;  %v2874_v48 = vsel %vm2750_vm2, %v2745_v21, %v9171_v17  ;;  %v3066_v33 = vsel %vm3008_vm4, %v2937_v49, %v9172_v10  ;;  %v9174_v47 = vld [vmem:[#allocation213_spill] sm:$0xff]  ;;  %v9175_v12 = vld [vmem:[#allocation48_spill] sm:$0xff]  ;;  %v9183_v26 = vld [vmem:[#allocation294_spill] sm:$0xff] }
 0x3e5   : > { %3986 = vst [vmem:[%s7789_s7 + $0x138] sm:$0xff] %v3848_v43  ;;  %v4324_v59 = vcombine.low %v3384_v32, %v3386_v45  ;;  %v3840_v36 = vadd.f32 %v7770_v27, %v3839_v2  ;;  %v2154_v5 = vpop.permute.xlu1 %2153  ;;  %v9173_v45 = vld [vmem:[#allocation156_spill] sm:$0xff]  ;;  %v2743_v43 = vsel %vm2621_vm1, %v2611_v41, %v9174_v47  ;;  %v3003_v32 = vsel %vm2879_vm3, %v2874_v48, %v9175_v12  ;;  %v9187_v49 = vld [vmem:[#allocation295_spill] sm:$0xff]  ;;  %v9189_v48 = vld [vmem:[#allocation269_spill] sm:$0xff] }
 0x3e6   : > { %v2620_v6 = vsel %vm2428_vm0, %v4760_v51, %v9173_v45  ;;  %v2872_v37 = vsel %vm2750_vm2, %v2743_v43, %v9177_v46  ;;  %v3132_v11 = vsel %vm3008_vm4, %v3003_v32, %v2154_v5  ;;  %v2685_v25 = vsel %vm2621_vm1, %v2524_v62, %v9178_v24  ;;  %v9182_v62 = vld [vmem:[#allocation66_spill] sm:$0xff]  ;;  %v9188_v41 = vld [vmem:[#allocation268_spill] sm:$0xff] }
 0x3e7   : > { %3984 = vst [vmem:[%s7789_s7 + $0x128] sm:$0xff] %v3840_v36  ;;  %4453 = vmatmul.mubr.bf16.gmra.mxu1 %v4324_v59  ;;  %v2152_v58 = vpop.permute.xlu0 %2151  ;;  %v4761_v36 = vld [vmem:[%s4844_s22 + $0x228] sm:$0xf]  ;;  %v3001_v20 = vsel %vm2879_vm3, %v2872_v37, %v9179_v28  ;;  %v2683_v0 = vsel %vm2621_vm1, %v2521_v14, %v9180_v18  ;;  %v2814_v8 = vsel %vm2750_vm2, %v2685_v25, %v9181_v35 }
 0x3e8   : > { %v3130_v5 = vsel %vm3008_vm4, %v3001_v20, %v2152_v58  ;;  %v2749_v7 = vsel %vm2621_vm1, %v2620_v6, %v9182_v62  ;;  %v9185_v58 = vld [vmem:[#allocation244_spill] sm:$0xff]  ;;  %v9186_v14 = vld [vmem:[#allocation315_spill] sm:$0xff] }
 0x3e9   : > { %v7982_v55 = vpop.permute.xlu1 %2157  ;;  %v2812_v15 = vsel %vm2750_vm2, %v2683_v0, %v9185_v58  ;;  %v2878_v17 = vsel %vm2750_vm2, %v2749_v7, %v9188_v41  ;;  %v9191_v6 = vld [vmem:[#allocation52_spill] sm:$0xff] }
 0x3ea   : > { %v3007_v47 = vsel %vm2879_vm3, %v2878_v17, %v9191_v6 }
 0x3eb   : > { %v7984_v16 = vpop.permute.xlu0 %2155 }
 0x3ed   : > { %v2221_v60 = vpop.permute.xlu1 %2220 }
 0x3ee   : > { %v3197_v9 = vsel %vm3137_vm5, %v3068_v19, %v2221_v60  ;;  %v9176_v60 = vld [vmem:[#allocation157_spill] sm:$0xff]  ;;  %v9184_v19 = vld [vmem:[#allocation214_spill] sm:$0xff] }
 0x3ef   : > { %v2219_v13 = vpop.permute.xlu0 %2218  ;;  %v2617_v23 = vsel %vm2428_vm0, %v4761_v36, %v9176_v60  ;;  %v3136_v60 = vsel %vm3008_vm4, %v3007_v47, %v7982_v55 }
 0x3f0   : > { %v3195_v2 = vsel %vm3137_vm5, %v3066_v33, %v2219_v13  ;;  %v2747_v29 = vsel %vm2621_vm1, %v2617_v23, %v9184_v19  ;;  %v9190_v33 = vld [vmem:[#allocation316_spill] sm:$0xff] }
 0x3f1   : > { %v2285_v4 = vpop.permute.xlu1 %2284  ;;  %v2876_v10 = vsel %vm2750_vm2, %v2747_v29, %v9189_v48 }
 0x3f2   : > { %v3261_v13 = vsel %vm3137_vm5, %v3132_v11, %v2285_v4  ;;  %v2943_v4 = vsel %vm2879_vm3, %v2814_v8, %v9183_v26 }
 0x3f3   : > { %v2283_v30 = vpop.permute.xlu0 %2282  ;;  %v3072_v57 = vsel %vm3008_vm4, %v2943_v4, %v9186_v14 }
 0x3f4   : > { %v3259_v52 = vsel %vm3137_vm5, %v3130_v5, %v2283_v30  ;;  %v2941_v30 = vsel %vm2879_vm3, %v2812_v15, %v9187_v49 }
 0x3f5   : > { %v7986_v53 = vpop.permute.xlu1 %2224 }
 0x3f7   : > { %v7988_v56 = vpop.permute.xlu0 %2222 }
 0x3f9   : > { %v7995_v44 = vpop.permute.xlu1 %2288 }
 0x3fb   : > { %v8006_v38 = vpop.permute.xlu0 %2286 }
 0x3fd   : > { %v2359_v1 = vpop.permute.xlu1 %2358 }
 0x3fe   : > { %v3326_v50 = vsel %vm3266_vm6, %v3197_v9, %v2359_v1  ;;  %v3201_v9 = vsel %vm3137_vm5, %v3072_v57, %v7986_v53 }
 0x3ff   : > { %v2357_v59 = vpop.permute.xlu0 %2356 }
 0x400   : > { %v3324_v3 = vsel %vm3266_vm6, %v3195_v2, %v2357_v59  ;;  %v9192_v59 = vld [vmem:[#allocation53_spill] sm:$0xff] }
 0x401   : > { %v4309_v61 = vcombine.low %v3324_v3, %v3326_v50  ;;  %v2423_v40 = vpop.permute.xlu1 %2422  ;;  %v3070_v50 = vsel %vm3008_vm4, %v2941_v30, %v9190_v33  ;;  %v3005_v36 = vsel %vm2879_vm3, %v2876_v10, %v9192_v59 }
 0x402   : > { %v3390_v54 = vsel %vm3266_vm6, %v3261_v13, %v2423_v40  ;;  %v4406_v31 = vpop.f32.mrf.mxu0  ;;  %v3199_v43 = vsel %vm3137_vm5, %v3070_v50, %v7988_v56  ;;  %v3265_v56 = vsel %vm3137_vm5, %v3136_v60, %v7995_v44  ;;  %v3134_v55 = vsel %vm3008_vm4, %v3005_v36, %v7984_v16 }
 0x403   : > { %v3733_v22 = vadd.f32 %v4406_v31, %v7770_v27  ;;  %4424 = vmatprep.mubr.bf16.mxu0 %v4309_v61  ;;  %v2421_v34 = vpop.permute.xlu0 %2420  ;;  %v3263_v13 = vsel %vm3137_vm5, %v3134_v55, %v8006_v38 }
 0x404   : > { %v3388_v21 = vsel %vm3266_vm6, %v3259_v52, %v2421_v34  ;;  %v3724_v63 = vpop.f32.mrf.mxu0 }
 0x405   : > { %3957 = vst [vmem:[%s7789_s7 + $0x50] sm:$0xff] %v3733_v22  ;;  %v4325_v1 = vcombine.low %v3388_v21, %v3390_v54  ;;  %v3725_v39 = vadd.f32 %v7770_v27, %v3724_v63  ;;  %v2363_v42 = vpop.permute.xlu1 %2362 }
 0x406   : > { %v3330_v51 = vsel %vm3266_vm6, %v3201_v9, %v2363_v42  ;;  %v4407_v45 = vpop.f32.mrf.mxu0  ;;  %v4438_v53 = vpop.f32.mrf.mxu1 }
 0x407   : > { %3955 = vst [vmem:[%s7789_s7 + $0x40] sm:$0xff] %v3725_v39  ;;  %v3736_v12 = vadd.f32 %v4407_v45, %v7770_v27  ;;  %v3861_v32 = vadd.f32 %v4438_v53, %v7770_v27  ;;  %4456 = vmatprep.mubr.bf16.mxu1 %v4325_v1  ;;  %v2361_v2 = vpop.permute.xlu0 %2360 }
 0x408   : > { %v3328_v23 = vsel %vm3266_vm6, %v3199_v43, %v2361_v2  ;;  %v3727_v46 = vpop.f32.mrf.mxu0  ;;  %v3852_v37 = vpop.f32.mrf.mxu1 }
 0x409   : > { %3958 = vst [vmem:[%s7789_s7 + $0x58] sm:$0xff] %v3736_v12  ;;  %3989 = vst [vmem:[%s7789_s7 + $0x150] sm:$0xff] %v3861_v32  ;;  %v4310_v11 = vcombine.low %v3328_v23, %v3330_v51  ;;  %v3728_v3 = vadd.f32 %v7770_v27, %v3727_v46  ;;  %v3853_v24 = vadd.f32 %v7770_v27, %v3852_v37  ;;  %v2427_v25 = vpop.permute.xlu1 %2426 }
 0x40a   : > { %v3394_v28 = vsel %vm3266_vm6, %v3265_v56, %v2427_v25  ;;  %v4439_v20 = vpop.f32.mrf.mxu1 }
 0x40b   : > { %3956 = vst [vmem:[%s7789_s7 + $0x48] sm:$0xff] %v3728_v3  ;;  %3987 = vst [vmem:[%s7789_s7 + $0x140] sm:$0xff] %v3853_v24  ;;  %4425 = vmatmul.mubr.bf16.gmra.mxu0 %v4310_v11  ;;  %v3864_v44 = vadd.f32 %v4439_v20, %v7770_v27  ;;  %v2425_v61 = vpop.permute.xlu0 %2424 }
 0x40c   : > { %v3392_v40 = vsel %vm3266_vm6, %v3263_v13, %v2425_v61  ;;  %v3855_v18 = vpop.f32.mrf.mxu1 }
 0x40d   : > { %3990 = vst [vmem:[%s7789_s7 + $0x158] sm:$0xff] %v3864_v44  ;;  %v4326_v0 = vcombine.low %v3392_v40, %v3394_v28  ;;  %v3856_v16 = vadd.f32 %v7770_v27, %v3855_v18 }
 0x40f   : > { %3988 = vst [vmem:[%s7789_s7 + $0x148] sm:$0xff] %v3856_v16  ;;  %4457 = vmatmul.mubr.bf16.gmra.mxu1 %v4326_v0 }
 0x42a   : > { %v4410_v38 = vpop.f32.mrf.mxu0 }
 0x42b   : > { %v3749_v35 = vadd.f32 %v4410_v38, %v7770_v27 }
 0x42c   : > { %v3740_v8 = vpop.f32.mrf.mxu0 }
 0x42d   : > { %3961 = vst [vmem:[%s7789_s7 + $0x70] sm:$0xff] %v3749_v35  ;;  %v3741_v5 = vadd.f32 %v7770_v27, %v3740_v8 }
 0x42e   : > { %v4411_v54 = vpop.f32.mrf.mxu0  ;;  %v4442_v31 = vpop.f32.mrf.mxu1 }
 0x42f   : > { %3959 = vst [vmem:[%s7789_s7 + $0x60] sm:$0xff] %v3741_v5  ;;  %v3752_v62 = vadd.f32 %v4411_v54, %v7770_v27  ;;  %v3877_v7 = vadd.f32 %v4442_v31, %v7770_v27 }
 0x430   : > { %v3743_v26 = vpop.f32.mrf.mxu0  ;;  %v3868_v4 = vpop.f32.mrf.mxu1 }
 0x431   : > { %3962 = vst [vmem:[%s7789_s7 + $0x78] sm:$0xff] %v3752_v62  ;;  %3993 = vst [vmem:[%s7789_s7 + $0x170] sm:$0xff] %v3877_v7  ;;  %v3744_v52 = vadd.f32 %v7770_v27, %v3743_v26  ;;  %v3869_v22 = vadd.f32 %v7770_v27, %v3868_v4 }
 0x432   : > { %v4443_v34 = vpop.f32.mrf.mxu1 }
 0x433   : > { %3960 = vst [vmem:[%s7789_s7 + $0x68] sm:$0xff] %v3744_v52  ;;  %3991 = vst [vmem:[%s7789_s7 + $0x160] sm:$0xff] %v3869_v22  ;;  %v3880_v19 = vadd.f32 %v4443_v34, %v7770_v27 }
 0x434   : > { %v3871_v29 = vpop.f32.mrf.mxu1 }
 0x435   : > { %3994 = vst [vmem:[%s7789_s7 + $0x178] sm:$0xff] %v3880_v19  ;;  %v3872_v58 = vadd.f32 %v7770_v27, %v3871_v29 }
 0x437   : > { %3992 = vst [vmem:[%s7789_s7 + $0x168] sm:$0xff] %v3872_v58 }
 0x452   : > { %v4414_v15 = vpop.f32.mrf.mxu0 }
 0x453   : > { %v3765_v14 = vadd.f32 %v4414_v15, %v7770_v27 }
 0x454   : > { %v3756_v57 = vpop.f32.mrf.mxu0 }
 0x455   : > { %3965 = vst [vmem:[%s7789_s7 + $0x90] sm:$0xff] %v3765_v14  ;;  %v3757_v21 = vadd.f32 %v7770_v27, %v3756_v57 }
 0x456   : > { %v4415_v63 = vpop.f32.mrf.mxu0  ;;  %v4446_v49 = vpop.f32.mrf.mxu1 }
 0x457   : > { %3963 = vst [vmem:[%s7789_s7 + $0x80] sm:$0xff] %v3757_v21  ;;  %v3768_v30 = vadd.f32 %v4415_v63, %v7770_v27  ;;  %v3893_v9 = vadd.f32 %v4446_v49, %v7770_v27 }
 0x458   : > { %v3759_v1 = vpop.f32.mrf.mxu0  ;;  %v3884_v39 = vpop.f32.mrf.mxu1 }
 0x459   : > { %3966 = vst [vmem:[%s7789_s7 + $0x98] sm:$0xff] %v3768_v30  ;;  %3997 = vst [vmem:[%s7789_s7 + $0x190] sm:$0xff] %v3893_v9  ;;  %v3760_v42 = vadd.f32 %v7770_v27, %v3759_v1  ;;  %v3885_v41 = vadd.f32 %v7770_v27, %v3884_v39 }
 0x45a   : > { %v4447_v17 = vpop.f32.mrf.mxu1 }
 0x45b   : > { %3964 = vst [vmem:[%s7789_s7 + $0x88] sm:$0xff] %v3760_v42  ;;  %3995 = vst [vmem:[%s7789_s7 + $0x180] sm:$0xff] %v3885_v41  ;;  %v3896_v48 = vadd.f32 %v4447_v17, %v7770_v27 }
 0x45c   : > { %v3887_v10 = vpop.f32.mrf.mxu1 }
 0x45d   : > { %3998 = vst [vmem:[%s7789_s7 + $0x198] sm:$0xff] %v3896_v48  ;;  %v3888_v33 = vadd.f32 %v7770_v27, %v3887_v10 }
 0x45f   : > { %3996 = vst [vmem:[%s7789_s7 + $0x188] sm:$0xff] %v3888_v33 }
 0x47b   : > { %v4418_v50 = vpop.f32.mrf.mxu0 }
 0x47c   : > { %v3781_v51 = vadd.f32 %v4418_v50, %v7770_v27 }
 0x47d   : > { %v3772_v45 = vpop.f32.mrf.mxu0 }
 0x47e   : > { %3969 = vst [vmem:[%s7789_s7 + $0xb0] sm:$0xff] %v3781_v51  ;;  %v3773_v53 = vadd.f32 %v7770_v27, %v3772_v45 }
 0x47f   : > { %v4419_v6 = vpop.f32.mrf.mxu0  ;;  %v4450_v47 = vpop.f32.mrf.mxu1 }
 0x480   : > { %3967 = vst [vmem:[%s7789_s7 + $0xa0] sm:$0xff] %v3773_v53  ;;  %v3784_v43 = vadd.f32 %v4419_v6, %v7770_v27  ;;  %v3909_v12 = vadd.f32 %v4450_v47, %v7770_v27 }
 0x481   : > { %v3775_v32 = vpop.f32.mrf.mxu0  ;;  %v3900_v2 = vpop.f32.mrf.mxu1 }
 0x482   : > { %3970 = vst [vmem:[%s7789_s7 + $0xb8] sm:$0xff] %v3784_v43  ;;  %4001 = vst [vmem:[%s7789_s7 + $0x1b0] sm:$0xff] %v3909_v12  ;;  %v3776_v59 = vadd.f32 %v7770_v27, %v3775_v32  ;;  %v3901_v36 = vadd.f32 %v7770_v27, %v3900_v2 }
 0x483   : > { %v4451_v60 = vpop.f32.mrf.mxu1 }
 0x484   : > { %3968 = vst [vmem:[%s7789_s7 + $0xa8] sm:$0xff] %v3776_v59  ;;  %3999 = vst [vmem:[%s7789_s7 + $0x1a0] sm:$0xff] %v3901_v36  ;;  %v3912_v23 = vadd.f32 %v4451_v60, %v7770_v27 }
 0x485   : > { %v3903_v46 = vpop.f32.mrf.mxu1 }
 0x486   : > { %4002 = vst [vmem:[%s7789_s7 + $0x1b8] sm:$0xff] %v3912_v23  ;;  %v3904_v37 = vadd.f32 %v7770_v27, %v3903_v46 }
 0x488   : > { %4000 = vst [vmem:[%s7789_s7 + $0x1a8] sm:$0xff] %v3904_v37 }
 0x4a3   : > { %v4422_v56 = vpop.f32.mrf.mxu0 }
 0x4a4   : > { %v3797_v11 = vadd.f32 %v4422_v56, %v7770_v27 }
 0x4a5   : > { %v3788_v3 = vpop.f32.mrf.mxu0 }
 0x4a6   : > { %3973 = vst [vmem:[%s7789_s7 + $0xd0] sm:$0xff] %v3797_v11  ;;  %v3789_v24 = vadd.f32 %v7770_v27, %v3788_v3 }
 0x4a7   : > { %v4423_v25 = vpop.f32.mrf.mxu0  ;;  %v4454_v55 = vpop.f32.mrf.mxu1 }
 0x4a8   : > { %3971 = vst [vmem:[%s7789_s7 + $0xc0] sm:$0xff] %v3789_v24  ;;  %v3800_v28 = vadd.f32 %v4423_v25, %v7770_v27  ;;  %v3925_v20 = vadd.f32 %v4454_v55, %v7770_v27 }
 0x4a9   : > { %v3791_v13 = vpop.f32.mrf.mxu0  ;;  %v3916_v44 = vpop.f32.mrf.mxu1 }
 0x4aa   : > { %3974 = vst [vmem:[%s7789_s7 + $0xd8] sm:$0xff] %v3800_v28  ;;  %4005 = vst [vmem:[%s7789_s7 + $0x1d0] sm:$0xff] %v3925_v20  ;;  %v3792_v61 = vadd.f32 %v7770_v27, %v3791_v13  ;;  %v3917_v40 = vadd.f32 %v7770_v27, %v3916_v44 }
 0x4ab   : > { %v4455_v18 = vpop.f32.mrf.mxu1 }
 0x4ac   : > { %3972 = vst [vmem:[%s7789_s7 + $0xc8] sm:$0xff] %v3792_v61  ;;  %4003 = vst [vmem:[%s7789_s7 + $0x1c0] sm:$0xff] %v3917_v40  ;;  %v3928_v0 = vadd.f32 %v4455_v18, %v7770_v27 }
 0x4ad   : > { %v3919_v16 = vpop.f32.mrf.mxu1 }
 0x4ae   : > { %4006 = vst [vmem:[%s7789_s7 + $0x1d8] sm:$0xff] %v3928_v0  ;;  %v3920_v38 = vadd.f32 %v7770_v27, %v3919_v16 }
 0x4b0   : > { %4004 = vst [vmem:[%s7789_s7 + $0x1c8] sm:$0xff] %v3920_v38 }
 0x4cb   : > { %v4426_v35 = vpop.f32.mrf.mxu0 }
 0x4cc   : > { %v3813_v8 = vadd.f32 %v4426_v35, %v7770_v27 }
 0x4cd   : > { %v3804_v5 = vpop.f32.mrf.mxu0 }
 0x4ce   : > { %3977 = vst [vmem:[%s7789_s7 + $0xf0] sm:$0xff] %v3813_v8  ;;  %v3805_v54 = vadd.f32 %v7770_v27, %v3804_v5 }
 0x4cf   : > { %v4427_v31 = vpop.f32.mrf.mxu0  ;;  %v4458_v62 = vpop.f32.mrf.mxu1 }
 0x4d0   : > { %3975 = vst [vmem:[%s7789_s7 + $0xe0] sm:$0xff] %v3805_v54  ;;  %v3816_v7 = vadd.f32 %v4427_v31, %v7770_v27  ;;  %v3941_v26 = vadd.f32 %v4458_v62, %v7770_v27 }
 0x4d1   : > { %v3807_v4 = vpop.f32.mrf.mxu0  ;;  %v3932_v52 = vpop.f32.mrf.mxu1 }
 0x4d2   : > { %3978 = vst [vmem:[%s7789_s7 + $0xf8] sm:$0xff] %v3816_v7  ;;  %4009 = vst [vmem:[%s7789_s7 + $0x1f0] sm:$0xff] %v3941_v26  ;;  %v3808_v22 = vadd.f32 %v7770_v27, %v3807_v4  ;;  %v3933_v34 = vadd.f32 %v7770_v27, %v3932_v52 }
 0x4d3   : > { %v4459_v19 = vpop.f32.mrf.mxu1 }
 0x4d4   : > { %3976 = vst [vmem:[%s7789_s7 + $0xe8] sm:$0xff] %v3808_v22  ;;  %4007 = vst [vmem:[%s7789_s7 + $0x1e0] sm:$0xff] %v3933_v34  ;;  %v3944_v29 = vadd.f32 %v4459_v19, %v7770_v27 }
 0x4d5   : > { %v3935_v58 = vpop.f32.mrf.mxu1 }
 0x4d6   : > { %4010 = vst [vmem:[%s7789_s7 + $0x1f8] sm:$0xff] %v3944_v29  ;;  %v3936_v15 = vadd.f32 %v7770_v27, %v3935_v58 }
 0x4d8   : > { %4008 = vst [vmem:[%s7789_s7 + $0x1e8] sm:$0xff] %v3936_v15 }
 0x4d9 PF: > { %s14_s17 = sadd.s32 1, %s4784_s17   ;;  %s9193_s15 = smov %s4780_s16 }
 0x4da   : > { %p11_p5 = scmp.ge.s32.totalorder %s14_s17, 4   ;;  %s9194_s16 = smov %s9196_s18 }
 0x4dc   :  { %13 = sbr.rel (!%p11_p5) target bundleno = 2 (0x2), region = 69 }

</bundles_post_ra>
